<compile_context>
chip_gen: v7x
topology: tpu7x:2x2x1
jax: 0.10.0
libtpu: 0.0.40
codegen_flags: <defaults>
</compile_context>

<pallas_src>
import numpy as np
import jax
import jax.numpy as jnp
from jax import lax
from jax.experimental import pallas as pl
from jax.experimental.pallas import tpu as pltpu


# ---------------------------------------------------------------------------
# Static config
# ---------------------------------------------------------------------------

def build_static_cfg(input_channels, layer_nums, layer_strides, num_filters,
                     upsample_strides, num_upsample_filters, H0, W0):
    assert len(layer_nums) == len(layer_strides) == len(num_filters)
    assert len(upsample_strides) == len(num_upsample_filters)
    assert len(upsample_strides) == len(layer_nums), \
        "one deblock per block expected (matches the tested config)"
    layers, blocks_out = [], []
    c_in_list = [input_channels] + list(num_filters[:-1])
    H, W = H0, W0
    for bi in range(len(layer_nums)):
        chain = [(c_in_list[bi], num_filters[bi], int(layer_strides[bi]))]
        chain += [(num_filters[bi], num_filters[bi], 1)] * int(layer_nums[bi])
        for j, (ci, co, s) in enumerate(chain):
            assert H % s == 0 and W % s == 0
            layers.append(dict(block=bi, Hin=H, Win=W, Cin=ci, Cout=co, stride=s,
                               Hout=H // s, Wout=W // s,
                               block_end=(j == len(chain) - 1)))
            H, W = H // s, W // s
        blocks_out.append(dict(H=H, W=W, C=num_filters[bi]))
    deblocks = []
    for bi in range(len(upsample_strides)):
        s = int(upsample_strides[bi])
        assert s >= 1, "fractional upsample strides not supported"
        bm = blocks_out[bi]
        deblocks.append(dict(s=s, Cin=num_filters[bi], Cup=int(num_upsample_filters[bi]),
                             Hlow=bm["H"], Wlow=bm["W"],
                             Hup=bm["H"] * s, Wup=bm["W"] * s))
    assert len({(d["Hup"], d["Wup"]) for d in deblocks}) == 1

    # scratch planning: one flat zero-padded scratch per distinct (Cin,Hin,Win),
    # sequentially reused by every layer with that input shape.
    pad_keys, pad_meta, layer_scratch_idx = {}, [], []
    dense_meta, layer_dense_idx = [], {}
    for li, lay in enumerate(layers):
        key = (lay["Cin"], lay["Hin"], lay["Win"])
        if key not in pad_keys:
            Wp = lay["Win"] + 2
            pad_keys[key] = len(pad_meta)
            pad_meta.append(dict(C=lay["Cin"], H=lay["Hin"], Wp=Wp,
                                 Lbuf=(lay["Hin"] + 2) * Wp + Wp))
        layer_scratch_idx.append(pad_keys[key])
        if lay["stride"] > 1:
            layer_dense_idx[li] = len(dense_meta)
            dense_meta.append(dict(C=lay["Cin"],
                                   L=lay["Hout"] * (lay["Wout"] + 2)))
    return dict(H0=H0, W0=W0, C0=input_channels, layers=layers, deblocks=deblocks,
                blocks_out=blocks_out, n_blocks=len(layer_nums),
                pad_meta=pad_meta, layer_scratch_idx=layer_scratch_idx,
                dense_meta=dense_meta, layer_dense_idx=layer_dense_idx)


# ---------------------------------------------------------------------------
# Host-side parameter preparation (BN folding, channel-major weights)
# ---------------------------------------------------------------------------

def prepare_kernel_params(raw, cfg):
    lay_params, li = [], 0
    for blk in raw["blocks"]:
        for (dw, pw, sc, sh, _stride) in blk:
            lay = cfg["layers"][li]
            cin = lay["Cin"]
            # depthwise taps, channel-major: (Cin, 9) with tap index t = ky*3+kx
            dw_cm = jnp.asarray(dw, jnp.float32).reshape(9, cin).T
            # 1x1 conv with BN scale folded, channel-major: (Cout, Cin), bf16
            pw_s = (jnp.asarray(pw, jnp.float32) * jnp.asarray(sc, jnp.float32)[None, :]).T
            p = dict(dw=dw_cm,
                     pw=pw_s.astype(jnp.bfloat16),
                     b=jnp.asarray(sh, jnp.float32)[:, None])
            if lay["stride"] > 1:
                s = lay["stride"]
                Wp_in, Wo = lay["Win"] + 2, lay["Wout"]
                sel = np.zeros((Wp_in, Wo + 2), np.float32)   # 2 trailing zero (gap) cols
                for wo in range(Wo):
                    sel[s * wo, wo] = 1.0
                p["selw"] = jnp.asarray(sel)
            lay_params.append(p)
            li += 1

    deb_params = []
    for di, (w, sc, sh, s) in enumerate(raw["deblocks"]):
        deb = cfg["deblocks"][di]
        cin, cup = deb["Cin"], deb["Cup"]
        w2 = jnp.transpose(jnp.asarray(w, jnp.float32), (0, 2, 3, 1)).reshape(cin, s * s * cup)
        w2 = w2 * jnp.tile(jnp.asarray(sc, jnp.float32), s * s)[None, :]   # fold BN scale
        p = dict(wT=w2.T.astype(jnp.bfloat16),                             # (s*s*Cup, Cin)
                 b=jnp.tile(jnp.asarray(sh, jnp.float32), s * s)[:, None])
        if s > 1:
            Wlow, Wup = deb["Wlow"], deb["Wup"]
            P = np.zeros((s, Wlow, Wup), np.float32)
            for q in range(s):
                for w_ in range(Wlow):
                    P[q, w_, s * w_ + q] = 1.0                              # lane interleave
            p["P"] = jnp.asarray(P)
        deb_params.append(p)
    return dict(layers=lay_params, deblocks=deb_params)


# ---------------------------------------------------------------------------
# The fused Pallas kernel
# ---------------------------------------------------------------------------

def _make_kernel(cfg):
    layers, deblocks = cfg["layers"], cfg["deblocks"]
    n_layers, n_blocks = len(layers), cfg["n_blocks"]
    pad_meta, dense_meta = cfg["pad_meta"], cfg["dense_meta"]
    lay_scr_idx, lay_dense_idx = cfg["layer_scratch_idx"], cfg["layer_dense_idx"]

    def kernel(*refs):
        it = iter(refs)
        x_ref = next(it)
        lay_refs = []
        for lay in layers:
            d = dict(dw=next(it), pw=next(it), b=next(it))
            if lay["stride"] > 1:
                d["selw"] = next(it)
            lay_refs.append(d)
        deb_refs = []
        for deb in deblocks:
            d = dict(wT=next(it), b=next(it))
            if deb["s"] > 1:
                d["P"] = next(it)
            deb_refs.append(d)
        out_ref = next(it)
        aux_refs = [next(it) for _ in range(n_blocks)]
        pad_scr = [next(it) for _ in range(len(pad_meta))]
        dense_scr = [next(it) for _ in range(len(dense_meta))]
        assert next(it, None) is None

        # --- zero only the small top/bottom pad strips each step; the interior
        #     (incl. inter-row gap columns) is fully rewritten every step.
        for m, ref in zip(pad_meta, pad_scr):
            Wp, H, L = m["Wp"], m["H"], m["Lbuf"]
            ref[:, 0:Wp + 1] = jnp.zeros((m["C"], Wp + 1), jnp.float32)
            ref[:, Wp + 1 + H * Wp:L] = jnp.zeros(
                (m["C"], L - (Wp + 1 + H * Wp)), jnp.float32)

        # --- stage the width-padded channel-major input (one contiguous store)
        lay0 = layers[0]
        Wp0 = lay0["Win"] + 2
        pad_scr[lay_scr_idx[0]][:, Wp0 + 1:Wp0 + 1 + lay0["Hin"] * Wp0] = \
            x_ref[0].astype(jnp.float32)

        mask_cache = {}

        def col_mask(Hr, Wv, Wr):           # zero the 2 gap columns per row
            key = (Hr, Wv, Wr)
            if key not in mask_cache:
                col = lax.broadcasted_iota(jnp.int32, (1, Hr * Wr), 1)
                mask_cache[key] = ((col % Wr) < Wv).astype(jnp.float32)
            return mask_cache[key]

        # ------------------------------ conv blocks --------------------------
        for li, lay in enumerate(layers):
            Cin, s = lay["Cin"], lay["stride"]
            H, W = lay["Hin"], lay["Win"]
            Ho, Wo = lay["Hout"], lay["Wout"]
            Wp, Wpo = W + 2, Wo + 2
            Lin = H * Wp
            r = lay_refs[li]
            S = pad_scr[lay_scr_idx[li]]

            # depthwise 3x3, padding 1: nine contiguous lane-shifted loads of the
            # flat zero-padded scratch, scaled per-channel on the VPU (f32).
            dw = r["dw"][...]                                   # (Cin, 9)
            acc = None
            for ky in range(3):
                for kx in range(3):
                    off = ky * Wp + kx
                    tap = S[:, off:off + Lin] * dw[:, ky * 3 + kx:ky * 3 + kx + 1]
                    acc = tap if acc is None else acc + tap
            # ChannelShuffle(groups=Cin) on Cin channels: channels_per_group == 1
            # -> identity.

            if s > 1:
                # stride-s decimation: one tiny (Wp, Wpo) 0/1 selection matmul per
                # output row -- no O(M^2) selection matrix, no strided access.
                # TODO(synk): use hardware strided loads for production BEV sizes.
                D = dense_scr[lay_dense_idx[li]]
                selw = r["selw"][...]
                for ho in range(Ho):
                    row = acc[:, (s * ho) * Wp:(s * ho) * Wp + Wp]       # (Cin, Wp)
                    D[:, ho * Wpo:(ho + 1) * Wpo] = jnp.dot(
                        row, selw, preferred_element_type=jnp.float32)
                xin = D[...]
            else:
                xin = acc

            # 1x1 conv (+ folded BN scale): channel-major (Cout,Cin)@(Cin,M) keeps
            # the long spatial axis on the MXU N axis; bf16 operands, f32 accum.
            y = jnp.dot(r["pw"][...], xin.astype(jnp.bfloat16),
                        preferred_element_type=jnp.float32)             # (Cout, Ho*Wpo)
            y = jnp.maximum(y + r["b"][...], 0.0)
            y = y * col_mask(Ho, Wo, Wpo)

            if lay["block_end"]:
                aux_refs[lay["block"]][0] = y                            # lane-dense store

            if li + 1 < n_layers:
                nxt = layers[li + 1]
                Sn = pad_scr[lay_scr_idx[li + 1]]
                Wpn = nxt["Win"] + 2
                # the masked row-padded layout drops straight into the next padded
                # scratch: the zeroed gap columns become the conv zero-padding.
                Sn[:, Wpn + 1:Wpn + 1 + nxt["Hin"] * Wpn] = y

        # -------- deblocks: ConvTranspose(k=s, stride=s) + BN + ReLU ----------
        c_off = 0
        for di, deb in enumerate(deblocks):
            rr = deb_refs[di]
            s, Cup = deb["s"], deb["Cup"]
            Hlow, Wlow, Wup = deb["Hlow"], deb["Wlow"], deb["Wup"]
            Wrow = Wlow + 2
            yb = aux_refs[di][0]                                         # (Cin, Hlow*Wrow)
            Yd = jnp.dot(rr["wT"][...], yb.astype(jnp.bfloat16),
                         preferred_element_type=jnp.float32)             # (s*s*Cup, Hlow*Wrow)
            Yd = jnp.maximum(Yd + rr["b"][...], 0.0)   # exact: pixel shuffle is a permutation
            if s == 1:
                for h in range(Hlow):
                    out_ref[0, c_off:c_off + Cup, h * Wup:(h + 1) * Wup] = \
                        Yd[0:Cup, h * Wrow:h * Wrow + Wlow]
            else:
                # pixel shuffle via tiny (Wlow, Wup) lane-interleave matmuls +
                # direct per-row stores (no O(M^2) scatter matrices).
                for p_ in range(s):
                    for h in range(Hlow):
                        rowv = None
                        for q in range(s):
                            t = p_ * s + q
                            blk = Yd[t * Cup:(t + 1) * Cup, h * Wrow:h * Wrow + Wlow]
                            part = jnp.dot(blk, rr["P"][q],
                                           preferred_element_type=jnp.float32)
                            rowv = part if rowv is None else rowv + part
                        ro = s * h + p_
                        out_ref[0, c_off:c_off + Cup, ro * Wup:(ro + 1) * Wup] = rowv
            c_off += Cup

    return kernel


# ---------------------------------------------------------------------------
# Wrapper
# ---------------------------------------------------------------------------

def fused_backbone(x_nchw, kparams, cfg):
    B, C0, H0, W0 = x_nchw.shape
    assert (C0, H0, W0) == (cfg["C0"], cfg["H0"], cfg["W0"])
    layers, deblocks = cfg["layers"], cfg["deblocks"]
    Wp0 = W0 + 2

    # channel-major input: NCHW + 2 zero pad columns, reshaped flat (no transpose)
    x_flat = jnp.pad(x_nchw.astype(jnp.float32),
                     ((0, 0), (0, 0), (0, 0), (0, 2))).reshape(B, C0, H0 * Wp0)

    def const_spec(arr):
        nd = arr.ndim
        idx = lambda b, _nd=nd: (0,) * _nd
        try:
            # parameter blocks never change across the batch grid -> single-buffer
            return pl.BlockSpec(tuple(arr.shape), idx, pipeline_mode=pl.Buffered(1))
        except Exception:
            return pl.BlockSpec(tuple(arr.shape), idx)

    inputs = [x_flat]
    in_specs = [pl.BlockSpec((1, C0, H0 * Wp0), lambda b: (b, 0, 0))]
    for lay, p in zip(layers, kparams["layers"]):
        for name in ("dw", "pw", "b"):
            inputs.append(p[name]); in_specs.append(const_spec(p[name]))
        if lay["stride"] > 1:
            inputs.append(p["selw"]); in_specs.append(const_spec(p["selw"]))
    for deb, p in zip(deblocks, kparams["deblocks"]):
        inputs.append(p["wT"]); in_specs.append(const_spec(p["wT"]))
        inputs.append(p["b"]); in_specs.append(const_spec(p["b"]))
        if deb["s"] > 1:
            inputs.append(p["P"]); in_specs.append(const_spec(p["P"]))

    C_bev = sum(d["Cup"] for d in deblocks)
    Hup, Wup = deblocks[0]["Hup"], deblocks[0]["Wup"]
    Mup = Hup * Wup
    out_shape = [jax.ShapeDtypeStruct((B, C_bev, Mup), jnp.float32)]
    out_specs = [pl.BlockSpec((1, C_bev, Mup), lambda b: (b, 0, 0))]
    aux_meta = []
    for bm in cfg["blocks_out"]:
        Cb, Hb, Wb = bm["C"], bm["H"], bm["W"]
        Lb = Hb * (Wb + 2)
        aux_meta.append((Cb, Hb, Wb))
        out_shape.append(jax.ShapeDtypeStruct((B, Cb, Lb), jnp.float32))
        out_specs.append(pl.BlockSpec((1, Cb, Lb), lambda b: (b, 0, 0)))

    scratch_shapes = (
        [pltpu.VMEM((m["C"], m["Lbuf"]), jnp.float32) for m in cfg["pad_meta"]] +
        [pltpu.VMEM((m["C"], m["L"]), jnp.float32) for m in cfg["dense_meta"]])

    # rough cost estimate + explicit VMEM budget with headroom
    flops = 0
    for lay in layers:
        Wp, Wpo = lay["Win"] + 2, lay["Wout"] + 2
        Lin, Lout = lay["Hin"] * Wp, lay["Hout"] * Wpo
        flops += 2 * 9 * Lin * lay["Cin"]
        if lay["stride"] > 1:
            flops += 2 * lay["Hout"] * lay["Cin"] * Wp * Wpo
        flops += 2 * Lout * lay["Cin"] * lay["Cout"]
    for d in deblocks:
        Llow = d["Hlow"] * (d["Wlow"] + 2)
        flops += 2 * Llow * d["Cin"] * d["s"] * d["s"] * d["Cup"]
        if d["s"] > 1:
            flops += 2 * d["s"] * d["s"] * d["Hlow"] * d["Cup"] * d["Wlow"] * d["Wup"]
    flops *= B

    param_bytes = sum(int(np.prod(a.shape)) * a.dtype.itemsize for a in inputs[1:])
    scratch_bytes = 4 * sum(m["C"] * m["Lbuf"] for m in cfg["pad_meta"])
    scratch_bytes += 4 * sum(m["C"] * m["L"] for m in cfg["dense_meta"])
    block_bytes = 4 * (C0 * H0 * Wp0 + sum(int(np.prod(s.shape[1:])) for s in out_shape))
    per_step_bytes = param_bytes + scratch_bytes + block_bytes
    vmem_limit = int(min(max(4 * per_step_bytes, 16 << 20), 48 << 20))
    io_bytes = 4 * (int(np.prod(x_flat.shape)) + sum(int(np.prod(s.shape)) for s in out_shape))

    outs = pl.pallas_call(
        _make_kernel(cfg),
        out_shape=tuple(out_shape),
        grid_spec=pltpu.PrefetchScalarGridSpec(
            num_scalar_prefetch=0,
            grid=(B,),
            in_specs=in_specs,
            out_specs=tuple(out_specs),
            scratch_shapes=scratch_shapes),
        compiler_params=pltpu.CompilerParams(
            dimension_semantics=("parallel",),
            vmem_limit_bytes=vmem_limit),
        cost_estimate=pl.CostEstimate(flops=int(flops), transcendentals=0,
                                      bytes_accessed=int(io_bytes + B * param_bytes)),
    )(*inputs)

    out2d = outs[0].reshape(B, C_bev, Hup, Wup)                   # NCHW via reshape only
    aux = []
    for i, (Cb, Hb, Wb) in enumerate(aux_meta):
        aux.append(outs[1 + i].reshape(B, Cb, Hb, Wb + 2)[:, :, :, :Wb])
    return out2d, aux


def forward(data_dict, kparams, cfg):
    x_nchw = data_dict["spatial_features"]
    out2d, aux = fused_backbone(x_nchw, kparams, cfg)
    ret = dict(data_dict)
    H0 = x_nchw.shape[2]
    for a in aux:
        ret["spatial_features_%dx" % (H0 // a.shape[2])] = a
    ret["spatial_features_2d"] = out2d
    return ret


# ---------------------------------------------------------------------------
# Deterministic synthetic parameters
# ---------------------------------------------------------------------------

def init_model_params(key, input_channels, layer_nums, layer_strides, num_filters,
                      upsample_strides, num_upsample_filters):
    keys = iter(jax.random.split(key, 128))

    def nk():
        return next(keys)

    def bn_params(c):
        gamma = 1.0 + 0.1 * jax.random.normal(nk(), (c,), jnp.float32)
        beta = 0.1 * jax.random.normal(nk(), (c,), jnp.float32)
        rmean = 0.1 * jax.random.normal(nk(), (c,), jnp.float32)
        rvar = 1.0 + 0.1 * jax.random.uniform(nk(), (c,), jnp.float32)
        eps = 1e-3
        scale = gamma / jnp.sqrt(rvar + eps)
        shift = beta - rmean * scale
        return scale, shift

    blocks = []
    c_in_list = [input_channels] + list(num_filters[:-1])
    for i in range(len(layer_nums)):
        layers = []
        cin, nf = c_in_list[i], num_filters[i]
        dw = 0.1 * jax.random.normal(nk(), (3, 3, cin), jnp.float32)
        pw = 0.1 * jax.random.normal(nk(), (cin, nf), jnp.float32)
        sc, sh = bn_params(nf)
        layers.append((dw, pw, sc, sh, layer_strides[i]))
        for _ in range(layer_nums[i]):
            dw = 0.1 * jax.random.normal(nk(), (3, 3, nf), jnp.float32)
            pw = 0.1 * jax.random.normal(nk(), (nf, nf), jnp.float32)
            sc, sh = bn_params(nf)
            layers.append((dw, pw, sc, sh, 1))
        blocks.append(layers)

    deblocks = []
    for i in range(len(upsample_strides)):
        s = upsample_strides[i]
        nf, nup = num_filters[i], num_upsample_filters[i]
        w = 0.1 * jax.random.normal(nk(), (nf, nup, s, s), jnp.float32)
        sc, sh = bn_params(nup)
        deblocks.append((w, sc, sh, s))

    return {"blocks": blocks, "deblocks": deblocks}


# ---------------------------------------------------------------------------
# Pure-JAX (lax.conv) reference for validation
# ---------------------------------------------------------------------------

def ref_forward(x_nchw, raw_params):
    P = jax.lax.Precision.HIGHEST

    def dw_conv(x, w, stride):
        c = x.shape[1]
        wl = jnp.transpose(w, (2, 0, 1))[:, None, :, :]
        return jax.lax.conv_general_dilated(
            x, wl, (stride, stride), ((1, 1), (1, 1)),
            dimension_numbers=("NCHW", "OIHW", "NCHW"),
            feature_group_count=c, precision=P)

    def pw_conv(x, w):
        wl = jnp.transpose(w, (1, 0))[:, :, None, None]
        return jax.lax.conv_general_dilated(
            x, wl, (1, 1), "VALID",
            dimension_numbers=("NCHW", "OIHW", "NCHW"), precision=P)

    def bn_relu(x, sc, sh):
        return jnp.maximum(x * sc[None, :, None, None] + sh[None, :, None, None], 0.0)

    def conv_t(x, w, s):
        cin, cout, k, _ = w.shape
        wl = jnp.transpose(w[:, :, ::-1, ::-1], (1, 0, 2, 3))
        return jax.lax.conv_general_dilated(
            x, wl, (1, 1), ((k - 1, k - 1), (k - 1, k - 1)),
            lhs_dilation=(s, s),
            dimension_numbers=("NCHW", "OIHW", "NCHW"), precision=P)

    x = x_nchw
    ups, feats = [], []
    for i, blk in enumerate(raw_params["blocks"]):
        for (dw, pw, sc, sh, stride) in blk:
            x = bn_relu(pw_conv(dw_conv(x, dw, stride), pw), sc, sh)
        feats.append(x)
        w, scd, shd, s = raw_params["deblocks"][i]
        ups.append(bn_relu(conv_t(x, w, s), scd, shd))
    out = jnp.concatenate(ups, axis=1) if len(ups) > 1 else ups[0]
    return out, feats


# ---------------------------------------------------------------------------

if __name__ == "__main__":
    key = jax.random.PRNGKey(0)
    k_in, k_par = jax.random.split(key)

    input_channels = 4
    layer_nums = [1, 1]
    layer_strides = [1, 2]
    num_filters = [8, 16]
    upsample_strides = [1, 2]
    num_upsample_filters = [8, 8]
    B, H0, W0 = 2, 16, 16

    x = jax.random.normal(k_in, (B, input_channels, H0, W0), jnp.float32)
    raw = init_model_params(k_par, input_channels, layer_nums, layer_strides,
                            num_filters, upsample_strides, num_upsample_filters)
    cfg = build_static_cfg(input_channels, layer_nums, layer_strides, num_filters,
                           upsample_strides, num_upsample_filters, H0, W0)
    kparams = prepare_kernel_params(raw, cfg)

    out_dict = forward({"spatial_features": x}, kparams, cfg)
    y = out_dict["spatial_features_2d"]
    jax.block_until_ready(y)

    y_ref, feats_ref = ref_forward(x, raw)
    assert y.shape == y_ref.shape == (B, sum(num_upsample_filters), H0, W0), y.shape
    np.testing.assert_allclose(np.asarray(y), np.asarray(y_ref), rtol=2e-2, atol=2e-2)
    for fr in feats_ref:
        k = "spatial_features_%dx" % (H0 // fr.shape[2])
        np.testing.assert_allclose(np.asarray(out_dict[k]), np.asarray(fr),
                                   rtol=2e-2, atol=2e-2)

    print("KERNEL_OK")
</pallas_src>

<mosaic_0001>
module attributes {stable_mosaic.version = 11 : i64} {
  func.func @kernel(%arg0: i32, %arg1: memref<1x4x288xf32, #tpu.memory_space<vmem>>, %arg2: memref<4x9xf32, #tpu.memory_space<vmem>>, %arg3: memref<8x4xbf16, #tpu.memory_space<vmem>>, %arg4: memref<8x1xf32, #tpu.memory_space<vmem>>, %arg5: memref<8x9xf32, #tpu.memory_space<vmem>>, %arg6: memref<8x8xbf16, #tpu.memory_space<vmem>>, %arg7: memref<8x1xf32, #tpu.memory_space<vmem>>, %arg8: memref<8x9xf32, #tpu.memory_space<vmem>>, %arg9: memref<16x8xbf16, #tpu.memory_space<vmem>>, %arg10: memref<16x1xf32, #tpu.memory_space<vmem>>, %arg11: memref<18x10xf32, #tpu.memory_space<vmem>>, %arg12: memref<16x9xf32, #tpu.memory_space<vmem>>, %arg13: memref<16x16xbf16, #tpu.memory_space<vmem>>, %arg14: memref<16x1xf32, #tpu.memory_space<vmem>>, %arg15: memref<8x8xbf16, #tpu.memory_space<vmem>>, %arg16: memref<8x1xf32, #tpu.memory_space<vmem>>, %arg17: memref<32x16xbf16, #tpu.memory_space<vmem>>, %arg18: memref<32x1xf32, #tpu.memory_space<vmem>>, %arg19: memref<2x8x16xf32, #tpu.memory_space<vmem>>, %arg20: memref<1x16x256xf32, #tpu.memory_space<vmem>>, %arg21: memref<1x8x288xf32, #tpu.memory_space<vmem>>, %arg22: memref<1x16x80xf32, #tpu.memory_space<vmem>>, %arg23: memref<4x342xf32, #tpu.memory_space<vmem>>, %arg24: memref<8x342xf32, #tpu.memory_space<vmem>>, %arg25: memref<16x110xf32, #tpu.memory_space<vmem>>, %arg26: memref<8x80xf32, #tpu.memory_space<vmem>>) attributes {dimension_semantics = [#tpu.dimension_semantics<parallel>], iteration_bounds = array<i64: 2>, scalar_prefetch = 0 : i64, scratch_operands = 4 : i64, tpu.core_type = #tpu.core_type<tc>, window_params = [{transform_indices = @transform_0, window_bounds = array<i64: 1, 4, 288>}, {pipeline_mode = #tpu.pipeline_mode<synchronous>, transform_indices = @transform_1, window_bounds = array<i64: 4, 9>}, {pipeline_mode = #tpu.pipeline_mode<synchronous>, transform_indices = @transform_2, window_bounds = array<i64: 8, 4>}, {pipeline_mode = #tpu.pipeline_mode<synchronous>, transform_indices = @transform_3, window_bounds = array<i64: 8, 1>}, {pipeline_mode = #tpu.pipeline_mode<synchronous>, transform_indices = @transform_4, window_bounds = array<i64: 8, 9>}, {pipeline_mode = #tpu.pipeline_mode<synchronous>, transform_indices = @transform_5, window_bounds = array<i64: 8, 8>}, {pipeline_mode = #tpu.pipeline_mode<synchronous>, transform_indices = @transform_6, window_bounds = array<i64: 8, 1>}, {pipeline_mode = #tpu.pipeline_mode<synchronous>, transform_indices = @transform_7, window_bounds = array<i64: 8, 9>}, {pipeline_mode = #tpu.pipeline_mode<synchronous>, transform_indices = @transform_8, window_bounds = array<i64: 16, 8>}, {pipeline_mode = #tpu.pipeline_mode<synchronous>, transform_indices = @transform_9, window_bounds = array<i64: 16, 1>}, {pipeline_mode = #tpu.pipeline_mode<synchronous>, transform_indices = @transform_10, window_bounds = array<i64: 18, 10>}, {pipeline_mode = #tpu.pipeline_mode<synchronous>, transform_indices = @transform_11, window_bounds = array<i64: 16, 9>}, {pipeline_mode = #tpu.pipeline_mode<synchronous>, transform_indices = @transform_12, window_bounds = array<i64: 16, 16>}, {pipeline_mode = #tpu.pipeline_mode<synchronous>, transform_indices = @transform_13, window_bounds = array<i64: 16, 1>}, {pipeline_mode = #tpu.pipeline_mode<synchronous>, transform_indices = @transform_14, window_bounds = array<i64: 8, 8>}, {pipeline_mode = #tpu.pipeline_mode<synchronous>, transform_indices = @transform_15, window_bounds = array<i64: 8, 1>}, {pipeline_mode = #tpu.pipeline_mode<synchronous>, transform_indices = @transform_16, window_bounds = array<i64: 32, 16>}, {pipeline_mode = #tpu.pipeline_mode<synchronous>, transform_indices = @transform_17, window_bounds = array<i64: 32, 1>}, {pipeline_mode = #tpu.pipeline_mode<synchronous>, transform_indices = @transform_18, window_bounds = array<i64: 2, 8, 16>}, {transform_indices = @transform_19, window_bounds = array<i64: 1, 16, 256>}, {transform_indices = @transform_20, window_bounds = array<i64: 1, 8, 288>}, {transform_indices = @transform_21, window_bounds = array<i64: 1, 16, 80>}]} {
    %cst = arith.constant 0.000000e+00 : f32
    %0 = vector.broadcast %cst : f32 to vector<4x19xf32>
    %c0 = arith.constant 0 : index
    %c0_0 = arith.constant 0 : index
    %1 = vector.load %arg23[%c0, %c0_0] : memref<4x342xf32, #tpu.memory_space<vmem>>, vector<4x19xf32>
    tpu.vector_store %arg23[%c0, %c0_0], %0 {strides = array<i32>} : memref<4x342xf32, #tpu.memory_space<vmem>>, vector<4x19xf32>,
    %cst_1 = arith.constant 0.000000e+00 : f32
    %2 = vector.broadcast %cst_1 : f32 to vector<4x35xf32>
    %c0_2 = arith.constant 0 : index
    %c307 = arith.constant 307 : index
    %3 = vector.load %arg23[%c0_2, %c307] : memref<4x342xf32, #tpu.memory_space<vmem>>, vector<4x35xf32>
    tpu.vector_store %arg23[%c0_2, %c307], %2 {strides = array<i32>} : memref<4x342xf32, #tpu.memory_space<vmem>>, vector<4x35xf32>,
    %cst_3 = arith.constant 0.000000e+00 : f32
    %4 = vector.broadcast %cst_3 : f32 to vector<8x19xf32>
    %c0_4 = arith.constant 0 : index
    %c0_5 = arith.constant 0 : index
    %5 = vector.load %arg24[%c0_4, %c0_5] : memref<8x342xf32, #tpu.memory_space<vmem>>, vector<8x19xf32>
    tpu.vector_store %arg24[%c0_4, %c0_5], %4 {strides = array<i32>} : memref<8x342xf32, #tpu.memory_space<vmem>>, vector<8x19xf32>,
    %cst_6 = arith.constant 0.000000e+00 : f32
    %6 = vector.broadcast %cst_6 : f32 to vector<8x35xf32>
    %c0_7 = arith.constant 0 : index
    %c307_8 = arith.constant 307 : index
    %7 = vector.load %arg24[%c0_7, %c307_8] : memref<8x342xf32, #tpu.memory_space<vmem>>, vector<8x35xf32>
    tpu.vector_store %arg24[%c0_7, %c307_8], %6 {strides = array<i32>} : memref<8x342xf32, #tpu.memory_space<vmem>>, vector<8x35xf32>,
    %cst_9 = arith.constant 0.000000e+00 : f32
    %8 = vector.broadcast %cst_9 : f32 to vector<16x11xf32>
    %c0_10 = arith.constant 0 : index
    %c0_11 = arith.constant 0 : index
    %9 = vector.load %arg25[%c0_10, %c0_11] : memref<16x110xf32, #tpu.memory_space<vmem>>, vector<16x11xf32>
    tpu.vector_store %arg25[%c0_10, %c0_11], %8 {strides = array<i32>} : memref<16x110xf32, #tpu.memory_space<vmem>>, vector<16x11xf32>,
    %cst_12 = arith.constant 0.000000e+00 : f32
    %10 = vector.broadcast %cst_12 : f32 to vector<16x19xf32>
    %c0_13 = arith.constant 0 : index
    %c91 = arith.constant 91 : index
    %11 = vector.load %arg25[%c0_13, %c91] : memref<16x110xf32, #tpu.memory_space<vmem>>, vector<16x19xf32>
    tpu.vector_store %arg25[%c0_13, %c91], %10 {strides = array<i32>} : memref<16x110xf32, #tpu.memory_space<vmem>>, vector<16x19xf32>,
    %c0_14 = arith.constant 0 : index
    %c0_15 = arith.constant 0 : index
    %c0_16 = arith.constant 0 : index
    %12 = vector.load %arg1[%c0_14, %c0_15, %c0_16] : memref<1x4x288xf32, #tpu.memory_space<vmem>>, vector<1x4x288xf32>
    %13 = vector.shape_cast %12 : vector<1x4x288xf32> to vector<4x288xf32>
    %c0_17 = arith.constant 0 : index
    %c19 = arith.constant 19 : index
    %14 = vector.load %arg23[%c0_17, %c19] : memref<4x342xf32, #tpu.memory_space<vmem>>, vector<4x288xf32>
    tpu.vector_store %arg23[%c0_17, %c19], %13 {strides = array<i32>} : memref<4x342xf32, #tpu.memory_space<vmem>>, vector<4x288xf32>,
    %c0_18 = arith.constant 0 : index
    %c0_19 = arith.constant 0 : index
    %15 = vector.load %arg2[%c0_18, %c0_19] : memref<4x9xf32, #tpu.memory_space<vmem>>, vector<4x9xf32>
    %c0_20 = arith.constant 0 : index
    %c0_21 = arith.constant 0 : index
    %16 = vector.load %arg23[%c0_20, %c0_21] : memref<4x342xf32, #tpu.memory_space<vmem>>, vector<4x288xf32>
    %17 = vector.extract_strided_slice %15 {offsets = [0, 0], sizes = [4, 1], strides = [1, 1]} : vector<4x9xf32> to vector<4x1xf32>
    %18 = vector.broadcast %17 : vector<4x1xf32> to vector<4x288xf32>
    %19 = arith.mulf %16, %18 : vector<4x288xf32>
    %c0_22 = arith.constant 0 : index
    %c1 = arith.constant 1 : index
    %20 = vector.load %arg23[%c0_22, %c1] : memref<4x342xf32, #tpu.memory_space<vmem>>, vector<4x288xf32>
    %21 = vector.extract_strided_slice %15 {offsets = [0, 1], sizes = [4, 1], strides = [1, 1]} : vector<4x9xf32> to vector<4x1xf32>
    %22 = vector.broadcast %21 : vector<4x1xf32> to vector<4x288xf32>
    %23 = arith.mulf %20, %22 : vector<4x288xf32>
    %24 = arith.addf %19, %23 : vector<4x288xf32>
    %c0_23 = arith.constant 0 : index
    %c2 = arith.constant 2 : index
    %25 = vector.load %arg23[%c0_23, %c2] : memref<4x342xf32, #tpu.memory_space<vmem>>, vector<4x288xf32>
    %26 = vector.extract_strided_slice %15 {offsets = [0, 2], sizes = [4, 1], strides = [1, 1]} : vector<4x9xf32> to vector<4x1xf32>
    %27 = vector.broadcast %26 : vector<4x1xf32> to vector<4x288xf32>
    %28 = arith.mulf %25, %27 : vector<4x288xf32>
    %29 = arith.addf %24, %28 : vector<4x288xf32>
    %c0_24 = arith.constant 0 : index
    %c18 = arith.constant 18 : index
    %30 = vector.load %arg23[%c0_24, %c18] : memref<4x342xf32, #tpu.memory_space<vmem>>, vector<4x288xf32>
    %31 = vector.extract_strided_slice %15 {offsets = [0, 3], sizes = [4, 1], strides = [1, 1]} : vector<4x9xf32> to vector<4x1xf32>
    %32 = vector.broadcast %31 : vector<4x1xf32> to vector<4x288xf32>
    %33 = arith.mulf %30, %32 : vector<4x288xf32>
    %34 = arith.addf %29, %33 : vector<4x288xf32>
    %c0_25 = arith.constant 0 : index
    %c19_26 = arith.constant 19 : index
    %35 = vector.load %arg23[%c0_25, %c19_26] : memref<4x342xf32, #tpu.memory_space<vmem>>, vector<4x288xf32>
    %36 = vector.extract_strided_slice %15 {offsets = [0, 4], sizes = [4, 1], strides = [1, 1]} : vector<4x9xf32> to vector<4x1xf32>
    %37 = vector.broadcast %36 : vector<4x1xf32> to vector<4x288xf32>
    %38 = arith.mulf %35, %37 : vector<4x288xf32>
    %39 = arith.addf %34, %38 : vector<4x288xf32>
    %c0_27 = arith.constant 0 : index
    %c20 = arith.constant 20 : index
    %40 = vector.load %arg23[%c0_27, %c20] : memref<4x342xf32, #tpu.memory_space<vmem>>, vector<4x288xf32>
    %41 = vector.extract_strided_slice %15 {offsets = [0, 5], sizes = [4, 1], strides = [1, 1]} : vector<4x9xf32> to vector<4x1xf32>
    %42 = vector.broadcast %41 : vector<4x1xf32> to vector<4x288xf32>
    %43 = arith.mulf %40, %42 : vector<4x288xf32>
    %44 = arith.addf %39, %43 : vector<4x288xf32>
    %c0_28 = arith.constant 0 : index
    %c36 = arith.constant 36 : index
    %45 = vector.load %arg23[%c0_28, %c36] : memref<4x342xf32, #tpu.memory_space<vmem>>, vector<4x288xf32>
    %46 = vector.extract_strided_slice %15 {offsets = [0, 6], sizes = [4, 1], strides = [1, 1]} : vector<4x9xf32> to vector<4x1xf32>
    %47 = vector.broadcast %46 : vector<4x1xf32> to vector<4x288xf32>
    %48 = arith.mulf %45, %47 : vector<4x288xf32>
    %49 = arith.addf %44, %48 : vector<4x288xf32>
    %c0_29 = arith.constant 0 : index
    %c37 = arith.constant 37 : index
    %50 = vector.load %arg23[%c0_29, %c37] : memref<4x342xf32, #tpu.memory_space<vmem>>, vector<4x288xf32>
    %51 = vector.extract_strided_slice %15 {offsets = [0, 7], sizes = [4, 1], strides = [1, 1]} : vector<4x9xf32> to vector<4x1xf32>
    %52 = vector.broadcast %51 : vector<4x1xf32> to vector<4x288xf32>
    %53 = arith.mulf %50, %52 : vector<4x288xf32>
    %54 = arith.addf %49, %53 : vector<4x288xf32>
    %c0_30 = arith.constant 0 : index
    %c38 = arith.constant 38 : index
    %55 = vector.load %arg23[%c0_30, %c38] : memref<4x342xf32, #tpu.memory_space<vmem>>, vector<4x288xf32>
    %56 = vector.extract_strided_slice %15 {offsets = [0, 8], sizes = [4, 1], strides = [1, 1]} : vector<4x9xf32> to vector<4x1xf32>
    %57 = vector.broadcast %56 : vector<4x1xf32> to vector<4x288xf32>
    %58 = arith.mulf %55, %57 : vector<4x288xf32>
    %59 = arith.addf %54, %58 : vector<4x288xf32>
    %c0_31 = arith.constant 0 : index
    %c0_32 = arith.constant 0 : index
    %60 = vector.load %arg3[%c0_31, %c0_32] : memref<8x4xbf16, #tpu.memory_space<vmem>>, vector<8x4xbf16>
    %61 = arith.truncf %59 : vector<4x288xf32> to vector<4x288xbf16>
    %cst_33 = arith.constant dense<0.000000e+00> : vector<8x288xf32>
    %62 = tpu.matmul %60, %61, %cst_33 {dimension_numbers = #tpu.dot_dimension_numbers<[1], [0], [0], [1], [0, 0, 1, 1], [], []>} : vector<8x4xbf16>, vector<4x288xbf16>, vector<8x288xf32> -> vector<8x288xf32>
    %c0_34 = arith.constant 0 : index
    %c0_35 = arith.constant 0 : index
    %63 = vector.load %arg4[%c0_34, %c0_35] : memref<8x1xf32, #tpu.memory_space<vmem>>, vector<8x1xf32>
    %64 = vector.broadcast %63 : vector<8x1xf32> to vector<8x288xf32>
    %65 = arith.addf %62, %64 : vector<8x288xf32>
    %cst_36 = arith.constant 0.000000e+00 : f32
    %66 = vector.broadcast %cst_36 : f32 to vector<8x288xf32>
    %67 = arith.maximumf %65, %66 : vector<8x288xf32>
    %68 = tpu.iota {dimensions = array<i32: 1>} : vector<1x288xi32>
    %c18_i32 = arith.constant 18 : i32
    %c0_i32 = arith.constant 0 : i32
    %69 = arith.cmpi eq, %c18_i32, %c0_i32 : i32
    %c1_i32 = arith.constant 1 : i32
    %70 = arith.select %69, %c1_i32, %c18_i32 : i32
    %71 = vector.broadcast %70 : i32 to vector<1x288xi32>
    %72 = arith.remsi %68, %71 : vector<1x288xi32>
    %c0_i32_37 = arith.constant 0 : i32
    %73 = vector.broadcast %c0_i32_37 : i32 to vector<1x288xi32>
    %74 = arith.cmpi ne, %72, %73 : vector<1x288xi32>
    %c0_i32_38 = arith.constant 0 : i32
    %75 = vector.broadcast %c0_i32_38 : i32 to vector<1x288xi32>
    %76 = arith.cmpi slt, %72, %75 : vector<1x288xi32>
    %c0_i32_39 = arith.constant 0 : i32
    %77 = arith.cmpi slt, %70, %c0_i32_39 : i32
    %78 = vector.broadcast %77 : i1 to vector<1x288xi1>
    %79 = vector.broadcast %78 : vector<1x288xi1> to vector<1x288xi1>
    %80 = arith.xori %76, %79 : vector<1x288xi1>
    %81 = arith.andi %80, %74 : vector<1x288xi1>
    %82 = vector.broadcast %70 : i32 to vector<1x288xi32>
    %83 = arith.addi %72, %82 : vector<1x288xi32>
    %84 = arith.select %81, %83, %72 : vector<1x288xi1>, vector<1x288xi32>
    %c16_i32 = arith.constant 16 : i32
    %85 = vector.broadcast %c16_i32 : i32 to vector<1x288xi32>
    %86 = arith.cmpi slt, %84, %85 : vector<1x288xi32>
    %87 = arith.extui %86 : vector<1x288xi1> to vector<1x288xi32>
    %88 = arith.sitofp %87 : vector<1x288xi32> to vector<1x288xf32>
    %89 = vector.broadcast %88 : vector<1x288xf32> to vector<8x288xf32>
    %90 = arith.mulf %67, %89 : vector<8x288xf32>
    %c0_40 = arith.constant 0 : index
    %c19_41 = arith.constant 19 : index
    %91 = vector.load %arg24[%c0_40, %c19_41] : memref<8x342xf32, #tpu.memory_space<vmem>>, vector<8x288xf32>
    tpu.vector_store %arg24[%c0_40, %c19_41], %90 {strides = array<i32>} : memref<8x342xf32, #tpu.memory_space<vmem>>, vector<8x288xf32>,
    %c0_42 = arith.constant 0 : index
    %c0_43 = arith.constant 0 : index
    %92 = vector.load %arg5[%c0_42, %c0_43] : memref<8x9xf32, #tpu.memory_space<vmem>>, vector<8x9xf32>
    %c0_44 = arith.constant 0 : index
    %c0_45 = arith.constant 0 : index
    %93 = vector.load %arg24[%c0_44, %c0_45] : memref<8x342xf32, #tpu.memory_space<vmem>>, vector<8x288xf32>
    %94 = vector.extract_strided_slice %92 {offsets = [0, 0], sizes = [8, 1], strides = [1, 1]} : vector<8x9xf32> to vector<8x1xf32>
    %95 = vector.broadcast %94 : vector<8x1xf32> to vector<8x288xf32>
    %96 = arith.mulf %93, %95 : vector<8x288xf32>
    %c0_46 = arith.constant 0 : index
    %c1_47 = arith.constant 1 : index
    %97 = vector.load %arg24[%c0_46, %c1_47] : memref<8x342xf32, #tpu.memory_space<vmem>>, vector<8x288xf32>
    %98 = vector.extract_strided_slice %92 {offsets = [0, 1], sizes = [8, 1], strides = [1, 1]} : vector<8x9xf32> to vector<8x1xf32>
    %99 = vector.broadcast %98 : vector<8x1xf32> to vector<8x288xf32>
    %100 = arith.mulf %97, %99 : vector<8x288xf32>
    %101 = arith.addf %96, %100 : vector<8x288xf32>
    %c0_48 = arith.constant 0 : index
    %c2_49 = arith.constant 2 : index
    %102 = vector.load %arg24[%c0_48, %c2_49] : memref<8x342xf32, #tpu.memory_space<vmem>>, vector<8x288xf32>
    %103 = vector.extract_strided_slice %92 {offsets = [0, 2], sizes = [8, 1], strides = [1, 1]} : vector<8x9xf32> to vector<8x1xf32>
    %104 = vector.broadcast %103 : vector<8x1xf32> to vector<8x288xf32>
    %105 = arith.mulf %102, %104 : vector<8x288xf32>
    %106 = arith.addf %101, %105 : vector<8x288xf32>
    %c0_50 = arith.constant 0 : index
    %c18_51 = arith.constant 18 : index
    %107 = vector.load %arg24[%c0_50, %c18_51] : memref<8x342xf32, #tpu.memory_space<vmem>>, vector<8x288xf32>
    %108 = vector.extract_strided_slice %92 {offsets = [0, 3], sizes = [8, 1], strides = [1, 1]} : vector<8x9xf32> to vector<8x1xf32>
    %109 = vector.broadcast %108 : vector<8x1xf32> to vector<8x288xf32>
    %110 = arith.mulf %107, %109 : vector<8x288xf32>
    %111 = arith.addf %106, %110 : vector<8x288xf32>
    %c0_52 = arith.constant 0 : index
    %c19_53 = arith.constant 19 : index
    %112 = vector.load %arg24[%c0_52, %c19_53] : memref<8x342xf32, #tpu.memory_space<vmem>>, vector<8x288xf32>
    %113 = vector.extract_strided_slice %92 {offsets = [0, 4], sizes = [8, 1], strides = [1, 1]} : vector<8x9xf32> to vector<8x1xf32>
    %114 = vector.broadcast %113 : vector<8x1xf32> to vector<8x288xf32>
    %115 = arith.mulf %112, %114 : vector<8x288xf32>
    %116 = arith.addf %111, %115 : vector<8x288xf32>
    %c0_54 = arith.constant 0 : index
    %c20_55 = arith.constant 20 : index
    %117 = vector.load %arg24[%c0_54, %c20_55] : memref<8x342xf32, #tpu.memory_space<vmem>>, vector<8x288xf32>
    %118 = vector.extract_strided_slice %92 {offsets = [0, 5], sizes = [8, 1], strides = [1, 1]} : vector<8x9xf32> to vector<8x1xf32>
    %119 = vector.broadcast %118 : vector<8x1xf32> to vector<8x288xf32>
    %120 = arith.mulf %117, %119 : vector<8x288xf32>
    %121 = arith.addf %116, %120 : vector<8x288xf32>
    %c0_56 = arith.constant 0 : index
    %c36_57 = arith.constant 36 : index
    %122 = vector.load %arg24[%c0_56, %c36_57] : memref<8x342xf32, #tpu.memory_space<vmem>>, vector<8x288xf32>
    %123 = vector.extract_strided_slice %92 {offsets = [0, 6], sizes = [8, 1], strides = [1, 1]} : vector<8x9xf32> to vector<8x1xf32>
    %124 = vector.broadcast %123 : vector<8x1xf32> to vector<8x288xf32>
    %125 = arith.mulf %122, %124 : vector<8x288xf32>
    %126 = arith.addf %121, %125 : vector<8x288xf32>
    %c0_58 = arith.constant 0 : index
    %c37_59 = arith.constant 37 : index
    %127 = vector.load %arg24[%c0_58, %c37_59] : memref<8x342xf32, #tpu.memory_space<vmem>>, vector<8x288xf32>
    %128 = vector.extract_strided_slice %92 {offsets = [0, 7], sizes = [8, 1], strides = [1, 1]} : vector<8x9xf32> to vector<8x1xf32>
    %129 = vector.broadcast %128 : vector<8x1xf32> to vector<8x288xf32>
    %130 = arith.mulf %127, %129 : vector<8x288xf32>
    %131 = arith.addf %126, %130 : vector<8x288xf32>
    %c0_60 = arith.constant 0 : index
    %c38_61 = arith.constant 38 : index
    %132 = vector.load %arg24[%c0_60, %c38_61] : memref<8x342xf32, #tpu.memory_space<vmem>>, vector<8x288xf32>
    %133 = vector.extract_strided_slice %92 {offsets = [0, 8], sizes = [8, 1], strides = [1, 1]} : vector<8x9xf32> to vector<8x1xf32>
    %134 = vector.broadcast %133 : vector<8x1xf32> to vector<8x288xf32>
    %135 = arith.mulf %132, %134 : vector<8x288xf32>
    %136 = arith.addf %131, %135 : vector<8x288xf32>
    %c0_62 = arith.constant 0 : index
    %c0_63 = arith.constant 0 : index
    %137 = vector.load %arg6[%c0_62, %c0_63] : memref<8x8xbf16, #tpu.memory_space<vmem>>, vector<8x8xbf16>
    %138 = arith.truncf %136 : vector<8x288xf32> to vector<8x288xbf16>
    %cst_64 = arith.constant dense<0.000000e+00> : vector<8x288xf32>
    %139 = tpu.matmul %137, %138, %cst_64 {dimension_numbers = #tpu.dot_dimension_numbers<[1], [0], [0], [1], [0, 0, 1, 1], [], []>} : vector<8x8xbf16>, vector<8x288xbf16>, vector<8x288xf32> -> vector<8x288xf32>
    %c0_65 = arith.constant 0 : index
    %c0_66 = arith.constant 0 : index
    %140 = vector.load %arg7[%c0_65, %c0_66] : memref<8x1xf32, #tpu.memory_space<vmem>>, vector<8x1xf32>
    %141 = vector.broadcast %140 : vector<8x1xf32> to vector<8x288xf32>
    %142 = arith.addf %139, %141 : vector<8x288xf32>
    %cst_67 = arith.constant 0.000000e+00 : f32
    %143 = vector.broadcast %cst_67 : f32 to vector<8x288xf32>
    %144 = arith.maximumf %142, %143 : vector<8x288xf32>
    %145 = vector.broadcast %88 : vector<1x288xf32> to vector<8x288xf32>
    %146 = arith.mulf %144, %145 : vector<8x288xf32>
    %c0_68 = arith.constant 0 : index
    %c0_69 = arith.constant 0 : index
    %c0_70 = arith.constant 0 : index
    %147 = vector.load %arg21[%c0_68, %c0_69, %c0_70] : memref<1x8x288xf32, #tpu.memory_space<vmem>>, vector<1x8x288xf32>
    %148 = vector.shape_cast %147 : vector<1x8x288xf32> to vector<8x288xf32>
    %149 = vector.shape_cast %146 : vector<8x288xf32> to vector<1x8x288xf32>
    tpu.vector_store %arg21[%c0_68, %c0_69, %c0_70], %149 {strides = array<i32>} : memref<1x8x288xf32, #tpu.memory_space<vmem>>, vector<1x8x288xf32>,
    %c0_71 = arith.constant 0 : index
    %c19_72 = arith.constant 19 : index
    %150 = vector.load %arg24[%c0_71, %c19_72] : memref<8x342xf32, #tpu.memory_space<vmem>>, vector<8x288xf32>
    tpu.vector_store %arg24[%c0_71, %c19_72], %146 {strides = array<i32>} : memref<8x342xf32, #tpu.memory_space<vmem>>, vector<8x288xf32>,
    %c0_73 = arith.constant 0 : index
    %c0_74 = arith.constant 0 : index
    %151 = vector.load %arg8[%c0_73, %c0_74] : memref<8x9xf32, #tpu.memory_space<vmem>>, vector<8x9xf32>
    %c0_75 = arith.constant 0 : index
    %c0_76 = arith.constant 0 : index
    %152 = vector.load %arg24[%c0_75, %c0_76] : memref<8x342xf32, #tpu.memory_space<vmem>>, vector<8x288xf32>
    %153 = vector.extract_strided_slice %151 {offsets = [0, 0], sizes = [8, 1], strides = [1, 1]} : vector<8x9xf32> to vector<8x1xf32>
    %154 = vector.broadcast %153 : vector<8x1xf32> to vector<8x288xf32>
    %155 = arith.mulf %152, %154 : vector<8x288xf32>
    %c0_77 = arith.constant 0 : index
    %c1_78 = arith.constant 1 : index
    %156 = vector.load %arg24[%c0_77, %c1_78] : memref<8x342xf32, #tpu.memory_space<vmem>>, vector<8x288xf32>
    %157 = vector.extract_strided_slice %151 {offsets = [0, 1], sizes = [8, 1], strides = [1, 1]} : vector<8x9xf32> to vector<8x1xf32>
    %158 = vector.broadcast %157 : vector<8x1xf32> to vector<8x288xf32>
    %159 = arith.mulf %156, %158 : vector<8x288xf32>
    %160 = arith.addf %155, %159 : vector<8x288xf32>
    %c0_79 = arith.constant 0 : index
    %c2_80 = arith.constant 2 : index
    %161 = vector.load %arg24[%c0_79, %c2_80] : memref<8x342xf32, #tpu.memory_space<vmem>>, vector<8x288xf32>
    %162 = vector.extract_strided_slice %151 {offsets = [0, 2], sizes = [8, 1], strides = [1, 1]} : vector<8x9xf32> to vector<8x1xf32>
    %163 = vector.broadcast %162 : vector<8x1xf32> to vector<8x288xf32>
    %164 = arith.mulf %161, %163 : vector<8x288xf32>
    %165 = arith.addf %160, %164 : vector<8x288xf32>
    %c0_81 = arith.constant 0 : index
    %c18_82 = arith.constant 18 : index
    %166 = vector.load %arg24[%c0_81, %c18_82] : memref<8x342xf32, #tpu.memory_space<vmem>>, vector<8x288xf32>
    %167 = vector.extract_strided_slice %151 {offsets = [0, 3], sizes = [8, 1], strides = [1, 1]} : vector<8x9xf32> to vector<8x1xf32>
    %168 = vector.broadcast %167 : vector<8x1xf32> to vector<8x288xf32>
    %169 = arith.mulf %166, %168 : vector<8x288xf32>
    %170 = arith.addf %165, %169 : vector<8x288xf32>
    %c0_83 = arith.constant 0 : index
    %c19_84 = arith.constant 19 : index
    %171 = vector.load %arg24[%c0_83, %c19_84] : memref<8x342xf32, #tpu.memory_space<vmem>>, vector<8x288xf32>
    %172 = vector.extract_strided_slice %151 {offsets = [0, 4], sizes = [8, 1], strides = [1, 1]} : vector<8x9xf32> to vector<8x1xf32>
    %173 = vector.broadcast %172 : vector<8x1xf32> to vector<8x288xf32>
    %174 = arith.mulf %171, %173 : vector<8x288xf32>
    %175 = arith.addf %170, %174 : vector<8x288xf32>
    %c0_85 = arith.constant 0 : index
    %c20_86 = arith.constant 20 : index
    %176 = vector.load %arg24[%c0_85, %c20_86] : memref<8x342xf32, #tpu.memory_space<vmem>>, vector<8x288xf32>
    %177 = vector.extract_strided_slice %151 {offsets = [0, 5], sizes = [8, 1], strides = [1, 1]} : vector<8x9xf32> to vector<8x1xf32>
    %178 = vector.broadcast %177 : vector<8x1xf32> to vector<8x288xf32>
    %179 = arith.mulf %176, %178 : vector<8x288xf32>
    %180 = arith.addf %175, %179 : vector<8x288xf32>
    %c0_87 = arith.constant 0 : index
    %c36_88 = arith.constant 36 : index
    %181 = vector.load %arg24[%c0_87, %c36_88] : memref<8x342xf32, #tpu.memory_space<vmem>>, vector<8x288xf32>
    %182 = vector.extract_strided_slice %151 {offsets = [0, 6], sizes = [8, 1], strides = [1, 1]} : vector<8x9xf32> to vector<8x1xf32>
    %183 = vector.broadcast %182 : vector<8x1xf32> to vector<8x288xf32>
    %184 = arith.mulf %181, %183 : vector<8x288xf32>
    %185 = arith.addf %180, %184 : vector<8x288xf32>
    %c0_89 = arith.constant 0 : index
    %c37_90 = arith.constant 37 : index
    %186 = vector.load %arg24[%c0_89, %c37_90] : memref<8x342xf32, #tpu.memory_space<vmem>>, vector<8x288xf32>
    %187 = vector.extract_strided_slice %151 {offsets = [0, 7], sizes = [8, 1], strides = [1, 1]} : vector<8x9xf32> to vector<8x1xf32>
    %188 = vector.broadcast %187 : vector<8x1xf32> to vector<8x288xf32>
    %189 = arith.mulf %186, %188 : vector<8x288xf32>
    %190 = arith.addf %185, %189 : vector<8x288xf32>
    %c0_91 = arith.constant 0 : index
    %c38_92 = arith.constant 38 : index
    %191 = vector.load %arg24[%c0_91, %c38_92] : memref<8x342xf32, #tpu.memory_space<vmem>>, vector<8x288xf32>
    %192 = vector.extract_strided_slice %151 {offsets = [0, 8], sizes = [8, 1], strides = [1, 1]} : vector<8x9xf32> to vector<8x1xf32>
    %193 = vector.broadcast %192 : vector<8x1xf32> to vector<8x288xf32>
    %194 = arith.mulf %191, %193 : vector<8x288xf32>
    %195 = arith.addf %190, %194 : vector<8x288xf32>
    %c0_93 = arith.constant 0 : index
    %c0_94 = arith.constant 0 : index
    %196 = vector.load %arg11[%c0_93, %c0_94] : memref<18x10xf32, #tpu.memory_space<vmem>>, vector<18x10xf32>
    %197 = vector.extract_strided_slice %195 {offsets = [0, 0], sizes = [8, 18], strides = [1, 1]} : vector<8x288xf32> to vector<8x18xf32>
    %cst_95 = arith.constant dense<0.000000e+00> : vector<8x10xf32>
    %198 = tpu.matmul %197, %196, %cst_95 {dimension_numbers = #tpu.dot_dimension_numbers<[1], [0], [0], [1], [0, 0, 1, 1], [], []>} : vector<8x18xf32>, vector<18x10xf32>, vector<8x10xf32> -> vector<8x10xf32>
    %c0_96 = arith.constant 0 : index
    %c0_97 = arith.constant 0 : index
    %199 = vector.load %arg26[%c0_96, %c0_97] : memref<8x80xf32, #tpu.memory_space<vmem>>, vector<8x10xf32>
    tpu.vector_store %arg26[%c0_96, %c0_97], %198 {strides = array<i32>} : memref<8x80xf32, #tpu.memory_space<vmem>>, vector<8x10xf32>,
    %200 = vector.extract_strided_slice %195 {offsets = [0, 36], sizes = [8, 18], strides = [1, 1]} : vector<8x288xf32> to vector<8x18xf32>
    %cst_98 = arith.constant dense<0.000000e+00> : vector<8x10xf32>
    %201 = tpu.matmul %200, %196, %cst_98 {dimension_numbers = #tpu.dot_dimension_numbers<[1], [0], [0], [1], [0, 0, 1, 1], [], []>} : vector<8x18xf32>, vector<18x10xf32>, vector<8x10xf32> -> vector<8x10xf32>
    %c0_99 = arith.constant 0 : index
    %c10 = arith.constant 10 : index
    %202 = vector.load %arg26[%c0_99, %c10] : memref<8x80xf32, #tpu.memory_space<vmem>>, vector<8x10xf32>
    tpu.vector_store %arg26[%c0_99, %c10], %201 {strides = array<i32>} : memref<8x80xf32, #tpu.memory_space<vmem>>, vector<8x10xf32>,
    %203 = vector.extract_strided_slice %195 {offsets = [0, 72], sizes = [8, 18], strides = [1, 1]} : vector<8x288xf32> to vector<8x18xf32>
    %cst_100 = arith.constant dense<0.000000e+00> : vector<8x10xf32>
    %204 = tpu.matmul %203, %196, %cst_100 {dimension_numbers = #tpu.dot_dimension_numbers<[1], [0], [0], [1], [0, 0, 1, 1], [], []>} : vector<8x18xf32>, vector<18x10xf32>, vector<8x10xf32> -> vector<8x10xf32>
    %c0_101 = arith.constant 0 : index
    %c20_102 = arith.constant 20 : index
    %205 = vector.load %arg26[%c0_101, %c20_102] : memref<8x80xf32, #tpu.memory_space<vmem>>, vector<8x10xf32>
    tpu.vector_store %arg26[%c0_101, %c20_102], %204 {strides = array<i32>} : memref<8x80xf32, #tpu.memory_space<vmem>>, vector<8x10xf32>,
    %206 = vector.extract_strided_slice %195 {offsets = [0, 108], sizes = [8, 18], strides = [1, 1]} : vector<8x288xf32> to vector<8x18xf32>
    %cst_103 = arith.constant dense<0.000000e+00> : vector<8x10xf32>
    %207 = tpu.matmul %206, %196, %cst_103 {dimension_numbers = #tpu.dot_dimension_numbers<[1], [0], [0], [1], [0, 0, 1, 1], [], []>} : vector<8x18xf32>, vector<18x10xf32>, vector<8x10xf32> -> vector<8x10xf32>
    %c0_104 = arith.constant 0 : index
    %c30 = arith.constant 30 : index
    %208 = vector.load %arg26[%c0_104, %c30] : memref<8x80xf32, #tpu.memory_space<vmem>>, vector<8x10xf32>
    tpu.vector_store %arg26[%c0_104, %c30], %207 {strides = array<i32>} : memref<8x80xf32, #tpu.memory_space<vmem>>, vector<8x10xf32>,
    %209 = vector.extract_strided_slice %195 {offsets = [0, 144], sizes = [8, 18], strides = [1, 1]} : vector<8x288xf32> to vector<8x18xf32>
    %cst_105 = arith.constant dense<0.000000e+00> : vector<8x10xf32>
    %210 = tpu.matmul %209, %196, %cst_105 {dimension_numbers = #tpu.dot_dimension_numbers<[1], [0], [0], [1], [0, 0, 1, 1], [], []>} : vector<8x18xf32>, vector<18x10xf32>, vector<8x10xf32> -> vector<8x10xf32>
    %c0_106 = arith.constant 0 : index
    %c40 = arith.constant 40 : index
    %211 = vector.load %arg26[%c0_106, %c40] : memref<8x80xf32, #tpu.memory_space<vmem>>, vector<8x10xf32>
    tpu.vector_store %arg26[%c0_106, %c40], %210 {strides = array<i32>} : memref<8x80xf32, #tpu.memory_space<vmem>>, vector<8x10xf32>,
    %212 = vector.extract_strided_slice %195 {offsets = [0, 180], sizes = [8, 18], strides = [1, 1]} : vector<8x288xf32> to vector<8x18xf32>
    %cst_107 = arith.constant dense<0.000000e+00> : vector<8x10xf32>
    %213 = tpu.matmul %212, %196, %cst_107 {dimension_numbers = #tpu.dot_dimension_numbers<[1], [0], [0], [1], [0, 0, 1, 1], [], []>} : vector<8x18xf32>, vector<18x10xf32>, vector<8x10xf32> -> vector<8x10xf32>
    %c0_108 = arith.constant 0 : index
    %c50 = arith.constant 50 : index
    %214 = vector.load %arg26[%c0_108, %c50] : memref<8x80xf32, #tpu.memory_space<vmem>>, vector<8x10xf32>
    tpu.vector_store %arg26[%c0_108, %c50], %213 {strides = array<i32>} : memref<8x80xf32, #tpu.memory_space<vmem>>, vector<8x10xf32>,
    %215 = vector.extract_strided_slice %195 {offsets = [0, 216], sizes = [8, 18], strides = [1, 1]} : vector<8x288xf32> to vector<8x18xf32>
    %cst_109 = arith.constant dense<0.000000e+00> : vector<8x10xf32>
    %216 = tpu.matmul %215, %196, %cst_109 {dimension_numbers = #tpu.dot_dimension_numbers<[1], [0], [0], [1], [0, 0, 1, 1], [], []>} : vector<8x18xf32>, vector<18x10xf32>, vector<8x10xf32> -> vector<8x10xf32>
    %c0_110 = arith.constant 0 : index
    %c60 = arith.constant 60 : index
    %217 = vector.load %arg26[%c0_110, %c60] : memref<8x80xf32, #tpu.memory_space<vmem>>, vector<8x10xf32>
    tpu.vector_store %arg26[%c0_110, %c60], %216 {strides = array<i32>} : memref<8x80xf32, #tpu.memory_space<vmem>>, vector<8x10xf32>,
    %218 = vector.extract_strided_slice %195 {offsets = [0, 252], sizes = [8, 18], strides = [1, 1]} : vector<8x288xf32> to vector<8x18xf32>
    %cst_111 = arith.constant dense<0.000000e+00> : vector<8x10xf32>
    %219 = tpu.matmul %218, %196, %cst_111 {dimension_numbers = #tpu.dot_dimension_numbers<[1], [0], [0], [1], [0, 0, 1, 1], [], []>} : vector<8x18xf32>, vector<18x10xf32>, vector<8x10xf32> -> vector<8x10xf32>
    %c0_112 = arith.constant 0 : index
    %c70 = arith.constant 70 : index
    %220 = vector.load %arg26[%c0_112, %c70] : memref<8x80xf32, #tpu.memory_space<vmem>>, vector<8x10xf32>
    tpu.vector_store %arg26[%c0_112, %c70], %219 {strides = array<i32>} : memref<8x80xf32, #tpu.memory_space<vmem>>, vector<8x10xf32>,
    %c0_113 = arith.constant 0 : index
    %c0_114 = arith.constant 0 : index
    %221 = vector.load %arg26[%c0_113, %c0_114] : memref<8x80xf32, #tpu.memory_space<vmem>>, vector<8x80xf32>
    %c0_115 = arith.constant 0 : index
    %c0_116 = arith.constant 0 : index
    %222 = vector.load %arg9[%c0_115, %c0_116] : memref<16x8xbf16, #tpu.memory_space<vmem>>, vector<16x8xbf16>
    %223 = arith.truncf %221 : vector<8x80xf32> to vector<8x80xbf16>
    %cst_117 = arith.constant dense<0.000000e+00> : vector<16x80xf32>
    %224 = tpu.matmul %222, %223, %cst_117 {dimension_numbers = #tpu.dot_dimension_numbers<[1], [0], [0], [1], [0, 0, 1, 1], [], []>} : vector<16x8xbf16>, vector<8x80xbf16>, vector<16x80xf32> -> vector<16x80xf32>
    %c0_118 = arith.constant 0 : index
    %c0_119 = arith.constant 0 : index
    %225 = vector.load %arg10[%c0_118, %c0_119] : memref<16x1xf32, #tpu.memory_space<vmem>>, vector<16x1xf32>
    %226 = vector.broadcast %225 : vector<16x1xf32> to vector<16x80xf32>
    %227 = arith.addf %224, %226 : vector<16x80xf32>
    %cst_120 = arith.constant 0.000000e+00 : f32
    %228 = vector.broadcast %cst_120 : f32 to vector<16x80xf32>
    %229 = arith.maximumf %227, %228 : vector<16x80xf32>
    %230 = tpu.iota {dimensions = array<i32: 1>} : vector<1x80xi32>
    %c10_i32 = arith.constant 10 : i32
    %c0_i32_121 = arith.constant 0 : i32
    %231 = arith.cmpi eq, %c10_i32, %c0_i32_121 : i32
    %c1_i32_122 = arith.constant 1 : i32
    %232 = arith.select %231, %c1_i32_122, %c10_i32 : i32
    %233 = vector.broadcast %232 : i32 to vector<1x80xi32>
    %234 = arith.remsi %230, %233 : vector<1x80xi32>
    %c0_i32_123 = arith.constant 0 : i32
    %235 = vector.broadcast %c0_i32_123 : i32 to vector<1x80xi32>
    %236 = arith.cmpi ne, %234, %235 : vector<1x80xi32>
    %c0_i32_124 = arith.constant 0 : i32
    %237 = vector.broadcast %c0_i32_124 : i32 to vector<1x80xi32>
    %238 = arith.cmpi slt, %234, %237 : vector<1x80xi32>
    %c0_i32_125 = arith.constant 0 : i32
    %239 = arith.cmpi slt, %232, %c0_i32_125 : i32
    %240 = vector.broadcast %239 : i1 to vector<1x80xi1>
    %241 = vector.broadcast %240 : vector<1x80xi1> to vector<1x80xi1>
    %242 = arith.xori %238, %241 : vector<1x80xi1>
    %243 = arith.andi %242, %236 : vector<1x80xi1>
    %244 = vector.broadcast %232 : i32 to vector<1x80xi32>
    %245 = arith.addi %234, %244 : vector<1x80xi32>
    %246 = arith.select %243, %245, %234 : vector<1x80xi1>, vector<1x80xi32>
    %c8_i32 = arith.constant 8 : i32
    %247 = vector.broadcast %c8_i32 : i32 to vector<1x80xi32>
    %248 = arith.cmpi slt, %246, %247 : vector<1x80xi32>
    %249 = arith.extui %248 : vector<1x80xi1> to vector<1x80xi32>
    %250 = arith.sitofp %249 : vector<1x80xi32> to vector<1x80xf32>
    %251 = vector.broadcast %250 : vector<1x80xf32> to vector<16x80xf32>
    %252 = arith.mulf %229, %251 : vector<16x80xf32>
    %c0_126 = arith.constant 0 : index
    %c11 = arith.constant 11 : index
    %253 = vector.load %arg25[%c0_126, %c11] : memref<16x110xf32, #tpu.memory_space<vmem>>, vector<16x80xf32>
    tpu.vector_store %arg25[%c0_126, %c11], %252 {strides = array<i32>} : memref<16x110xf32, #tpu.memory_space<vmem>>, vector<16x80xf32>,
    %c0_127 = arith.constant 0 : index
    %c0_128 = arith.constant 0 : index
    %254 = vector.load %arg12[%c0_127, %c0_128] : memref<16x9xf32, #tpu.memory_space<vmem>>, vector<16x9xf32>
    %c0_129 = arith.constant 0 : index
    %c0_130 = arith.constant 0 : index
    %255 = vector.load %arg25[%c0_129, %c0_130] : memref<16x110xf32, #tpu.memory_space<vmem>>, vector<16x80xf32>
    %256 = vector.extract_strided_slice %254 {offsets = [0, 0], sizes = [16, 1], strides = [1, 1]} : vector<16x9xf32> to vector<16x1xf32>
    %257 = vector.broadcast %256 : vector<16x1xf32> to vector<16x80xf32>
    %258 = arith.mulf %255, %257 : vector<16x80xf32>
    %c0_131 = arith.constant 0 : index
    %c1_132 = arith.constant 1 : index
    %259 = vector.load %arg25[%c0_131, %c1_132] : memref<16x110xf32, #tpu.memory_space<vmem>>, vector<16x80xf32>
    %260 = vector.extract_strided_slice %254 {offsets = [0, 1], sizes = [16, 1], strides = [1, 1]} : vector<16x9xf32> to vector<16x1xf32>
    %261 = vector.broadcast %260 : vector<16x1xf32> to vector<16x80xf32>
    %262 = arith.mulf %259, %261 : vector<16x80xf32>
    %263 = arith.addf %258, %262 : vector<16x80xf32>
    %c0_133 = arith.constant 0 : index
    %c2_134 = arith.constant 2 : index
    %264 = vector.load %arg25[%c0_133, %c2_134] : memref<16x110xf32, #tpu.memory_space<vmem>>, vector<16x80xf32>
    %265 = vector.extract_strided_slice %254 {offsets = [0, 2], sizes = [16, 1], strides = [1, 1]} : vector<16x9xf32> to vector<16x1xf32>
    %266 = vector.broadcast %265 : vector<16x1xf32> to vector<16x80xf32>
    %267 = arith.mulf %264, %266 : vector<16x80xf32>
    %268 = arith.addf %263, %267 : vector<16x80xf32>
    %c0_135 = arith.constant 0 : index
    %c10_136 = arith.constant 10 : index
    %269 = vector.load %arg25[%c0_135, %c10_136] : memref<16x110xf32, #tpu.memory_space<vmem>>, vector<16x80xf32>
    %270 = vector.extract_strided_slice %254 {offsets = [0, 3], sizes = [16, 1], strides = [1, 1]} : vector<16x9xf32> to vector<16x1xf32>
    %271 = vector.broadcast %270 : vector<16x1xf32> to vector<16x80xf32>
    %272 = arith.mulf %269, %271 : vector<16x80xf32>
    %273 = arith.addf %268, %272 : vector<16x80xf32>
    %c0_137 = arith.constant 0 : index
    %c11_138 = arith.constant 11 : index
    %274 = vector.load %arg25[%c0_137, %c11_138] : memref<16x110xf32, #tpu.memory_space<vmem>>, vector<16x80xf32>
    %275 = vector.extract_strided_slice %254 {offsets = [0, 4], sizes = [16, 1], strides = [1, 1]} : vector<16x9xf32> to vector<16x1xf32>
    %276 = vector.broadcast %275 : vector<16x1xf32> to vector<16x80xf32>
    %277 = arith.mulf %274, %276 : vector<16x80xf32>
    %278 = arith.addf %273, %277 : vector<16x80xf32>
    %c0_139 = arith.constant 0 : index
    %c12 = arith.constant 12 : index
    %279 = vector.load %arg25[%c0_139, %c12] : memref<16x110xf32, #tpu.memory_space<vmem>>, vector<16x80xf32>
    %280 = vector.extract_strided_slice %254 {offsets = [0, 5], sizes = [16, 1], strides = [1, 1]} : vector<16x9xf32> to vector<16x1xf32>
    %281 = vector.broadcast %280 : vector<16x1xf32> to vector<16x80xf32>
    %282 = arith.mulf %279, %281 : vector<16x80xf32>
    %283 = arith.addf %278, %282 : vector<16x80xf32>
    %c0_140 = arith.constant 0 : index
    %c20_141 = arith.constant 20 : index
    %284 = vector.load %arg25[%c0_140, %c20_141] : memref<16x110xf32, #tpu.memory_space<vmem>>, vector<16x80xf32>
    %285 = vector.extract_strided_slice %254 {offsets = [0, 6], sizes = [16, 1], strides = [1, 1]} : vector<16x9xf32> to vector<16x1xf32>
    %286 = vector.broadcast %285 : vector<16x1xf32> to vector<16x80xf32>
    %287 = arith.mulf %284, %286 : vector<16x80xf32>
    %288 = arith.addf %283, %287 : vector<16x80xf32>
    %c0_142 = arith.constant 0 : index
    %c21 = arith.constant 21 : index
    %289 = vector.load %arg25[%c0_142, %c21] : memref<16x110xf32, #tpu.memory_space<vmem>>, vector<16x80xf32>
    %290 = vector.extract_strided_slice %254 {offsets = [0, 7], sizes = [16, 1], strides = [1, 1]} : vector<16x9xf32> to vector<16x1xf32>
    %291 = vector.broadcast %290 : vector<16x1xf32> to vector<16x80xf32>
    %292 = arith.mulf %289, %291 : vector<16x80xf32>
    %293 = arith.addf %288, %292 : vector<16x80xf32>
    %c0_143 = arith.constant 0 : index
    %c22 = arith.constant 22 : index
    %294 = vector.load %arg25[%c0_143, %c22] : memref<16x110xf32, #tpu.memory_space<vmem>>, vector<16x80xf32>
    %295 = vector.extract_strided_slice %254 {offsets = [0, 8], sizes = [16, 1], strides = [1, 1]} : vector<16x9xf32> to vector<16x1xf32>
    %296 = vector.broadcast %295 : vector<16x1xf32> to vector<16x80xf32>
    %297 = arith.mulf %294, %296 : vector<16x80xf32>
    %298 = arith.addf %293, %297 : vector<16x80xf32>
    %c0_144 = arith.constant 0 : index
    %c0_145 = arith.constant 0 : index
    %299 = vector.load %arg13[%c0_144, %c0_145] : memref<16x16xbf16, #tpu.memory_space<vmem>>, vector<16x16xbf16>
    %300 = arith.truncf %298 : vector<16x80xf32> to vector<16x80xbf16>
    %cst_146 = arith.constant dense<0.000000e+00> : vector<16x80xf32>
    %301 = tpu.matmul %299, %300, %cst_146 {dimension_numbers = #tpu.dot_dimension_numbers<[1], [0], [0], [1], [0, 0, 1, 1], [], []>} : vector<16x16xbf16>, vector<16x80xbf16>, vector<16x80xf32> -> vector<16x80xf32>
    %c0_147 = arith.constant 0 : index
    %c0_148 = arith.constant 0 : index
    %302 = vector.load %arg14[%c0_147, %c0_148] : memref<16x1xf32, #tpu.memory_space<vmem>>, vector<16x1xf32>
    %303 = vector.broadcast %302 : vector<16x1xf32> to vector<16x80xf32>
    %304 = arith.addf %301, %303 : vector<16x80xf32>
    %cst_149 = arith.constant 0.000000e+00 : f32
    %305 = vector.broadcast %cst_149 : f32 to vector<16x80xf32>
    %306 = arith.maximumf %304, %305 : vector<16x80xf32>
    %307 = vector.broadcast %250 : vector<1x80xf32> to vector<16x80xf32>
    %308 = arith.mulf %306, %307 : vector<16x80xf32>
    %c0_150 = arith.constant 0 : index
    %c0_151 = arith.constant 0 : index
    %c0_152 = arith.constant 0 : index
    %309 = vector.load %arg22[%c0_150, %c0_151, %c0_152] : memref<1x16x80xf32, #tpu.memory_space<vmem>>, vector<1x16x80xf32>
    %310 = vector.shape_cast %309 : vector<1x16x80xf32> to vector<16x80xf32>
    %311 = vector.shape_cast %308 : vector<16x80xf32> to vector<1x16x80xf32>
    tpu.vector_store %arg22[%c0_150, %c0_151, %c0_152], %311 {strides = array<i32>} : memref<1x16x80xf32, #tpu.memory_space<vmem>>, vector<1x16x80xf32>,
    %c0_153 = arith.constant 0 : index
    %c0_154 = arith.constant 0 : index
    %c0_155 = arith.constant 0 : index
    %312 = vector.load %arg21[%c0_153, %c0_154, %c0_155] : memref<1x8x288xf32, #tpu.memory_space<vmem>>, vector<1x8x288xf32>
    %313 = vector.shape_cast %312 : vector<1x8x288xf32> to vector<8x288xf32>
    %c0_156 = arith.constant 0 : index
    %c0_157 = arith.constant 0 : index
    %314 = vector.load %arg15[%c0_156, %c0_157] : memref<8x8xbf16, #tpu.memory_space<vmem>>, vector<8x8xbf16>
    %315 = arith.truncf %313 : vector<8x288xf32> to vector<8x288xbf16>
    %cst_158 = arith.constant dense<0.000000e+00> : vector<8x288xf32>
    %316 = tpu.matmul %314, %315, %cst_158 {dimension_numbers = #tpu.dot_dimension_numbers<[1], [0], [0], [1], [0, 0, 1, 1], [], []>} : vector<8x8xbf16>, vector<8x288xbf16>, vector<8x288xf32> -> vector<8x288xf32>
    %c0_159 = arith.constant 0 : index
    %c0_160 = arith.constant 0 : index
    %317 = vector.load %arg16[%c0_159, %c0_160] : memref<8x1xf32, #tpu.memory_space<vmem>>, vector<8x1xf32>
    %318 = vector.broadcast %317 : vector<8x1xf32> to vector<8x288xf32>
    %319 = arith.addf %316, %318 : vector<8x288xf32>
    %cst_161 = arith.constant 0.000000e+00 : f32
    %320 = vector.broadcast %cst_161 : f32 to vector<8x288xf32>
    %321 = arith.maximumf %319, %320 : vector<8x288xf32>
    %322 = vector.extract_strided_slice %321 {offsets = [0, 0], sizes = [8, 16], strides = [1, 1]} : vector<8x288xf32> to vector<8x16xf32>
    %c0_162 = arith.constant 0 : index
    %c0_163 = arith.constant 0 : index
    %c0_164 = arith.constant 0 : index
    %323 = vector.load %arg20[%c0_162, %c0_163, %c0_164] : memref<1x16x256xf32, #tpu.memory_space<vmem>>, vector<1x8x16xf32>
    %324 = vector.shape_cast %323 : vector<1x8x16xf32> to vector<8x16xf32>
    %325 = vector.shape_cast %322 : vector<8x16xf32> to vector<1x8x16xf32>
    tpu.vector_store %arg20[%c0_162, %c0_163, %c0_164], %325 {strides = array<i32>} : memref<1x16x256xf32, #tpu.memory_space<vmem>>, vector<1x8x16xf32>,
    %326 = vector.extract_strided_slice %321 {offsets = [0, 18], sizes = [8, 16], strides = [1, 1]} : vector<8x288xf32> to vector<8x16xf32>
    %c0_165 = arith.constant 0 : index
    %c0_166 = arith.constant 0 : index
    %c16 = arith.constant 16 : index
    %327 = vector.load %arg20[%c0_165, %c0_166, %c16] : memref<1x16x256xf32, #tpu.memory_space<vmem>>, vector<1x8x16xf32>
    %328 = vector.shape_cast %327 : vector<1x8x16xf32> to vector<8x16xf32>
    %329 = vector.shape_cast %326 : vector<8x16xf32> to vector<1x8x16xf32>
    tpu.vector_store %arg20[%c0_165, %c0_166, %c16], %329 {strides = array<i32>} : memref<1x16x256xf32, #tpu.memory_space<vmem>>, vector<1x8x16xf32>,
    %330 = vector.extract_strided_slice %321 {offsets = [0, 36], sizes = [8, 16], strides = [1, 1]} : vector<8x288xf32> to vector<8x16xf32>
    %c0_167 = arith.constant 0 : index
    %c0_168 = arith.constant 0 : index
    %c32 = arith.constant 32 : index
    %331 = vector.load %arg20[%c0_167, %c0_168, %c32] : memref<1x16x256xf32, #tpu.memory_space<vmem>>, vector<1x8x16xf32>
    %332 = vector.shape_cast %331 : vector<1x8x16xf32> to vector<8x16xf32>
    %333 = vector.shape_cast %330 : vector<8x16xf32> to vector<1x8x16xf32>
    tpu.vector_store %arg20[%c0_167, %c0_168, %c32], %333 {strides = array<i32>} : memref<1x16x256xf32, #tpu.memory_space<vmem>>, vector<1x8x16xf32>,
    %334 = vector.extract_strided_slice %321 {offsets = [0, 54], sizes = [8, 16], strides = [1, 1]} : vector<8x288xf32> to vector<8x16xf32>
    %c0_169 = arith.constant 0 : index
    %c0_170 = arith.constant 0 : index
    %c48 = arith.constant 48 : index
    %335 = vector.load %arg20[%c0_169, %c0_170, %c48] : memref<1x16x256xf32, #tpu.memory_space<vmem>>, vector<1x8x16xf32>
    %336 = vector.shape_cast %335 : vector<1x8x16xf32> to vector<8x16xf32>
    %337 = vector.shape_cast %334 : vector<8x16xf32> to vector<1x8x16xf32>
    tpu.vector_store %arg20[%c0_169, %c0_170, %c48], %337 {strides = array<i32>} : memref<1x16x256xf32, #tpu.memory_space<vmem>>, vector<1x8x16xf32>,
    %338 = vector.extract_strided_slice %321 {offsets = [0, 72], sizes = [8, 16], strides = [1, 1]} : vector<8x288xf32> to vector<8x16xf32>
    %c0_171 = arith.constant 0 : index
    %c0_172 = arith.constant 0 : index
    %c64 = arith.constant 64 : index
    %339 = vector.load %arg20[%c0_171, %c0_172, %c64] : memref<1x16x256xf32, #tpu.memory_space<vmem>>, vector<1x8x16xf32>
    %340 = vector.shape_cast %339 : vector<1x8x16xf32> to vector<8x16xf32>
    %341 = vector.shape_cast %338 : vector<8x16xf32> to vector<1x8x16xf32>
    tpu.vector_store %arg20[%c0_171, %c0_172, %c64], %341 {strides = array<i32>} : memref<1x16x256xf32, #tpu.memory_space<vmem>>, vector<1x8x16xf32>,
    %342 = vector.extract_strided_slice %321 {offsets = [0, 90], sizes = [8, 16], strides = [1, 1]} : vector<8x288xf32> to vector<8x16xf32>
    %c0_173 = arith.constant 0 : index
    %c0_174 = arith.constant 0 : index
    %c80 = arith.constant 80 : index
    %343 = vector.load %arg20[%c0_173, %c0_174, %c80] : memref<1x16x256xf32, #tpu.memory_space<vmem>>, vector<1x8x16xf32>
    %344 = vector.shape_cast %343 : vector<1x8x16xf32> to vector<8x16xf32>
    %345 = vector.shape_cast %342 : vector<8x16xf32> to vector<1x8x16xf32>
    tpu.vector_store %arg20[%c0_173, %c0_174, %c80], %345 {strides = array<i32>} : memref<1x16x256xf32, #tpu.memory_space<vmem>>, vector<1x8x16xf32>,
    %346 = vector.extract_strided_slice %321 {offsets = [0, 108], sizes = [8, 16], strides = [1, 1]} : vector<8x288xf32> to vector<8x16xf32>
    %c0_175 = arith.constant 0 : index
    %c0_176 = arith.constant 0 : index
    %c96 = arith.constant 96 : index
    %347 = vector.load %arg20[%c0_175, %c0_176, %c96] : memref<1x16x256xf32, #tpu.memory_space<vmem>>, vector<1x8x16xf32>
    %348 = vector.shape_cast %347 : vector<1x8x16xf32> to vector<8x16xf32>
    %349 = vector.shape_cast %346 : vector<8x16xf32> to vector<1x8x16xf32>
    tpu.vector_store %arg20[%c0_175, %c0_176, %c96], %349 {strides = array<i32>} : memref<1x16x256xf32, #tpu.memory_space<vmem>>, vector<1x8x16xf32>,
    %350 = vector.extract_strided_slice %321 {offsets = [0, 126], sizes = [8, 16], strides = [1, 1]} : vector<8x288xf32> to vector<8x16xf32>
    %c0_177 = arith.constant 0 : index
    %c0_178 = arith.constant 0 : index
    %c112 = arith.constant 112 : index
    %351 = vector.load %arg20[%c0_177, %c0_178, %c112] : memref<1x16x256xf32, #tpu.memory_space<vmem>>, vector<1x8x16xf32>
    %352 = vector.shape_cast %351 : vector<1x8x16xf32> to vector<8x16xf32>
    %353 = vector.shape_cast %350 : vector<8x16xf32> to vector<1x8x16xf32>
    tpu.vector_store %arg20[%c0_177, %c0_178, %c112], %353 {strides = array<i32>} : memref<1x16x256xf32, #tpu.memory_space<vmem>>, vector<1x8x16xf32>,
    %354 = vector.extract_strided_slice %321 {offsets = [0, 144], sizes = [8, 16], strides = [1, 1]} : vector<8x288xf32> to vector<8x16xf32>
    %c0_179 = arith.constant 0 : index
    %c0_180 = arith.constant 0 : index
    %c128 = arith.constant 128 : index
    %355 = vector.load %arg20[%c0_179, %c0_180, %c128] : memref<1x16x256xf32, #tpu.memory_space<vmem>>, vector<1x8x16xf32>
    %356 = vector.shape_cast %355 : vector<1x8x16xf32> to vector<8x16xf32>
    %357 = vector.shape_cast %354 : vector<8x16xf32> to vector<1x8x16xf32>
    tpu.vector_store %arg20[%c0_179, %c0_180, %c128], %357 {strides = array<i32>} : memref<1x16x256xf32, #tpu.memory_space<vmem>>, vector<1x8x16xf32>,
    %358 = vector.extract_strided_slice %321 {offsets = [0, 162], sizes = [8, 16], strides = [1, 1]} : vector<8x288xf32> to vector<8x16xf32>
    %c0_181 = arith.constant 0 : index
    %c0_182 = arith.constant 0 : index
    %c144 = arith.constant 144 : index
    %359 = vector.load %arg20[%c0_181, %c0_182, %c144] : memref<1x16x256xf32, #tpu.memory_space<vmem>>, vector<1x8x16xf32>
    %360 = vector.shape_cast %359 : vector<1x8x16xf32> to vector<8x16xf32>
    %361 = vector.shape_cast %358 : vector<8x16xf32> to vector<1x8x16xf32>
    tpu.vector_store %arg20[%c0_181, %c0_182, %c144], %361 {strides = array<i32>} : memref<1x16x256xf32, #tpu.memory_space<vmem>>, vector<1x8x16xf32>,
    %362 = vector.extract_strided_slice %321 {offsets = [0, 180], sizes = [8, 16], strides = [1, 1]} : vector<8x288xf32> to vector<8x16xf32>
    %c0_183 = arith.constant 0 : index
    %c0_184 = arith.constant 0 : index
    %c160 = arith.constant 160 : index
    %363 = vector.load %arg20[%c0_183, %c0_184, %c160] : memref<1x16x256xf32, #tpu.memory_space<vmem>>, vector<1x8x16xf32>
    %364 = vector.shape_cast %363 : vector<1x8x16xf32> to vector<8x16xf32>
    %365 = vector.shape_cast %362 : vector<8x16xf32> to vector<1x8x16xf32>
    tpu.vector_store %arg20[%c0_183, %c0_184, %c160], %365 {strides = array<i32>} : memref<1x16x256xf32, #tpu.memory_space<vmem>>, vector<1x8x16xf32>,
    %366 = vector.extract_strided_slice %321 {offsets = [0, 198], sizes = [8, 16], strides = [1, 1]} : vector<8x288xf32> to vector<8x16xf32>
    %c0_185 = arith.constant 0 : index
    %c0_186 = arith.constant 0 : index
    %c176 = arith.constant 176 : index
    %367 = vector.load %arg20[%c0_185, %c0_186, %c176] : memref<1x16x256xf32, #tpu.memory_space<vmem>>, vector<1x8x16xf32>
    %368 = vector.shape_cast %367 : vector<1x8x16xf32> to vector<8x16xf32>
    %369 = vector.shape_cast %366 : vector<8x16xf32> to vector<1x8x16xf32>
    tpu.vector_store %arg20[%c0_185, %c0_186, %c176], %369 {strides = array<i32>} : memref<1x16x256xf32, #tpu.memory_space<vmem>>, vector<1x8x16xf32>,
    %370 = vector.extract_strided_slice %321 {offsets = [0, 216], sizes = [8, 16], strides = [1, 1]} : vector<8x288xf32> to vector<8x16xf32>
    %c0_187 = arith.constant 0 : index
    %c0_188 = arith.constant 0 : index
    %c192 = arith.constant 192 : index
    %371 = vector.load %arg20[%c0_187, %c0_188, %c192] : memref<1x16x256xf32, #tpu.memory_space<vmem>>, vector<1x8x16xf32>
    %372 = vector.shape_cast %371 : vector<1x8x16xf32> to vector<8x16xf32>
    %373 = vector.shape_cast %370 : vector<8x16xf32> to vector<1x8x16xf32>
    tpu.vector_store %arg20[%c0_187, %c0_188, %c192], %373 {strides = array<i32>} : memref<1x16x256xf32, #tpu.memory_space<vmem>>, vector<1x8x16xf32>,
    %374 = vector.extract_strided_slice %321 {offsets = [0, 234], sizes = [8, 16], strides = [1, 1]} : vector<8x288xf32> to vector<8x16xf32>
    %c0_189 = arith.constant 0 : index
    %c0_190 = arith.constant 0 : index
    %c208 = arith.constant 208 : index
    %375 = vector.load %arg20[%c0_189, %c0_190, %c208] : memref<1x16x256xf32, #tpu.memory_space<vmem>>, vector<1x8x16xf32>
    %376 = vector.shape_cast %375 : vector<1x8x16xf32> to vector<8x16xf32>
    %377 = vector.shape_cast %374 : vector<8x16xf32> to vector<1x8x16xf32>
    tpu.vector_store %arg20[%c0_189, %c0_190, %c208], %377 {strides = array<i32>} : memref<1x16x256xf32, #tpu.memory_space<vmem>>, vector<1x8x16xf32>,
    %378 = vector.extract_strided_slice %321 {offsets = [0, 252], sizes = [8, 16], strides = [1, 1]} : vector<8x288xf32> to vector<8x16xf32>
    %c0_191 = arith.constant 0 : index
    %c0_192 = arith.constant 0 : index
    %c224 = arith.constant 224 : index
    %379 = vector.load %arg20[%c0_191, %c0_192, %c224] : memref<1x16x256xf32, #tpu.memory_space<vmem>>, vector<1x8x16xf32>
    %380 = vector.shape_cast %379 : vector<1x8x16xf32> to vector<8x16xf32>
    %381 = vector.shape_cast %378 : vector<8x16xf32> to vector<1x8x16xf32>
    tpu.vector_store %arg20[%c0_191, %c0_192, %c224], %381 {strides = array<i32>} : memref<1x16x256xf32, #tpu.memory_space<vmem>>, vector<1x8x16xf32>,
    %382 = vector.extract_strided_slice %321 {offsets = [0, 270], sizes = [8, 16], strides = [1, 1]} : vector<8x288xf32> to vector<8x16xf32>
    %c0_193 = arith.constant 0 : index
    %c0_194 = arith.constant 0 : index
    %c240 = arith.constant 240 : index
    %383 = vector.load %arg20[%c0_193, %c0_194, %c240] : memref<1x16x256xf32, #tpu.memory_space<vmem>>, vector<1x8x16xf32>
    %384 = vector.shape_cast %383 : vector<1x8x16xf32> to vector<8x16xf32>
    %385 = vector.shape_cast %382 : vector<8x16xf32> to vector<1x8x16xf32>
    tpu.vector_store %arg20[%c0_193, %c0_194, %c240], %385 {strides = array<i32>} : memref<1x16x256xf32, #tpu.memory_space<vmem>>, vector<1x8x16xf32>,
    %c0_195 = arith.constant 0 : index
    %c0_196 = arith.constant 0 : index
    %c0_197 = arith.constant 0 : index
    %386 = vector.load %arg22[%c0_195, %c0_196, %c0_197] : memref<1x16x80xf32, #tpu.memory_space<vmem>>, vector<1x16x80xf32>
    %387 = vector.shape_cast %386 : vector<1x16x80xf32> to vector<16x80xf32>
    %c0_198 = arith.constant 0 : index
    %c0_199 = arith.constant 0 : index
    %388 = vector.load %arg17[%c0_198, %c0_199] : memref<32x16xbf16, #tpu.memory_space<vmem>>, vector<32x16xbf16>
    %389 = arith.truncf %387 : vector<16x80xf32> to vector<16x80xbf16>
    %cst_200 = arith.constant dense<0.000000e+00> : vector<32x80xf32>
    %390 = tpu.matmul %388, %389, %cst_200 {dimension_numbers = #tpu.dot_dimension_numbers<[1], [0], [0], [1], [0, 0, 1, 1], [], []>} : vector<32x16xbf16>, vector<16x80xbf16>, vector<32x80xf32> -> vector<32x80xf32>
    %c0_201 = arith.constant 0 : index
    %c0_202 = arith.constant 0 : index
    %391 = vector.load %arg18[%c0_201, %c0_202] : memref<32x1xf32, #tpu.memory_space<vmem>>, vector<32x1xf32>
    %392 = vector.broadcast %391 : vector<32x1xf32> to vector<32x80xf32>
    %393 = arith.addf %390, %392 : vector<32x80xf32>
    %cst_203 = arith.constant 0.000000e+00 : f32
    %394 = vector.broadcast %cst_203 : f32 to vector<32x80xf32>
    %395 = arith.maximumf %393, %394 : vector<32x80xf32>
    %396 = vector.extract_strided_slice %395 {offsets = [0, 0], sizes = [8, 8], strides = [1, 1]} : vector<32x80xf32> to vector<8x8xf32>
    %c0_204 = arith.constant 0 : index
    %c0_205 = arith.constant 0 : index
    %c0_206 = arith.constant 0 : index
    %397 = vector.load %arg19[%c0_204, %c0_205, %c0_206] : memref<2x8x16xf32, #tpu.memory_space<vmem>>, vector<1x8x16xf32>
    %398 = vector.shape_cast %397 : vector<1x8x16xf32> to vector<8x16xf32>
    %cst_207 = arith.constant dense<0.000000e+00> : vector<8x16xf32>
    %399 = tpu.matmul %396, %398, %cst_207 {dimension_numbers = #tpu.dot_dimension_numbers<[1], [0], [0], [1], [0, 0, 1, 1], [], []>} : vector<8x8xf32>, vector<8x16xf32>, vector<8x16xf32> -> vector<8x16xf32>
    %400 = vector.extract_strided_slice %395 {offsets = [8, 0], sizes = [8, 8], strides = [1, 1]} : vector<32x80xf32> to vector<8x8xf32>
    %c1_208 = arith.constant 1 : index
    %c0_209 = arith.constant 0 : index
    %c0_210 = arith.constant 0 : index
    %401 = vector.load %arg19[%c1_208, %c0_209, %c0_210] : memref<2x8x16xf32, #tpu.memory_space<vmem>>, vector<1x8x16xf32>
    %402 = vector.shape_cast %401 : vector<1x8x16xf32> to vector<8x16xf32>
    %cst_211 = arith.constant dense<0.000000e+00> : vector<8x16xf32>
    %403 = tpu.matmul %400, %402, %cst_211 {dimension_numbers = #tpu.dot_dimension_numbers<[1], [0], [0], [1], [0, 0, 1, 1], [], []>} : vector<8x8xf32>, vector<8x16xf32>, vector<8x16xf32> -> vector<8x16xf32>
    %404 = arith.addf %399, %403 : vector<8x16xf32>
    %c0_212 = arith.constant 0 : index
    %c8 = arith.constant 8 : index
    %c0_213 = arith.constant 0 : index
    %405 = vector.load %arg20[%c0_212, %c8, %c0_213] : memref<1x16x256xf32, #tpu.memory_space<vmem>>, vector<1x8x16xf32>
    %406 = vector.shape_cast %405 : vector<1x8x16xf32> to vector<8x16xf32>
    %407 = vector.shape_cast %404 : vector<8x16xf32> to vector<1x8x16xf32>
    tpu.vector_store %arg20[%c0_212, %c8, %c0_213], %407 {strides = array<i32>} : memref<1x16x256xf32, #tpu.memory_space<vmem>>, vector<1x8x16xf32>,
    %408 = vector.extract_strided_slice %395 {offsets = [0, 10], sizes = [8, 8], strides = [1, 1]} : vector<32x80xf32> to vector<8x8xf32>
    %c0_214 = arith.constant 0 : index
    %c0_215 = arith.constant 0 : index
    %c0_216 = arith.constant 0 : index
    %409 = vector.load %arg19[%c0_214, %c0_215, %c0_216] : memref<2x8x16xf32, #tpu.memory_space<vmem>>, vector<1x8x16xf32>
    %410 = vector.shape_cast %409 : vector<1x8x16xf32> to vector<8x16xf32>
    %cst_217 = arith.constant dense<0.000000e+00> : vector<8x16xf32>
    %411 = tpu.matmul %408, %410, %cst_217 {dimension_numbers = #tpu.dot_dimension_numbers<[1], [0], [0], [1], [0, 0, 1, 1], [], []>} : vector<8x8xf32>, vector<8x16xf32>, vector<8x16xf32> -> vector<8x16xf32>
    %412 = vector.extract_strided_slice %395 {offsets = [8, 10], sizes = [8, 8], strides = [1, 1]} : vector<32x80xf32> to vector<8x8xf32>
    %c1_218 = arith.constant 1 : index
    %c0_219 = arith.constant 0 : index
    %c0_220 = arith.constant 0 : index
    %413 = vector.load %arg19[%c1_218, %c0_219, %c0_220] : memref<2x8x16xf32, #tpu.memory_space<vmem>>, vector<1x8x16xf32>
    %414 = vector.shape_cast %413 : vector<1x8x16xf32> to vector<8x16xf32>
    %cst_221 = arith.constant dense<0.000000e+00> : vector<8x16xf32>
    %415 = tpu.matmul %412, %414, %cst_221 {dimension_numbers = #tpu.dot_dimension_numbers<[1], [0], [0], [1], [0, 0, 1, 1], [], []>} : vector<8x8xf32>, vector<8x16xf32>, vector<8x16xf32> -> vector<8x16xf32>
    %416 = arith.addf %411, %415 : vector<8x16xf32>
    %c0_222 = arith.constant 0 : index
    %c8_223 = arith.constant 8 : index
    %c32_224 = arith.constant 32 : index
    %417 = vector.load %arg20[%c0_222, %c8_223, %c32_224] : memref<1x16x256xf32, #tpu.memory_space<vmem>>, vector<1x8x16xf32>
    %418 = vector.shape_cast %417 : vector<1x8x16xf32> to vector<8x16xf32>
    %419 = vector.shape_cast %416 : vector<8x16xf32> to vector<1x8x16xf32>
    tpu.vector_store %arg20[%c0_222, %c8_223, %c32_224], %419 {strides = array<i32>} : memref<1x16x256xf32, #tpu.memory_space<vmem>>, vector<1x8x16xf32>,
    %420 = vector.extract_strided_slice %395 {offsets = [0, 20], sizes = [8, 8], strides = [1, 1]} : vector<32x80xf32> to vector<8x8xf32>
    %c0_225 = arith.constant 0 : index
    %c0_226 = arith.constant 0 : index
    %c0_227 = arith.constant 0 : index
    %421 = vector.load %arg19[%c0_225, %c0_226, %c0_227] : memref<2x8x16xf32, #tpu.memory_space<vmem>>, vector<1x8x16xf32>
    %422 = vector.shape_cast %421 : vector<1x8x16xf32> to vector<8x16xf32>
    %cst_228 = arith.constant dense<0.000000e+00> : vector<8x16xf32>
    %423 = tpu.matmul %420, %422, %cst_228 {dimension_numbers = #tpu.dot_dimension_numbers<[1], [0], [0], [1], [0, 0, 1, 1], [], []>} : vector<8x8xf32>, vector<8x16xf32>, vector<8x16xf32> -> vector<8x16xf32>
    %424 = vector.extract_strided_slice %395 {offsets = [8, 20], sizes = [8, 8], strides = [1, 1]} : vector<32x80xf32> to vector<8x8xf32>
    %c1_229 = arith.constant 1 : index
    %c0_230 = arith.constant 0 : index
    %c0_231 = arith.constant 0 : index
    %425 = vector.load %arg19[%c1_229, %c0_230, %c0_231] : memref<2x8x16xf32, #tpu.memory_space<vmem>>, vector<1x8x16xf32>
    %426 = vector.shape_cast %425 : vector<1x8x16xf32> to vector<8x16xf32>
    %cst_232 = arith.constant dense<0.000000e+00> : vector<8x16xf32>
    %427 = tpu.matmul %424, %426, %cst_232 {dimension_numbers = #tpu.dot_dimension_numbers<[1], [0], [0], [1], [0, 0, 1, 1], [], []>} : vector<8x8xf32>, vector<8x16xf32>, vector<8x16xf32> -> vector<8x16xf32>
    %428 = arith.addf %423, %427 : vector<8x16xf32>
    %c0_233 = arith.constant 0 : index
    %c8_234 = arith.constant 8 : index
    %c64_235 = arith.constant 64 : index
    %429 = vector.load %arg20[%c0_233, %c8_234, %c64_235] : memref<1x16x256xf32, #tpu.memory_space<vmem>>, vector<1x8x16xf32>
    %430 = vector.shape_cast %429 : vector<1x8x16xf32> to vector<8x16xf32>
    %431 = vector.shape_cast %428 : vector<8x16xf32> to vector<1x8x16xf32>
    tpu.vector_store %arg20[%c0_233, %c8_234, %c64_235], %431 {strides = array<i32>} : memref<1x16x256xf32, #tpu.memory_space<vmem>>, vector<1x8x16xf32>,
    %432 = vector.extract_strided_slice %395 {offsets = [0, 30], sizes = [8, 8], strides = [1, 1]} : vector<32x80xf32> to vector<8x8xf32>
    %c0_236 = arith.constant 0 : index
    %c0_237 = arith.constant 0 : index
    %c0_238 = arith.constant 0 : index
    %433 = vector.load %arg19[%c0_236, %c0_237, %c0_238] : memref<2x8x16xf32, #tpu.memory_space<vmem>>, vector<1x8x16xf32>
    %434 = vector.shape_cast %433 : vector<1x8x16xf32> to vector<8x16xf32>
    %cst_239 = arith.constant dense<0.000000e+00> : vector<8x16xf32>
    %435 = tpu.matmul %432, %434, %cst_239 {dimension_numbers = #tpu.dot_dimension_numbers<[1], [0], [0], [1], [0, 0, 1, 1], [], []>} : vector<8x8xf32>, vector<8x16xf32>, vector<8x16xf32> -> vector<8x16xf32>
    %436 = vector.extract_strided_slice %395 {offsets = [8, 30], sizes = [8, 8], strides = [1, 1]} : vector<32x80xf32> to vector<8x8xf32>
    %c1_240 = arith.constant 1 : index
    %c0_241 = arith.constant 0 : index
    %c0_242 = arith.constant 0 : index
    %437 = vector.load %arg19[%c1_240, %c0_241, %c0_242] : memref<2x8x16xf32, #tpu.memory_space<vmem>>, vector<1x8x16xf32>
    %438 = vector.shape_cast %437 : vector<1x8x16xf32> to vector<8x16xf32>
    %cst_243 = arith.constant dense<0.000000e+00> : vector<8x16xf32>
    %439 = tpu.matmul %436, %438, %cst_243 {dimension_numbers = #tpu.dot_dimension_numbers<[1], [0], [0], [1], [0, 0, 1, 1], [], []>} : vector<8x8xf32>, vector<8x16xf32>, vector<8x16xf32> -> vector<8x16xf32>
    %440 = arith.addf %435, %439 : vector<8x16xf32>
    %c0_244 = arith.constant 0 : index
    %c8_245 = arith.constant 8 : index
    %c96_246 = arith.constant 96 : index
    %441 = vector.load %arg20[%c0_244, %c8_245, %c96_246] : memref<1x16x256xf32, #tpu.memory_space<vmem>>, vector<1x8x16xf32>
    %442 = vector.shape_cast %441 : vector<1x8x16xf32> to vector<8x16xf32>
    %443 = vector.shape_cast %440 : vector<8x16xf32> to vector<1x8x16xf32>
    tpu.vector_store %arg20[%c0_244, %c8_245, %c96_246], %443 {strides = array<i32>} : memref<1x16x256xf32, #tpu.memory_space<vmem>>, vector<1x8x16xf32>,
    %444 = vector.extract_strided_slice %395 {offsets = [0, 40], sizes = [8, 8], strides = [1, 1]} : vector<32x80xf32> to vector<8x8xf32>
    %c0_247 = arith.constant 0 : index
    %c0_248 = arith.constant 0 : index
    %c0_249 = arith.constant 0 : index
    %445 = vector.load %arg19[%c0_247, %c0_248, %c0_249] : memref<2x8x16xf32, #tpu.memory_space<vmem>>, vector<1x8x16xf32>
    %446 = vector.shape_cast %445 : vector<1x8x16xf32> to vector<8x16xf32>
    %cst_250 = arith.constant dense<0.000000e+00> : vector<8x16xf32>
    %447 = tpu.matmul %444, %446, %cst_250 {dimension_numbers = #tpu.dot_dimension_numbers<[1], [0], [0], [1], [0, 0, 1, 1], [], []>} : vector<8x8xf32>, vector<8x16xf32>, vector<8x16xf32> -> vector<8x16xf32>
    %448 = vector.extract_strided_slice %395 {offsets = [8, 40], sizes = [8, 8], strides = [1, 1]} : vector<32x80xf32> to vector<8x8xf32>
    %c1_251 = arith.constant 1 : index
    %c0_252 = arith.constant 0 : index
    %c0_253 = arith.constant 0 : index
    %449 = vector.load %arg19[%c1_251, %c0_252, %c0_253] : memref<2x8x16xf32, #tpu.memory_space<vmem>>, vector<1x8x16xf32>
    %450 = vector.shape_cast %449 : vector<1x8x16xf32> to vector<8x16xf32>
    %cst_254 = arith.constant dense<0.000000e+00> : vector<8x16xf32>
    %451 = tpu.matmul %448, %450, %cst_254 {dimension_numbers = #tpu.dot_dimension_numbers<[1], [0], [0], [1], [0, 0, 1, 1], [], []>} : vector<8x8xf32>, vector<8x16xf32>, vector<8x16xf32> -> vector<8x16xf32>
    %452 = arith.addf %447, %451 : vector<8x16xf32>
    %c0_255 = arith.constant 0 : index
    %c8_256 = arith.constant 8 : index
    %c128_257 = arith.constant 128 : index
    %453 = vector.load %arg20[%c0_255, %c8_256, %c128_257] : memref<1x16x256xf32, #tpu.memory_space<vmem>>, vector<1x8x16xf32>
    %454 = vector.shape_cast %453 : vector<1x8x16xf32> to vector<8x16xf32>
    %455 = vector.shape_cast %452 : vector<8x16xf32> to vector<1x8x16xf32>
    tpu.vector_store %arg20[%c0_255, %c8_256, %c128_257], %455 {strides = array<i32>} : memref<1x16x256xf32, #tpu.memory_space<vmem>>, vector<1x8x16xf32>,
    %456 = vector.extract_strided_slice %395 {offsets = [0, 50], sizes = [8, 8], strides = [1, 1]} : vector<32x80xf32> to vector<8x8xf32>
    %c0_258 = arith.constant 0 : index
    %c0_259 = arith.constant 0 : index
    %c0_260 = arith.constant 0 : index
    %457 = vector.load %arg19[%c0_258, %c0_259, %c0_260] : memref<2x8x16xf32, #tpu.memory_space<vmem>>, vector<1x8x16xf32>
    %458 = vector.shape_cast %457 : vector<1x8x16xf32> to vector<8x16xf32>
    %cst_261 = arith.constant dense<0.000000e+00> : vector<8x16xf32>
    %459 = tpu.matmul %456, %458, %cst_261 {dimension_numbers = #tpu.dot_dimension_numbers<[1], [0], [0], [1], [0, 0, 1, 1], [], []>} : vector<8x8xf32>, vector<8x16xf32>, vector<8x16xf32> -> vector<8x16xf32>
    %460 = vector.extract_strided_slice %395 {offsets = [8, 50], sizes = [8, 8], strides = [1, 1]} : vector<32x80xf32> to vector<8x8xf32>
    %c1_262 = arith.constant 1 : index
    %c0_263 = arith.constant 0 : index
    %c0_264 = arith.constant 0 : index
    %461 = vector.load %arg19[%c1_262, %c0_263, %c0_264] : memref<2x8x16xf32, #tpu.memory_space<vmem>>, vector<1x8x16xf32>
    %462 = vector.shape_cast %461 : vector<1x8x16xf32> to vector<8x16xf32>
    %cst_265 = arith.constant dense<0.000000e+00> : vector<8x16xf32>
    %463 = tpu.matmul %460, %462, %cst_265 {dimension_numbers = #tpu.dot_dimension_numbers<[1], [0], [0], [1], [0, 0, 1, 1], [], []>} : vector<8x8xf32>, vector<8x16xf32>, vector<8x16xf32> -> vector<8x16xf32>
    %464 = arith.addf %459, %463 : vector<8x16xf32>
    %c0_266 = arith.constant 0 : index
    %c8_267 = arith.constant 8 : index
    %c160_268 = arith.constant 160 : index
    %465 = vector.load %arg20[%c0_266, %c8_267, %c160_268] : memref<1x16x256xf32, #tpu.memory_space<vmem>>, vector<1x8x16xf32>
    %466 = vector.shape_cast %465 : vector<1x8x16xf32> to vector<8x16xf32>
    %467 = vector.shape_cast %464 : vector<8x16xf32> to vector<1x8x16xf32>
    tpu.vector_store %arg20[%c0_266, %c8_267, %c160_268], %467 {strides = array<i32>} : memref<1x16x256xf32, #tpu.memory_space<vmem>>, vector<1x8x16xf32>,
    %468 = vector.extract_strided_slice %395 {offsets = [0, 60], sizes = [8, 8], strides = [1, 1]} : vector<32x80xf32> to vector<8x8xf32>
    %c0_269 = arith.constant 0 : index
    %c0_270 = arith.constant 0 : index
    %c0_271 = arith.constant 0 : index
    %469 = vector.load %arg19[%c0_269, %c0_270, %c0_271] : memref<2x8x16xf32, #tpu.memory_space<vmem>>, vector<1x8x16xf32>
    %470 = vector.shape_cast %469 : vector<1x8x16xf32> to vector<8x16xf32>
    %cst_272 = arith.constant dense<0.000000e+00> : vector<8x16xf32>
    %471 = tpu.matmul %468, %470, %cst_272 {dimension_numbers = #tpu.dot_dimension_numbers<[1], [0], [0], [1], [0, 0, 1, 1], [], []>} : vector<8x8xf32>, vector<8x16xf32>, vector<8x16xf32> -> vector<8x16xf32>
    %472 = vector.extract_strided_slice %395 {offsets = [8, 60], sizes = [8, 8], strides = [1, 1]} : vector<32x80xf32> to vector<8x8xf32>
    %c1_273 = arith.constant 1 : index
    %c0_274 = arith.constant 0 : index
    %c0_275 = arith.constant 0 : index
    %473 = vector.load %arg19[%c1_273, %c0_274, %c0_275] : memref<2x8x16xf32, #tpu.memory_space<vmem>>, vector<1x8x16xf32>
    %474 = vector.shape_cast %473 : vector<1x8x16xf32> to vector<8x16xf32>
    %cst_276 = arith.constant dense<0.000000e+00> : vector<8x16xf32>
    %475 = tpu.matmul %472, %474, %cst_276 {dimension_numbers = #tpu.dot_dimension_numbers<[1], [0], [0], [1], [0, 0, 1, 1], [], []>} : vector<8x8xf32>, vector<8x16xf32>, vector<8x16xf32> -> vector<8x16xf32>
    %476 = arith.addf %471, %475 : vector<8x16xf32>
    %c0_277 = arith.constant 0 : index
    %c8_278 = arith.constant 8 : index
    %c192_279 = arith.constant 192 : index
    %477 = vector.load %arg20[%c0_277, %c8_278, %c192_279] : memref<1x16x256xf32, #tpu.memory_space<vmem>>, vector<1x8x16xf32>
    %478 = vector.shape_cast %477 : vector<1x8x16xf32> to vector<8x16xf32>
    %479 = vector.shape_cast %476 : vector<8x16xf32> to vector<1x8x16xf32>
    tpu.vector_store %arg20[%c0_277, %c8_278, %c192_279], %479 {strides = array<i32>} : memref<1x16x256xf32, #tpu.memory_space<vmem>>, vector<1x8x16xf32>,
    %480 = vector.extract_strided_slice %395 {offsets = [0, 70], sizes = [8, 8], strides = [1, 1]} : vector<32x80xf32> to vector<8x8xf32>
    %c0_280 = arith.constant 0 : index
    %c0_281 = arith.constant 0 : index
    %c0_282 = arith.constant 0 : index
    %481 = vector.load %arg19[%c0_280, %c0_281, %c0_282] : memref<2x8x16xf32, #tpu.memory_space<vmem>>, vector<1x8x16xf32>
    %482 = vector.shape_cast %481 : vector<1x8x16xf32> to vector<8x16xf32>
    %cst_283 = arith.constant dense<0.000000e+00> : vector<8x16xf32>
    %483 = tpu.matmul %480, %482, %cst_283 {dimension_numbers = #tpu.dot_dimension_numbers<[1], [0], [0], [1], [0, 0, 1, 1], [], []>} : vector<8x8xf32>, vector<8x16xf32>, vector<8x16xf32> -> vector<8x16xf32>
    %484 = vector.extract_strided_slice %395 {offsets = [8, 70], sizes = [8, 8], strides = [1, 1]} : vector<32x80xf32> to vector<8x8xf32>
    %c1_284 = arith.constant 1 : index
    %c0_285 = arith.constant 0 : index
    %c0_286 = arith.constant 0 : index
    %485 = vector.load %arg19[%c1_284, %c0_285, %c0_286] : memref<2x8x16xf32, #tpu.memory_space<vmem>>, vector<1x8x16xf32>
    %486 = vector.shape_cast %485 : vector<1x8x16xf32> to vector<8x16xf32>
    %cst_287 = arith.constant dense<0.000000e+00> : vector<8x16xf32>
    %487 = tpu.matmul %484, %486, %cst_287 {dimension_numbers = #tpu.dot_dimension_numbers<[1], [0], [0], [1], [0, 0, 1, 1], [], []>} : vector<8x8xf32>, vector<8x16xf32>, vector<8x16xf32> -> vector<8x16xf32>
    %488 = arith.addf %483, %487 : vector<8x16xf32>
    %c0_288 = arith.constant 0 : index
    %c8_289 = arith.constant 8 : index
    %c224_290 = arith.constant 224 : index
    %489 = vector.load %arg20[%c0_288, %c8_289, %c224_290] : memref<1x16x256xf32, #tpu.memory_space<vmem>>, vector<1x8x16xf32>
    %490 = vector.shape_cast %489 : vector<1x8x16xf32> to vector<8x16xf32>
    %491 = vector.shape_cast %488 : vector<8x16xf32> to vector<1x8x16xf32>
    tpu.vector_store %arg20[%c0_288, %c8_289, %c224_290], %491 {strides = array<i32>} : memref<1x16x256xf32, #tpu.memory_space<vmem>>, vector<1x8x16xf32>,
    %492 = vector.extract_strided_slice %395 {offsets = [16, 0], sizes = [8, 8], strides = [1, 1]} : vector<32x80xf32> to vector<8x8xf32>
    %c0_291 = arith.constant 0 : index
    %c0_292 = arith.constant 0 : index
    %c0_293 = arith.constant 0 : index
    %493 = vector.load %arg19[%c0_291, %c0_292, %c0_293] : memref<2x8x16xf32, #tpu.memory_space<vmem>>, vector<1x8x16xf32>
    %494 = vector.shape_cast %493 : vector<1x8x16xf32> to vector<8x16xf32>
    %cst_294 = arith.constant dense<0.000000e+00> : vector<8x16xf32>
    %495 = tpu.matmul %492, %494, %cst_294 {dimension_numbers = #tpu.dot_dimension_numbers<[1], [0], [0], [1], [0, 0, 1, 1], [], []>} : vector<8x8xf32>, vector<8x16xf32>, vector<8x16xf32> -> vector<8x16xf32>
    %496 = vector.extract_strided_slice %395 {offsets = [24, 0], sizes = [8, 8], strides = [1, 1]} : vector<32x80xf32> to vector<8x8xf32>
    %c1_295 = arith.constant 1 : index
    %c0_296 = arith.constant 0 : index
    %c0_297 = arith.constant 0 : index
    %497 = vector.load %arg19[%c1_295, %c0_296, %c0_297] : memref<2x8x16xf32, #tpu.memory_space<vmem>>, vector<1x8x16xf32>
    %498 = vector.shape_cast %497 : vector<1x8x16xf32> to vector<8x16xf32>
    %cst_298 = arith.constant dense<0.000000e+00> : vector<8x16xf32>
    %499 = tpu.matmul %496, %498, %cst_298 {dimension_numbers = #tpu.dot_dimension_numbers<[1], [0], [0], [1], [0, 0, 1, 1], [], []>} : vector<8x8xf32>, vector<8x16xf32>, vector<8x16xf32> -> vector<8x16xf32>
    %500 = arith.addf %495, %499 : vector<8x16xf32>
    %c0_299 = arith.constant 0 : index
    %c8_300 = arith.constant 8 : index
    %c16_301 = arith.constant 16 : index
    %501 = vector.load %arg20[%c0_299, %c8_300, %c16_301] : memref<1x16x256xf32, #tpu.memory_space<vmem>>, vector<1x8x16xf32>
    %502 = vector.shape_cast %501 : vector<1x8x16xf32> to vector<8x16xf32>
    %503 = vector.shape_cast %500 : vector<8x16xf32> to vector<1x8x16xf32>
    tpu.vector_store %arg20[%c0_299, %c8_300, %c16_301], %503 {strides = array<i32>} : memref<1x16x256xf32, #tpu.memory_space<vmem>>, vector<1x8x16xf32>,
    %504 = vector.extract_strided_slice %395 {offsets = [16, 10], sizes = [8, 8], strides = [1, 1]} : vector<32x80xf32> to vector<8x8xf32>
    %c0_302 = arith.constant 0 : index
    %c0_303 = arith.constant 0 : index
    %c0_304 = arith.constant 0 : index
    %505 = vector.load %arg19[%c0_302, %c0_303, %c0_304] : memref<2x8x16xf32, #tpu.memory_space<vmem>>, vector<1x8x16xf32>
    %506 = vector.shape_cast %505 : vector<1x8x16xf32> to vector<8x16xf32>
    %cst_305 = arith.constant dense<0.000000e+00> : vector<8x16xf32>
    %507 = tpu.matmul %504, %506, %cst_305 {dimension_numbers = #tpu.dot_dimension_numbers<[1], [0], [0], [1], [0, 0, 1, 1], [], []>} : vector<8x8xf32>, vector<8x16xf32>, vector<8x16xf32> -> vector<8x16xf32>
    %508 = vector.extract_strided_slice %395 {offsets = [24, 10], sizes = [8, 8], strides = [1, 1]} : vector<32x80xf32> to vector<8x8xf32>
    %c1_306 = arith.constant 1 : index
    %c0_307 = arith.constant 0 : index
    %c0_308 = arith.constant 0 : index
    %509 = vector.load %arg19[%c1_306, %c0_307, %c0_308] : memref<2x8x16xf32, #tpu.memory_space<vmem>>, vector<1x8x16xf32>
    %510 = vector.shape_cast %509 : vector<1x8x16xf32> to vector<8x16xf32>
    %cst_309 = arith.constant dense<0.000000e+00> : vector<8x16xf32>
    %511 = tpu.matmul %508, %510, %cst_309 {dimension_numbers = #tpu.dot_dimension_numbers<[1], [0], [0], [1], [0, 0, 1, 1], [], []>} : vector<8x8xf32>, vector<8x16xf32>, vector<8x16xf32> -> vector<8x16xf32>
    %512 = arith.addf %507, %511 : vector<8x16xf32>
    %c0_310 = arith.constant 0 : index
    %c8_311 = arith.constant 8 : index
    %c48_312 = arith.constant 48 : index
    %513 = vector.load %arg20[%c0_310, %c8_311, %c48_312] : memref<1x16x256xf32, #tpu.memory_space<vmem>>, vector<1x8x16xf32>
    %514 = vector.shape_cast %513 : vector<1x8x16xf32> to vector<8x16xf32>
    %515 = vector.shape_cast %512 : vector<8x16xf32> to vector<1x8x16xf32>
    tpu.vector_store %arg20[%c0_310, %c8_311, %c48_312], %515 {strides = array<i32>} : memref<1x16x256xf32, #tpu.memory_space<vmem>>, vector<1x8x16xf32>,
    %516 = vector.extract_strided_slice %395 {offsets = [16, 20], sizes = [8, 8], strides = [1, 1]} : vector<32x80xf32> to vector<8x8xf32>
    %c0_313 = arith.constant 0 : index
    %c0_314 = arith.constant 0 : index
    %c0_315 = arith.constant 0 : index
    %517 = vector.load %arg19[%c0_313, %c0_314, %c0_315] : memref<2x8x16xf32, #tpu.memory_space<vmem>>, vector<1x8x16xf32>
    %518 = vector.shape_cast %517 : vector<1x8x16xf32> to vector<8x16xf32>
    %cst_316 = arith.constant dense<0.000000e+00> : vector<8x16xf32>
    %519 = tpu.matmul %516, %518, %cst_316 {dimension_numbers = #tpu.dot_dimension_numbers<[1], [0], [0], [1], [0, 0, 1, 1], [], []>} : vector<8x8xf32>, vector<8x16xf32>, vector<8x16xf32> -> vector<8x16xf32>
    %520 = vector.extract_strided_slice %395 {offsets = [24, 20], sizes = [8, 8], strides = [1, 1]} : vector<32x80xf32> to vector<8x8xf32>
    %c1_317 = arith.constant 1 : index
    %c0_318 = arith.constant 0 : index
    %c0_319 = arith.constant 0 : index
    %521 = vector.load %arg19[%c1_317, %c0_318, %c0_319] : memref<2x8x16xf32, #tpu.memory_space<vmem>>, vector<1x8x16xf32>
    %522 = vector.shape_cast %521 : vector<1x8x16xf32> to vector<8x16xf32>
    %cst_320 = arith.constant dense<0.000000e+00> : vector<8x16xf32>
    %523 = tpu.matmul %520, %522, %cst_320 {dimension_numbers = #tpu.dot_dimension_numbers<[1], [0], [0], [1], [0, 0, 1, 1], [], []>} : vector<8x8xf32>, vector<8x16xf32>, vector<8x16xf32> -> vector<8x16xf32>
    %524 = arith.addf %519, %523 : vector<8x16xf32>
    %c0_321 = arith.constant 0 : index
    %c8_322 = arith.constant 8 : index
    %c80_323 = arith.constant 80 : index
    %525 = vector.load %arg20[%c0_321, %c8_322, %c80_323] : memref<1x16x256xf32, #tpu.memory_space<vmem>>, vector<1x8x16xf32>
    %526 = vector.shape_cast %525 : vector<1x8x16xf32> to vector<8x16xf32>
    %527 = vector.shape_cast %524 : vector<8x16xf32> to vector<1x8x16xf32>
    tpu.vector_store %arg20[%c0_321, %c8_322, %c80_323], %527 {strides = array<i32>} : memref<1x16x256xf32, #tpu.memory_space<vmem>>, vector<1x8x16xf32>,
    %528 = vector.extract_strided_slice %395 {offsets = [16, 30], sizes = [8, 8], strides = [1, 1]} : vector<32x80xf32> to vector<8x8xf32>
    %c0_324 = arith.constant 0 : index
    %c0_325 = arith.constant 0 : index
    %c0_326 = arith.constant 0 : index
    %529 = vector.load %arg19[%c0_324, %c0_325, %c0_326] : memref<2x8x16xf32, #tpu.memory_space<vmem>>, vector<1x8x16xf32>
    %530 = vector.shape_cast %529 : vector<1x8x16xf32> to vector<8x16xf32>
    %cst_327 = arith.constant dense<0.000000e+00> : vector<8x16xf32>
    %531 = tpu.matmul %528, %530, %cst_327 {dimension_numbers = #tpu.dot_dimension_numbers<[1], [0], [0], [1], [0, 0, 1, 1], [], []>} : vector<8x8xf32>, vector<8x16xf32>, vector<8x16xf32> -> vector<8x16xf32>
    %532 = vector.extract_strided_slice %395 {offsets = [24, 30], sizes = [8, 8], strides = [1, 1]} : vector<32x80xf32> to vector<8x8xf32>
    %c1_328 = arith.constant 1 : index
    %c0_329 = arith.constant 0 : index
    %c0_330 = arith.constant 0 : index
    %533 = vector.load %arg19[%c1_328, %c0_329, %c0_330] : memref<2x8x16xf32, #tpu.memory_space<vmem>>, vector<1x8x16xf32>
    %534 = vector.shape_cast %533 : vector<1x8x16xf32> to vector<8x16xf32>
    %cst_331 = arith.constant dense<0.000000e+00> : vector<8x16xf32>
    %535 = tpu.matmul %532, %534, %cst_331 {dimension_numbers = #tpu.dot_dimension_numbers<[1], [0], [0], [1], [0, 0, 1, 1], [], []>} : vector<8x8xf32>, vector<8x16xf32>, vector<8x16xf32> -> vector<8x16xf32>
    %536 = arith.addf %531, %535 : vector<8x16xf32>
    %c0_332 = arith.constant 0 : index
    %c8_333 = arith.constant 8 : index
    %c112_334 = arith.constant 112 : index
    %537 = vector.load %arg20[%c0_332, %c8_333, %c112_334] : memref<1x16x256xf32, #tpu.memory_space<vmem>>, vector<1x8x16xf32>
    %538 = vector.shape_cast %537 : vector<1x8x16xf32> to vector<8x16xf32>
    %539 = vector.shape_cast %536 : vector<8x16xf32> to vector<1x8x16xf32>
    tpu.vector_store %arg20[%c0_332, %c8_333, %c112_334], %539 {strides = array<i32>} : memref<1x16x256xf32, #tpu.memory_space<vmem>>, vector<1x8x16xf32>,
    %540 = vector.extract_strided_slice %395 {offsets = [16, 40], sizes = [8, 8], strides = [1, 1]} : vector<32x80xf32> to vector<8x8xf32>
    %c0_335 = arith.constant 0 : index
    %c0_336 = arith.constant 0 : index
    %c0_337 = arith.constant 0 : index
    %541 = vector.load %arg19[%c0_335, %c0_336, %c0_337] : memref<2x8x16xf32, #tpu.memory_space<vmem>>, vector<1x8x16xf32>
    %542 = vector.shape_cast %541 : vector<1x8x16xf32> to vector<8x16xf32>
    %cst_338 = arith.constant dense<0.000000e+00> : vector<8x16xf32>
    %543 = tpu.matmul %540, %542, %cst_338 {dimension_numbers = #tpu.dot_dimension_numbers<[1], [0], [0], [1], [0, 0, 1, 1], [], []>} : vector<8x8xf32>, vector<8x16xf32>, vector<8x16xf32> -> vector<8x16xf32>
    %544 = vector.extract_strided_slice %395 {offsets = [24, 40], sizes = [8, 8], strides = [1, 1]} : vector<32x80xf32> to vector<8x8xf32>
    %c1_339 = arith.constant 1 : index
    %c0_340 = arith.constant 0 : index
    %c0_341 = arith.constant 0 : index
    %545 = vector.load %arg19[%c1_339, %c0_340, %c0_341] : memref<2x8x16xf32, #tpu.memory_space<vmem>>, vector<1x8x16xf32>
    %546 = vector.shape_cast %545 : vector<1x8x16xf32> to vector<8x16xf32>
    %cst_342 = arith.constant dense<0.000000e+00> : vector<8x16xf32>
    %547 = tpu.matmul %544, %546, %cst_342 {dimension_numbers = #tpu.dot_dimension_numbers<[1], [0], [0], [1], [0, 0, 1, 1], [], []>} : vector<8x8xf32>, vector<8x16xf32>, vector<8x16xf32> -> vector<8x16xf32>
    %548 = arith.addf %543, %547 : vector<8x16xf32>
    %c0_343 = arith.constant 0 : index
    %c8_344 = arith.constant 8 : index
    %c144_345 = arith.constant 144 : index
    %549 = vector.load %arg20[%c0_343, %c8_344, %c144_345] : memref<1x16x256xf32, #tpu.memory_space<vmem>>, vector<1x8x16xf32>
    %550 = vector.shape_cast %549 : vector<1x8x16xf32> to vector<8x16xf32>
    %551 = vector.shape_cast %548 : vector<8x16xf32> to vector<1x8x16xf32>
    tpu.vector_store %arg20[%c0_343, %c8_344, %c144_345], %551 {strides = array<i32>} : memref<1x16x256xf32, #tpu.memory_space<vmem>>, vector<1x8x16xf32>,
    %552 = vector.extract_strided_slice %395 {offsets = [16, 50], sizes = [8, 8], strides = [1, 1]} : vector<32x80xf32> to vector<8x8xf32>
    %c0_346 = arith.constant 0 : index
    %c0_347 = arith.constant 0 : index
    %c0_348 = arith.constant 0 : index
    %553 = vector.load %arg19[%c0_346, %c0_347, %c0_348] : memref<2x8x16xf32, #tpu.memory_space<vmem>>, vector<1x8x16xf32>
    %554 = vector.shape_cast %553 : vector<1x8x16xf32> to vector<8x16xf32>
    %cst_349 = arith.constant dense<0.000000e+00> : vector<8x16xf32>
    %555 = tpu.matmul %552, %554, %cst_349 {dimension_numbers = #tpu.dot_dimension_numbers<[1], [0], [0], [1], [0, 0, 1, 1], [], []>} : vector<8x8xf32>, vector<8x16xf32>, vector<8x16xf32> -> vector<8x16xf32>
    %556 = vector.extract_strided_slice %395 {offsets = [24, 50], sizes = [8, 8], strides = [1, 1]} : vector<32x80xf32> to vector<8x8xf32>
    %c1_350 = arith.constant 1 : index
    %c0_351 = arith.constant 0 : index
    %c0_352 = arith.constant 0 : index
    %557 = vector.load %arg19[%c1_350, %c0_351, %c0_352] : memref<2x8x16xf32, #tpu.memory_space<vmem>>, vector<1x8x16xf32>
    %558 = vector.shape_cast %557 : vector<1x8x16xf32> to vector<8x16xf32>
    %cst_353 = arith.constant dense<0.000000e+00> : vector<8x16xf32>
    %559 = tpu.matmul %556, %558, %cst_353 {dimension_numbers = #tpu.dot_dimension_numbers<[1], [0], [0], [1], [0, 0, 1, 1], [], []>} : vector<8x8xf32>, vector<8x16xf32>, vector<8x16xf32> -> vector<8x16xf32>
    %560 = arith.addf %555, %559 : vector<8x16xf32>
    %c0_354 = arith.constant 0 : index
    %c8_355 = arith.constant 8 : index
    %c176_356 = arith.constant 176 : index
    %561 = vector.load %arg20[%c0_354, %c8_355, %c176_356] : memref<1x16x256xf32, #tpu.memory_space<vmem>>, vector<1x8x16xf32>
    %562 = vector.shape_cast %561 : vector<1x8x16xf32> to vector<8x16xf32>
    %563 = vector.shape_cast %560 : vector<8x16xf32> to vector<1x8x16xf32>
    tpu.vector_store %arg20[%c0_354, %c8_355, %c176_356], %563 {strides = array<i32>} : memref<1x16x256xf32, #tpu.memory_space<vmem>>, vector<1x8x16xf32>,
    %564 = vector.extract_strided_slice %395 {offsets = [16, 60], sizes = [8, 8], strides = [1, 1]} : vector<32x80xf32> to vector<8x8xf32>
    %c0_357 = arith.constant 0 : index
    %c0_358 = arith.constant 0 : index
    %c0_359 = arith.constant 0 : index
    %565 = vector.load %arg19[%c0_357, %c0_358, %c0_359] : memref<2x8x16xf32, #tpu.memory_space<vmem>>, vector<1x8x16xf32>
    %566 = vector.shape_cast %565 : vector<1x8x16xf32> to vector<8x16xf32>
    %cst_360 = arith.constant dense<0.000000e+00> : vector<8x16xf32>
    %567 = tpu.matmul %564, %566, %cst_360 {dimension_numbers = #tpu.dot_dimension_numbers<[1], [0], [0], [1], [0, 0, 1, 1], [], []>} : vector<8x8xf32>, vector<8x16xf32>, vector<8x16xf32> -> vector<8x16xf32>
    %568 = vector.extract_strided_slice %395 {offsets = [24, 60], sizes = [8, 8], strides = [1, 1]} : vector<32x80xf32> to vector<8x8xf32>
    %c1_361 = arith.constant 1 : index
    %c0_362 = arith.constant 0 : index
    %c0_363 = arith.constant 0 : index
    %569 = vector.load %arg19[%c1_361, %c0_362, %c0_363] : memref<2x8x16xf32, #tpu.memory_space<vmem>>, vector<1x8x16xf32>
    %570 = vector.shape_cast %569 : vector<1x8x16xf32> to vector<8x16xf32>
    %cst_364 = arith.constant dense<0.000000e+00> : vector<8x16xf32>
    %571 = tpu.matmul %568, %570, %cst_364 {dimension_numbers = #tpu.dot_dimension_numbers<[1], [0], [0], [1], [0, 0, 1, 1], [], []>} : vector<8x8xf32>, vector<8x16xf32>, vector<8x16xf32> -> vector<8x16xf32>
    %572 = arith.addf %567, %571 : vector<8x16xf32>
    %c0_365 = arith.constant 0 : index
    %c8_366 = arith.constant 8 : index
    %c208_367 = arith.constant 208 : index
    %573 = vector.load %arg20[%c0_365, %c8_366, %c208_367] : memref<1x16x256xf32, #tpu.memory_space<vmem>>, vector<1x8x16xf32>
    %574 = vector.shape_cast %573 : vector<1x8x16xf32> to vector<8x16xf32>
    %575 = vector.shape_cast %572 : vector<8x16xf32> to vector<1x8x16xf32>
    tpu.vector_store %arg20[%c0_365, %c8_366, %c208_367], %575 {strides = array<i32>} : memref<1x16x256xf32, #tpu.memory_space<vmem>>, vector<1x8x16xf32>,
    %576 = vector.extract_strided_slice %395 {offsets = [16, 70], sizes = [8, 8], strides = [1, 1]} : vector<32x80xf32> to vector<8x8xf32>
    %c0_368 = arith.constant 0 : index
    %c0_369 = arith.constant 0 : index
    %c0_370 = arith.constant 0 : index
    %577 = vector.load %arg19[%c0_368, %c0_369, %c0_370] : memref<2x8x16xf32, #tpu.memory_space<vmem>>, vector<1x8x16xf32>
    %578 = vector.shape_cast %577 : vector<1x8x16xf32> to vector<8x16xf32>
    %cst_371 = arith.constant dense<0.000000e+00> : vector<8x16xf32>
    %579 = tpu.matmul %576, %578, %cst_371 {dimension_numbers = #tpu.dot_dimension_numbers<[1], [0], [0], [1], [0, 0, 1, 1], [], []>} : vector<8x8xf32>, vector<8x16xf32>, vector<8x16xf32> -> vector<8x16xf32>
    %580 = vector.extract_strided_slice %395 {offsets = [24, 70], sizes = [8, 8], strides = [1, 1]} : vector<32x80xf32> to vector<8x8xf32>
    %c1_372 = arith.constant 1 : index
    %c0_373 = arith.constant 0 : index
    %c0_374 = arith.constant 0 : index
    %581 = vector.load %arg19[%c1_372, %c0_373, %c0_374] : memref<2x8x16xf32, #tpu.memory_space<vmem>>, vector<1x8x16xf32>
    %582 = vector.shape_cast %581 : vector<1x8x16xf32> to vector<8x16xf32>
    %cst_375 = arith.constant dense<0.000000e+00> : vector<8x16xf32>
    %583 = tpu.matmul %580, %582, %cst_375 {dimension_numbers = #tpu.dot_dimension_numbers<[1], [0], [0], [1], [0, 0, 1, 1], [], []>} : vector<8x8xf32>, vector<8x16xf32>, vector<8x16xf32> -> vector<8x16xf32>
    %584 = arith.addf %579, %583 : vector<8x16xf32>
    %c0_376 = arith.constant 0 : index
    %c8_377 = arith.constant 8 : index
    %c240_378 = arith.constant 240 : index
    %585 = vector.load %arg20[%c0_376, %c8_377, %c240_378] : memref<1x16x256xf32, #tpu.memory_space<vmem>>, vector<1x8x16xf32>
    %586 = vector.shape_cast %585 : vector<1x8x16xf32> to vector<8x16xf32>
    %587 = vector.shape_cast %584 : vector<8x16xf32> to vector<1x8x16xf32>
    tpu.vector_store %arg20[%c0_376, %c8_377, %c240_378], %587 {strides = array<i32>} : memref<1x16x256xf32, #tpu.memory_space<vmem>>, vector<1x8x16xf32>,
    return
  }
  func.func @transform_0(%arg0: i32) -> (i32, i32, i32) {
    %c0_i32 = arith.constant 0 : i32
    %c0_i32_0 = arith.constant 0 : i32
    %c0_i32_1 = arith.constant 0 : i32
    return %arg0, %c0_i32, %c0_i32_0 : i32, i32, i32
  }
  func.func @transform_1(%arg0: i32) -> (i32, i32) {
    %c0_i32 = arith.constant 0 : i32
    %c0_i32_0 = arith.constant 0 : i32
    %c0_i32_1 = arith.constant 0 : i32
    return %c0_i32, %c0_i32_0 : i32, i32
  }
  func.func @transform_2(%arg0: i32) -> (i32, i32) {
    %c0_i32 = arith.constant 0 : i32
    %c0_i32_0 = arith.constant 0 : i32
    %c0_i32_1 = arith.constant 0 : i32
    return %c0_i32, %c0_i32_0 : i32, i32
  }
  func.func @transform_3(%arg0: i32) -> (i32, i32) {
    %c0_i32 = arith.constant 0 : i32
    %c0_i32_0 = arith.constant 0 : i32
    %c0_i32_1 = arith.constant 0 : i32
    return %c0_i32, %c0_i32_0 : i32, i32
  }
  func.func @transform_4(%arg0: i32) -> (i32, i32) {
    %c0_i32 = arith.constant 0 : i32
    %c0_i32_0 = arith.constant 0 : i32
    %c0_i32_1 = arith.constant 0 : i32
    return %c0_i32, %c0_i32_0 : i32, i32
  }
  func.func @transform_5(%arg0: i32) -> (i32, i32) {
    %c0_i32 = arith.constant 0 : i32
    %c0_i32_0 = arith.constant 0 : i32
    %c0_i32_1 = arith.constant 0 : i32
    return %c0_i32, %c0_i32_0 : i32, i32
  }
  func.func @transform_6(%arg0: i32) -> (i32, i32) {
    %c0_i32 = arith.constant 0 : i32
    %c0_i32_0 = arith.constant 0 : i32
    %c0_i32_1 = arith.constant 0 : i32
    return %c0_i32, %c0_i32_0 : i32, i32
  }
  func.func @transform_7(%arg0: i32) -> (i32, i32) {
    %c0_i32 = arith.constant 0 : i32
    %c0_i32_0 = arith.constant 0 : i32
    %c0_i32_1 = arith.constant 0 : i32
    return %c0_i32, %c0_i32_0 : i32, i32
  }
  func.func @transform_8(%arg0: i32) -> (i32, i32) {
    %c0_i32 = arith.constant 0 : i32
    %c0_i32_0 = arith.constant 0 : i32
    %c0_i32_1 = arith.constant 0 : i32
    return %c0_i32, %c0_i32_0 : i32, i32
  }
  func.func @transform_9(%arg0: i32) -> (i32, i32) {
    %c0_i32 = arith.constant 0 : i32
    %c0_i32_0 = arith.constant 0 : i32
    %c0_i32_1 = arith.constant 0 : i32
    return %c0_i32, %c0_i32_0 : i32, i32
  }
  func.func @transform_10(%arg0: i32) -> (i32, i32) {
    %c0_i32 = arith.constant 0 : i32
    %c0_i32_0 = arith.constant 0 : i32
    %c0_i32_1 = arith.constant 0 : i32
    return %c0_i32, %c0_i32_0 : i32, i32
  }
  func.func @transform_11(%arg0: i32) -> (i32, i32) {
    %c0_i32 = arith.constant 0 : i32
    %c0_i32_0 = arith.constant 0 : i32
    %c0_i32_1 = arith.constant 0 : i32
    return %c0_i32, %c0_i32_0 : i32, i32
  }
  func.func @transform_12(%arg0: i32) -> (i32, i32) {
    %c0_i32 = arith.constant 0 : i32
    %c0_i32_0 = arith.constant 0 : i32
    %c0_i32_1 = arith.constant 0 : i32
    return %c0_i32, %c0_i32_0 : i32, i32
  }
  func.func @transform_13(%arg0: i32) -> (i32, i32) {
    %c0_i32 = arith.constant 0 : i32
    %c0_i32_0 = arith.constant 0 : i32
    %c0_i32_1 = arith.constant 0 : i32
    return %c0_i32, %c0_i32_0 : i32, i32
  }
  func.func @transform_14(%arg0: i32) -> (i32, i32) {
    %c0_i32 = arith.constant 0 : i32
    %c0_i32_0 = arith.constant 0 : i32
    %c0_i32_1 = arith.constant 0 : i32
    return %c0_i32, %c0_i32_0 : i32, i32
  }
  func.func @transform_15(%arg0: i32) -> (i32, i32) {
    %c0_i32 = arith.constant 0 : i32
    %c0_i32_0 = arith.constant 0 : i32
    %c0_i32_1 = arith.constant 0 : i32
    return %c0_i32, %c0_i32_0 : i32, i32
  }
  func.func @transform_16(%arg0: i32) -> (i32, i32) {
    %c0_i32 = arith.constant 0 : i32
    %c0_i32_0 = arith.constant 0 : i32
    %c0_i32_1 = arith.constant 0 : i32
    return %c0_i32, %c0_i32_0 : i32, i32
  }
  func.func @transform_17(%arg0: i32) -> (i32, i32) {
    %c0_i32 = arith.constant 0 : i32
    %c0_i32_0 = arith.constant 0 : i32
    %c0_i32_1 = arith.constant 0 : i32
    return %c0_i32, %c0_i32_0 : i32, i32
  }
  func.func @transform_18(%arg0: i32) -> (i32, i32, i32) {
    %c0_i32 = arith.constant 0 : i32
    %c0_i32_0 = arith.constant 0 : i32
    %c0_i32_1 = arith.constant 0 : i32
    %c0_i32_2 = arith.constant 0 : i32
    return %c0_i32, %c0_i32_0, %c0_i32_1 : i32, i32, i32
  }
  func.func @transform_19(%arg0: i32) -> (i32, i32, i32) {
    %c0_i32 = arith.constant 0 : i32
    %c0_i32_0 = arith.constant 0 : i32
    %c0_i32_1 = arith.constant 0 : i32
    return %arg0, %c0_i32, %c0_i32_0 : i32, i32, i32
  }
  func.func @transform_20(%arg0: i32) -> (i32, i32, i32) {
    %c0_i32 = arith.constant 0 : i32
    %c0_i32_0 = arith.constant 0 : i32
    %c0_i32_1 = arith.constant 0 : i32
    return %arg0, %c0_i32, %c0_i32_0 : i32, i32, i32
  }
  func.func @transform_21(%arg0: i32) -> (i32, i32, i32) {
    %c0_i32 = arith.constant 0 : i32
    %c0_i32_0 = arith.constant 0 : i32
    %c0_i32_1 = arith.constant 0 : i32
    return %arg0, %c0_i32, %c0_i32_0 : i32, i32, i32
  }
}

</mosaic_0001>

<bundles_post_ra>
// kernel: tpu_custom_call.1
= control target key start
LH: loop header
LB: loop body
LE: loop exit
PB: predicated region body
PF: predicated region fallthrough
CT: control target
= control target key end

     0   :  { %s7670_s0 = inlined_call_operand.vmem [shape: f32[2,4,288], index: 0, kind: input, shape index: {}]   ;;  %s7671_s1 = inlined_call_operand.vmem [shape: f32[4,9], index: 1, kind: input, shape index: {}]   ;;  %s7672_s2 = inlined_call_operand.vmem [shape: bf16[8,4], index: 2, kind: input, shape index: {}]   ;;  %s7673_s3 = inlined_call_operand.vmem [shape: f32[8,1], index: 3, kind: input, shape index: {}]   ;;  %s7674_s4 = inlined_call_operand.vmem [shape: f32[8,9], index: 4, kind: input, shape index: {}]   ;;  %s7675_s5 = inlined_call_operand.vmem [shape: bf16[8,8], index: 5, kind: input, shape index: {}]   ;;  %s7676_s6 = inlined_call_operand.vmem [shape: f32[8,1], index: 6, kind: input, shape index: {}]   ;;  %s7677_s7 = inlined_call_operand.vmem [shape: f32[8,9], index: 7, kind: input, shape index: {}]   ;;  %s7678_s8 = inlined_call_operand.vmem [shape: bf16[16,8], index: 8, kind: input, shape index: {}]   ;;  %s7679_s9 = inlined_call_operand.vmem [shape: f32[16,1], index: 9, kind: input, shape index: {}]   ;;  %s7680_s10 = inlined_call_operand.vmem [shape: f32[18,10], index: 10, kind: input, shape index: {}]   ;;  %s7681_s11 = inlined_call_operand.vmem [shape: f32[16,9], index: 11, kind: input, shape index: {}]   ;;  %s7682_s12 = inlined_call_operand.vmem [shape: bf16[16,16], index: 12, kind: input, shape index: {}]   ;;  %s7683_s13 = inlined_call_operand.vmem [shape: f32[16,1], index: 13, kind: input, shape index: {}]   ;;  %s7684_s14 = inlined_call_operand.vmem [shape: bf16[8,8], index: 14, kind: input, shape index: {}]   ;;  %s7685_s15 = inlined_call_operand.vmem [shape: f32[8,1], index: 15, kind: input, shape index: {}]   ;;  %s7686_s16 = inlined_call_operand.vmem [shape: bf16[32,16], index: 16, kind: input, shape index: {}]   ;;  %s7687_s17 = inlined_call_operand.vmem [shape: f32[32,1], index: 17, kind: input, shape index: {}]   ;;  %s7688_s18 = inlined_call_operand.vmem [shape: f32[2,8,16], index: 18, kind: input, shape index: {}]   ;;  %s7689_s19 = inlined_call_operand.hbm [shape: f32[2,16,256], index: 19, kind: output, shape index: {0}]   ;;  %s7690_s20 = inlined_call_operand.hbm [shape: f32[2,8,288], index: 20, kind: output, shape index: {1}]   ;;  %s7691_s21 = inlined_call_operand.hbm [shape: f32[2,16,80], index: 21, kind: output, shape index: {2}]  }
   0x1   :  { %7735 = sst [smem:[#allocation19_spill]] %s7670_s0 }
   0x2   :  { %7736 = sst [smem:[#allocation20_spill]] %s7671_s1 }
   0x3   :  { %7737 = sst [smem:[#allocation21_spill]] %s7672_s2 }
   0x4   :  { %7738 = sst [smem:[#allocation22_spill]] %s7673_s3 }
   0x5   :  { %7739 = sst [smem:[#allocation23_spill]] %s7674_s4 }
   0x6   :  { %7740 = sst [smem:[#allocation24_spill]] %s7675_s5 }
   0x7   :  { %7741 = sst [smem:[#allocation25_spill]] %s7676_s6 }
   0x8   :  { %7742 = sst [smem:[#allocation26_spill]] %s7677_s7 }
   0x9   :  { %7743 = sst [smem:[#allocation27_spill]] %s7678_s8 }
   0xa   :  { %7744 = sst [smem:[#allocation28_spill]] %s7679_s9 }
   0xb   :  { %27 = vsyncpa [#allocation7], 0 }
   0xc   :  { %29 = vsyncpa [#allocation7 + $0x1], 0 }
   0xd   :  { %30 = vsyncpa [#allocation9], 0 }
   0xe   :  { %32 = vsyncpa [#allocation9 + $0x1], 0  ;;  %s6613_s2 = smov 0   ;;  %s6615_s25 = smov 0  }
   0xf   :  { %s6617_s26 = smov 0   ;;  %s6619_s27 = smov 0  }
  0x10 LB: > { %7745 = sst [smem:[#allocation13_spill]] %s6426_s2  ;;  %s6634_s3 = sadd.s32 4294967295, %s6438_s27   ;;  %s6438_s27 = sphi %s6619_s27, %s7815_s27   ;;  %s6434_s26 = sphi %s6617_s26, %s7817_s26   ;;  %s6430_s25 = sphi %s6615_s25, %s7819_s25   ;;  %s6426_s2 = sphi %s6613_s2, %s7818_s2  }
  0x11   : > { %7746 = sst [smem:[#allocation14_spill]] %s6434_s26  ;;  %s7692_s28 = sadd.s32 4294967294, %s6438_s27  }
  0x12   : > { %7747 = sst [smem:[#allocation15_spill]] %s6438_s27  ;;  %s6638_s29 = sadd.s32 1, %s6438_s27  }
  0x13   : > { %7748 = sst [smem:[#allocation16_spill]] %s6638_s29  ;;  %s449_s0 = sadd.s32 1, %s6434_s26 }
  0x14   : > { %s446_s4 = ssub.s32 %s6438_s27, %s6638_s29  ;;  %p459_p0 = scmp.ne.s32.totalorder %s6434_s26, %s6430_s25 }
  0x15   : > { %p447_p1 = scmp.eq.s32.totalorder %s446_s4, 0  ;;  %p460_p2 = scmp.eq.s32.totalorder %s6634_s3, 1 }
  0x16   : > { %p465_p3 = scmp.ne.s32.totalorder %s6430_s25, %s6426_s2  ;;  %p466_p4 = scmp.eq.s32.totalorder %s7692_s28, 1 }
  0x17   : > { %s6651_s30 = scalar_select %p447_p1, %s6434_s26, %s449_s0  }
  0x18   : > { %p6653_p5 = por %p460_p2, %p459_p0  ;;  %p6657_p6 = por %p466_p4, %p465_p3 }
  0x19   : > { %7749 = sst [smem:[#allocation17_spill]] %s6651_s30  ;;  %p5616_p7 = scmp.ge.s32.totalorder %s6438_s27, 1 }
  0x1a   : > { %s7751_s22 = scalar_select %p6657_p6, 1, 0 }
  0x1b   : > { %p598_p8 = scmp.lt.s32.totalorder %s6438_s27, 3 }
  0x1c   : > { %7752 = sst [smem:[#allocation18_spill]] %s7751_s22 }
  0x1d   : > { %p599_p9 = pnand %p5616_p7, %p598_p8 }
  0x1e   : > { %s7753_s24 = sld [smem:[#allocation20_spill]] (!%p599_p9)  ;;  %p668_p10 = scmp.lt.s32.totalorder (!%p599_p9), %s6634_s3, 1  ;;  %v6440_v1 = vmov (!%p599_p9), 1   ;;  %v6441_v2 = vmov (!%p599_p9), 3   ;;  %vm674_vm0 = vcmask (!%p599_p9), 150528   ;;  %vm678_vm1 = vcmask (!%p599_p9), 154624  }
  0x1f   : > { %602 = sbr.rel (%p599_p9) target bundleno = 3376 (0xd30), region = 96  ;;  %6268 = vset.pattern.permute.xlu1 (!%p599_p9), %v6440_v1  ;;  %6270 = vset.pattern.permute.xlu0 (!%p599_p9), %v6441_v2  ;;  %v6442_v3 = vmov (!%p599_p9), 0   ;;  %v6443_v4 = vmov (!%p599_p9), 0.0   ;;  %vm676_vm2 = vcmask (!%p599_p9), 699800   ;;  %v6444_v5 = vmov (!%p599_p9), 2   ;;  %s7693_s23 = smov (!%p599_p9), 110  }
  0x20   : > { %1008 = vmatprep.mubr.bf16.mxu0 (!%p599_p9), %v6442_v3  ;;  %675 = vst.msk [vmem:[#allocation2] sm:$0xf] (!%p599_p9), %vm674_vm0, %v6443_v4  ;;  %5825 = vmatprep.subr.bf16.mxu1 (!%p599_p9), %v6443_v4  ;;  %v6446_v8 = vmov (!%p599_p9), 4   ;;  %v6447_v9 = vmov (!%p599_p9), 5   ;;  %v6448_v10 = vmov (!%p599_p9), 6   ;;  %v6449_v11 = vmov (!%p599_p9), 7  }
  0x21   : > { %679 = vst.msk [vmem:[#allocation3] sm:$0xff] (!%p599_p9), %vm678_vm1, %v6443_v4  ;;  %v6450_v12 = vmov (!%p599_p9), 8   ;;  %v6451_v13 = vmov (!%p599_p9), 839922192   ;;  %v717_v15 = vlaneseq (!%p599_p9)  ;;  %vm701_vm3 = vcmask (!%p599_p9), 1043608   ;;  %s7695_s1 = smov (!%p599_p9), 109  }
  0x22   : > { %677 = vst.msk [vmem:[#allocation2 + $0x8] sm:$0xf] (!%p599_p9), %vm676_vm2, %v6443_v4  ;;  %v715_v14 = vunpack.c.l.s4 (!%p599_p9), %v6451_v13  ;;  %vm702_vm4 = vcmask (!%p599_p9), 1047556   ;;  %vm705_vm6 = vcmask (!%p599_p9), 412672   ;;  %vm7707_vm7 = vmmov (!%p599_p9), 0   ;;  %s7765_s30 = smov (!%p599_p9), 92  }
  0x23   : > { %v718_v18 = vshrl.u32 (!%p599_p9), %v717_v15, 7  ;;  %vm703_vm5 = vmor (!%p599_p9), %vm702_vm4, %vm701_vm3  ;;  %5827 = vmatprep.mubr.msk.bf16.mxu1 (!%p599_p9), %vm7707_vm7, %v6443_v4  ;;  %vm7709_vm8 = vcmask (!%p599_p9), 1043456   ;;  %vm747_vm9 = vcmask (!%p599_p9), 1039360   ;;  %vm775_vm10 = vcmask (!%p599_p9), 1031168   ;;  %s7766_s26 = smov (!%p599_p9), 90   ;;  %s7767_s6 = sld [smem:[#allocation25_spill]] (!%p599_p9) }
  0x24   : > { %v707_v0 = vld [vmem:[%s7753_s24] sm:$0xf] (!%p599_p9)  ;;  %s7754_s24 = sld [smem:[#allocation19_spill]] (!%p599_p9)  ;;  %v716_v17 = vunpack.c.0.s8 (!%p599_p9), %v715_v14  ;;  %vm803_vm11 = vcmask (!%p599_p9), 900096   ;;  %vm831_vm12 = vcmask (!%p599_p9), 891904   ;;  %vm7713_vm13 = vcmask (!%p599_p9), 883712  }
  0x25   : > { %725 = vperm.xlu1 (!%p599_p9), %6268, %v707_v0   ;;  %vm7712_vm14 = vcmask (!%p599_p9), 752640   ;;  %vm7711_vm15 = vcmask (!%p599_p9), 744448   ;;  %vm7710_vm0 = vcmask (!%p599_p9), 736256   ;;  %vm7706_vm2 = vcmask (!%p599_p9), 1041408   ;;  %s7768_s7 = sld [smem:[#allocation26_spill]] (!%p599_p9)  ;;  %s7780_s29 = sld [smem:[#allocation24_spill]] (!%p599_p9) }
  0x26   : > { %s669_s0 = scalar_select %p668_p10, %s6634_s3, 1  ;;  %v719_v22 = vsub.s32 %v716_v17, %v718_v18  ;;  %vm7705_vm3 = vcmask 31744  }
  0x27   : > { %s6905_s22 = sand.u32 1, %s6430_s25   ;;  %s7782_s27 = smov 19  }
  0x28   : > { %s6149_s4 = smul.u32 12, %s669_s0  ;;  %s7714_s0 = smov 19  }
  0x29   : > { %6269 = vset.pattern.permute.xlu1 %v6444_v5  ;;  %s7799_s9 = sld [smem:[#allocation28_spill]]  ;;  %s7801_s8 = sld [smem:[#allocation27_spill]] }
  0x2a   : > { %s672_s28 = scalar_lea.vmem %s7754_s24, %s6149_s4  ;;  %754 = vperm.xlu1 %6269, %v707_v0   ;;  %s7703_s4 = smov 126  }
  0x2b   : > { %v688_v6 = vld [vmem:[%s672_s28] sm:$0xff]  ;;  %v689_v7 = vld [vmem:[%s672_s28 + $0x8] sm:$0xf]  ;;  %s7701_s28 = smov 127   ;;  %s7697_s24 = smov 108  }
  0x2c   : > { %692 = vrot.lane.b32.xlu0 %v688_v6, %s7714_s0 }
  0x2e   : > { %6271 = vset.pattern.permute.xlu1 %v6446_v8 }
  0x2f   : > { %810 = vperm.xlu1 %6271, %v707_v0  }
  0x30   : > { %694 = vrot.lane.b32.xlu0 %v689_v7, %s7714_s0 }
  0x33   : > { %6272 = vset.pattern.permute.xlu1 %v6447_v9 }
  0x34   : > { %782 = vperm.xlu0 %6270, %v707_v0   ;;  %838 = vperm.xlu1 %6272, %v707_v0  }
  0x38   : > { %6273 = vset.pattern.permute.xlu0 %v6448_v10  ;;  %6274 = vset.pattern.permute.xlu1 %v6449_v11 }
  0x39   : > { %866 = vperm.xlu0 %6273, %v707_v0   ;;  %894 = vperm.xlu1 %6274, %v707_v0  }
  0x3d   : > { %6276 = vset.pattern.permute.xlu0 %v6442_v3  ;;  %6275 = vset.pattern.permute.xlu1 %v6450_v12 }
  0x3e   : > { %712 = vperm.xlu0 %6276, %v707_v0   ;;  %922 = vperm.xlu1 %6275, %v707_v0  }
  0x42   : > { %6278 = vset.pattern.permute.xlu1 %v6444_v5 }
  0x9e   : > { %v693_v16 = vpop.permute.xlu0 %692 }
  0x9f   : > { %v696_v19 = vrot.slane %v693_v16, 4 }
  0xa1   : > { %v697_v20 = vsel %vm678_vm1, %v696_v19, %v693_v16 }
  0xa2   : > { %704 = vst.msk [vmem:[#allocation2] sm:$0xff] %vm703_vm5, %v697_v20  ;;  %v695_v21 = vpop.permute.xlu0 %694 }
  0xa3   : > { %v698_v23 = vsel %vm678_vm1, %v696_v19, %v695_v21 }
  0xa4   : > { %706 = vst.msk [vmem:[#allocation2 + $0x8] sm:$0xf] %vm705_vm6, %v698_v23  ;;  %v726_v24 = vpop.permute.xlu1 %725 }
  0xa5   : > { %v733_v25 = vrot.slane %v726_v24, %v719_v22 }
  0xa9   : > { %v708_v26 = vld [vmem:[#allocation2] sm:$0xff]  ;;  %v755_v28 = vpop.permute.xlu1 %754 }
  0xaa   : > { %v735_v27 = vmul.f32 %v733_v25, %v708_v26  ;;  %v762_v30 = vrot.slane %v755_v28, %v719_v22 }
  0xab   : > { %v709_v29 = vld [vmem:[#allocation2 + $0x8] sm:$0xf] }
  0xac   : > { %739 = vrot.lane.b32.xlu1 %v735_v27, %s7701_s28  ;;  %v764_v31 = vmul.f32 %v762_v30, %v708_v26  ;;  %v736_v32 = vmul.f32 %v733_v25, %v709_v29  ;;  %v765_v34 = vmul.f32 %v762_v30, %v709_v29 }
  0xae   : > { %768 = vrot.lane.b32.xlu0 %v764_v31, %s7703_s4  ;;  %v811_v33 = vpop.permute.xlu1 %810 }
  0xaf   : > { %v818_v37 = vrot.slane %v811_v33, %v719_v22 }
  0xb0   : > { %741 = vrot.lane.b32.xlu1 %v736_v32, %s7701_s28  ;;  %s7760_s28 = smov 126  }
  0xb1   : > { %v820_v42 = vmul.f32 %v818_v37, %v708_v26  ;;  %v821_v43 = vmul.f32 %v818_v37, %v709_v29 }
  0xb3   : > { %v783_v35 = vpop.permute.xlu0 %782  ;;  %v839_v40 = vpop.permute.xlu1 %838 }
  0xb4   : > { %v790_v36 = vrot.slane %v783_v35, %v719_v22  ;;  %770 = vrot.lane.b32.xlu1 %v765_v34, %s7703_s4  ;;  %v846_v44 = vrot.slane %v839_v40, %v719_v22  ;;  %s7755_s4 = sld [smem:[#allocation22_spill]] }
  0xb6   : > { %v792_v38 = vmul.f32 %v790_v36, %v708_v26  ;;  %v793_v39 = vmul.f32 %v790_v36, %v709_v29  ;;  %v848_v47 = vmul.f32 %v846_v44, %v708_v26  ;;  %v849_v48 = vmul.f32 %v846_v44, %v709_v29 }
  0xb8   : > { %798 = vrot.lane.b32.xlu1 %v793_v39, %s7693_s23  ;;  %796 = vrot.lane.b32.xlu0 %v792_v38, %s7693_s23  ;;  %v867_v41 = vpop.permute.xlu0 %866  ;;  %v895_v45 = vpop.permute.xlu1 %894  ;;  %s7699_s23 = smov 92  }
  0xb9   : > { %v874_v49 = vrot.slane %v867_v41, %v719_v22  ;;  %v902_v55 = vrot.slane %v895_v45, %v719_v22 }
  0xba   : > { %v956_v62 = vld [vmem:[%s7755_s4] sm:$0xff]  ;;  %s7761_s4 = smov 127  }
  0xbb   : > { %v876_v53 = vmul.f32 %v874_v49, %v708_v26  ;;  %v877_v54 = vmul.f32 %v874_v49, %v709_v29  ;;  %v904_v57 = vmul.f32 %v902_v55, %v708_v26  ;;  %v905_v58 = vmul.f32 %v902_v55, %v709_v29 }
  0xbc   : > { %826 = vrot.lane.b32.xlu1 %v821_v43, %s7695_s1  ;;  %824 = vrot.lane.b32.xlu0 %v820_v42, %s7695_s1  ;;  %s7725_s1 = smov 91  }
  0xbd   : > { %v713_v46 = vpop.permute.xlu0 %712  ;;  %v923_v56 = vpop.permute.xlu1 %922 }
  0xbe   : > { %v720_v50 = vrot.slane %v713_v46, %v719_v22  ;;  %v930_v59 = vrot.slane %v923_v56, %v719_v22 }
  0xc0   : > { %v722_v51 = vmul.f32 %v720_v50, %v708_v26  ;;  %v723_v52 = vmul.f32 %v720_v50, %v709_v29  ;;  %854 = vrot.lane.b32.xlu1 %v849_v48, %s7697_s24  ;;  %852 = vrot.lane.b32.xlu0 %v848_v47, %s7697_s24  ;;  %v932_v60 = vmul.f32 %v930_v59, %v708_v26  ;;  %s7716_s24 = smov 90  }
  0xc1   : > { %v933_v61 = vmul.f32 %v930_v59, %v709_v29 }
  0xc4   : > { %882 = vrot.lane.b32.xlu1 %v877_v54, %s7699_s23  ;;  %880 = vrot.lane.b32.xlu0 %v876_v53, %s7699_s23  ;;  %s7756_s23 = sld [smem:[#allocation21_spill]] }
  0xc8   : > { %910 = vrot.lane.b32.xlu1 %v905_v58, %s7725_s1  ;;  %908 = vrot.lane.b32.xlu0 %v904_v57, %s7725_s1 }
  0xcc   : > { %938 = vrot.lane.b32.xlu1 %v933_v61, %s7716_s24  ;;  %936 = vrot.lane.b32.xlu0 %v932_v60, %s7716_s24  ;;  %s7764_s24 = smov 108  }
  0xd0   : > { %959 = vperm.xlu0 %6276, %v956_v62  }
  0xd4   : > { %6277 = vset.pattern.permute.xlu0 %v6440_v1 }
 0x11e   : > { %v740_v63 = vpop.permute.xlu1 %739 }
 0x11f   : > { %v743_v17 = vrot.slane %v740_v63, 4 }
 0x120   : > { %v769_v6 = vpop.permute.xlu0 %768 }
 0x121   : > { %v772_v19 = vrot.slane %v769_v6, 4 }
 0x122   : > { %v742_v0 = vpop.permute.xlu1 %741 }
 0x123   : > { %v744_v13 = vrot.slane %v742_v0, 4  ;;  %v752_v25 = vadd.f32 %v742_v0, %v723_v52 }
 0x125   : > { %v746_v20 = vsel %vm7709_vm8, %v743_v17, %v744_v13 }
 0x126   : > { %v771_v7 = vpop.permute.xlu1 %770  ;;  %v748_v27 = vsel %vm747_vm9, %v740_v63, %v746_v20 }
 0x127   : > { %v773_v18 = vrot.slane %v771_v7, 4  ;;  %v780_v30 = vadd.f32 %v771_v7, %v752_v25  ;;  %v751_v37 = vadd.f32 %v748_v27, %v722_v51 }
 0x129   : > { %v774_v26 = vsel %vm7709_vm8, %v772_v19, %v773_v18 }
 0x12a   : > { %v799_v14 = vpop.permute.xlu1 %798  ;;  %v797_v16 = vpop.permute.xlu0 %796  ;;  %v776_v33 = vsel %vm775_vm10, %v769_v6, %v774_v26 }
 0x12b   : > { %v801_v23 = vrot.slane %v799_v14, 4  ;;  %v800_v24 = vrot.slane %v797_v16, 4  ;;  %v808_v38 = vadd.f32 %v799_v14, %v780_v30  ;;  %v779_v40 = vadd.f32 %v776_v33, %v751_v37 }
 0x12d   : > { %v802_v34 = vsel %vm7709_vm8, %v800_v24, %v801_v23  ;;  %v949_v23 = vld [vmem:[%s7756_s23] sm:$0xf]  ;;  %s7759_s23 = sld [smem:[#allocation23_spill]] }
 0x12e   : > { %v827_v21 = vpop.permute.xlu1 %826  ;;  %v825_v22 = vpop.permute.xlu0 %824  ;;  %v804_v41 = vsel %vm803_vm11, %v797_v16, %v802_v34 }
 0x12f   : > { %v829_v28 = vrot.slane %v827_v21, 4  ;;  %v828_v29 = vrot.slane %v825_v22, 4  ;;  %v836_v44 = vadd.f32 %v827_v21, %v808_v38  ;;  %v807_v49 = vadd.f32 %v804_v41, %v779_v40 }
 0x131   : > { %v830_v39 = vsel %vm7709_vm8, %v828_v29, %v829_v28  ;;  %v6743_v28 = vand.u32 127, %v717_v15 }
 0x132   : > { %v855_v31 = vpop.permute.xlu1 %854  ;;  %v853_v32 = vpop.permute.xlu0 %852  ;;  %v832_v48 = vsel %vm831_vm12, %v825_v22, %v830_v39 }
 0x133   : > { %v857_v35 = vrot.slane %v855_v31, 4  ;;  %v856_v36 = vrot.slane %v853_v32, 4  ;;  %v864_v50 = vadd.f32 %v855_v31, %v836_v44  ;;  %v835_v55 = vadd.f32 %v832_v48, %v807_v49 }
 0x134   : > { %v1063_v29 = vadd.s32 256, %v6743_v28  ;;  %v6751_v33 = vmul.u32.u64.low 3817748708, %v6743_v28  ;;  %v6752_v34 = vmul.u32.u64.high 3817748708, %v6743_v28, %v6751_v33 }
 0x135   : > { %v858_v45 = vsel %vm7709_vm8, %v856_v36, %v857_v35 }
 0x136   : > { %v883_v42 = vpop.permute.xlu1 %882  ;;  %v881_v43 = vpop.permute.xlu0 %880  ;;  %v860_v52 = vsel %vm7713_vm13, %v853_v32, %v858_v45  ;;  %v6746_v30 = vmul.u32.u64.low 3817748708, %v1063_v29  ;;  %v6747_v31 = vmul.u32.u64.high 3817748708, %v1063_v29, %v6746_v30  ;;  %v1062_v32 = vadd.s32 128, %v6743_v28 }
 0x137   : > { %v885_v46 = vrot.slane %v883_v42, 4  ;;  %v884_v47 = vrot.slane %v881_v43, 4  ;;  %v892_v56 = vadd.f32 %v883_v42, %v864_v50  ;;  %v863_v60 = vadd.f32 %v860_v52, %v835_v55 }
 0x138   : > { %v6754_v35 = vmul.u32.u64.low 3817748708, %v1062_v32  ;;  %v6755_v36 = vmul.u32.u64.high 3817748708, %v1062_v32, %v6754_v35  ;;  %v1092_v37 = vshrl.u32 %v6747_v31, 4  ;;  %v1070_v15 = vshrl.u32 %v6752_v34, 4 }
 0x139   : > { %v886_v51 = vsel %vm7709_vm8, %v884_v47, %v885_v46  ;;  %vm680_vm13 = vcmask 703896  }
 0x13a   : > { %v911_v53 = vpop.permute.xlu1 %910  ;;  %v909_v54 = vpop.permute.xlu0 %908  ;;  %v888_v59 = vsel %vm7712_vm14, %v881_v43, %v886_v51  ;;  %v1093_v38 = vmul.u32 18, %v1092_v37  ;;  %v1081_v39 = vshrl.u32 %v6755_v36, 4  ;;  %v1071_v41 = vmul.u32 18, %v1070_v15  ;;  %681 = vst.msk [vmem:[#allocation3 + $0x10] sm:$0xff] %vm680_vm13, %v6443_v4 }
 0x13b   : > { %v913_v57 = vrot.slane %v911_v53, 4  ;;  %v912_v58 = vrot.slane %v909_v54, 4  ;;  %v920_v61 = vadd.f32 %v911_v53, %v892_v56  ;;  %v891_v7 = vadd.f32 %v888_v59, %v863_v60 }
 0x13c   : > { %v1094_v40 = vsub.s32 %v1063_v29, %v1093_v38  ;;  %v1082_v42 = vmul.u32 18, %v1081_v39  ;;  %v1072_v44 = vsub.s32 %v6743_v28, %v1071_v41  ;;  %vm1141_vm13 = vcmask 416768  }
 0x13d   : > { %v914_v62 = vsel %vm7709_vm8, %v912_v58, %v913_v57 }
 0x13e   : > { %v916_v63 = vsel %vm7711_vm15, %v909_v54, %v914_v62  ;;  %v939_v0 = vpop.permute.xlu1 %938  ;;  %v937_v6 = vpop.permute.xlu0 %936  ;;  %vm1099_vm4 = vcmp.ne.s32.totalorder %v1094_v40, 0  ;;  %vm1102_vm5 = vcmp.lt.s32.totalorder %v1094_v40, 0  ;;  %v1108_v43 = vadd.s32 18, %v1094_v40 }
 0x13f   : > { %v941_v13 = vrot.slane %v939_v0, 4  ;;  %v940_v14 = vrot.slane %v937_v6, 4  ;;  %v948_v16 = vadd.f32 %v939_v0, %v920_v61  ;;  %v919_v17 = vadd.f32 %v916_v63, %v891_v7  ;;  %vm1105_vm6 = vmand %vm1102_vm5, %vm1099_vm4 }
 0x140   : > { %v1083_v45 = vsub.s32 %v1062_v32, %v1082_v42  ;;  %v1111_v46 = vsel %vm1105_vm6, %v1108_v43, %v1094_v40  ;;  %v1106_v47 = vadd.s32 18, %v1072_v44  ;;  %vm7773_vm4 = vcmask 744448  }
 0x141   : > { %v942_v18 = vsel %vm7709_vm8, %v940_v14, %v941_v13  ;;  %v955_v19 = vpack.c.bf16 %v948_v16, %v948_v16  ;;  %vm7774_vm5 = vmmov %vm7773_vm4  ;;  %vm7775_vm6 = vcmask 736256  }
 0x142   : > { %v944_v20 = vsel %vm7710_vm0, %v937_v6, %v942_v18  ;;  %vm1101_vm8 = vcmp.lt.s32.totalorder %v1083_v45, 0  ;;  %vm1114_vm0 = vcmp.lt.s32.totalorder %v1111_v46, 16  ;;  %v1107_v49 = vadd.s32 18, %v1083_v45 }
 0x143   : > { %v974_v21 = vsel %vm7706_vm2, %v955_v19, 0  ;;  %v947_v22 = vadd.f32 %v944_v20, %v919_v17  ;;  %v6767_v54 = vsel %vm1114_vm0, 1.0, %v6443_v4  ;;  %v1143_v20 = vld [vmem:[%s7759_s23] sm:$0xff]  ;;  %s7762_s23 = smov 110   ;;  %vm7771_vm0 = vcmask 752640  }
 0x144   : > { %5826 = vmatpush3.bf16.msra.mxu1 %v974_v21 }
 0x145   : > { %v951_v24 = vcombine.high %v947_v22, %v947_v22  ;;  %v953_v25 = vpack.c.bf16 %v947_v22, %v947_v22  ;;  %5831 = vmatprep.subr.bf16.mxu1 %v6443_v4 }
 0x147   : > { %5828 = vmatmul.mubr.msk.bf16.vlgmr.msra.gmra.mrb[0].mxu1 %vm7705_vm3, %v949_v23  ;;  %v954_v26 = vpack.c.bf16 %v951_v24, %v951_v24  ;;  %v968_v27 = vsel %vm7706_vm2, %v953_v25, 0 }
 0x148   : > { %5833 = vmatprep.mubr.msk.bf16.mxu1 %vm7707_vm7, %v6443_v4  ;;  %vm1098_vm7 = vcmp.ne.s32.totalorder %v1083_v45, 0 }
 0x149   : > { %5620 = vmatprep.subr.msk.bf16.mxu0 %vm7706_vm2, %v954_v26  ;;  %vm1100_vm2 = vcmp.lt.s32.totalorder %v1072_v44, 0  ;;  %vm1104_vm14 = vmand %vm1101_vm8, %vm1098_vm7  ;;  %vm1138_vm8 = vcmask 1047704  }
 0x14a   : > { %977 = vmatpush1.bf16.msra.mxu0 %v968_v27  ;;  %v1110_v59 = vsel %vm1104_vm14, %v1107_v49, %v1083_v45  ;;  %vm7769_vm14 = vcmask 883712  }
 0x14b   : > { %vm1113_vm7 = vcmp.lt.s32.totalorder %v1110_v59, 16 }
 0x14c   : > { %v6777_v14 = vsel %vm1113_vm7, 1.0, %v6443_v4  ;;  %vm7777_vm7 = vcmask 1043456  }
 0x14d   : > { %5621 = vmatmul.mubr.msk.bf16.vlgmr.msra.gmra.mrb[0].mxu0 %vm7705_vm3, %v949_v23  ;;  %vm1097_vm3 = vcmp.ne.s32.totalorder %v1072_v44, 0 }
 0x14e   : > { %1402 = vmatprep.mubr.bf16.mxu0 %v6442_v3  ;;  %vm6761_vm15 = vmand %vm1100_vm2, %vm1097_vm3 }
 0x14f   : > { %v960_v50 = vpop.permute.xlu0 %959  ;;  %v1109_v56 = vsel %vm6761_vm15, %v1106_v47, %v1072_v44  ;;  %vm7770_vm15 = vmmov %vm7769_vm14 }
 0x150   : > { %vm1112_vm2 = vcmp.lt.s32.totalorder %v1109_v56, 16  ;;  %vm7772_vm3 = vmmov %vm7771_vm0 }
 0x151   : > { %v6774_v0 = vsel %vm1112_vm2, 1.0, %v6443_v4  ;;  %vm7776_vm2 = vmmov %vm7775_vm6 }
 0x21a   : > { %v1051_v51 = vpop.f32.mrb[0].mxu1 }
 0x21b   : > { %v1052_v52 = vadd.f32 %v1051_v51, %v960_v50  ;;  %v5829_v53 = vpop.f32.mrb[1].mxu1 }
 0x21c   : > { %v1054_v55 = vpop.f32.mrb[2].mxu1 }
 0x21d   : > { %v1059_v57 = vmax.f32 %v1052_v52, 0.0  ;;  %v5830_v58 = vpop.f32.mrb[3].mxu1 }
 0x21f   : > { %v1123_v60 = vmul.f32 %v6767_v54, %v1059_v57 }
 0x220   : > { %v1010_v61 = vpop.f32.mrb[0].mxu0 }
 0x221   : > { %v1011_v62 = vadd.f32 %v1010_v61, %v960_v50  ;;  %v1012_v63 = vpop.f32.mrb[1].mxu0  ;;  %1131 = vrot.lane.b32.xlu1 %v1123_v60, %s7714_s0  ;;  %v1351_v60 = vld [vmem:[%s7767_s6] sm:$0xff]  ;;  %s6468_s6 = smov 10  }
 0x222   : > { %v1013_v6 = vadd.f32 %v1012_v63, %v960_v50  ;;  %v1014_v7 = vpop.f32.mrb[2].mxu0 }
 0x223   : > { %v1057_v13 = vmax.f32 %v1011_v62, 0.0  ;;  %v1015_v16 = vpop.f32.mrb[3].mxu0  ;;  %v6859_v62 = vld [vmem:[%s7768_s7] sm:$0xff]  ;;  %s6469_s7 = smov 30  }
 0x224   : > { %v1058_v17 = vmax.f32 %v1013_v6, 0.0 }
 0x225   : > { %v1121_v18 = vmul.f32 %v6774_v0, %v1057_v13 }
 0x226   : > { %v1122_v19 = vmul.f32 %v6777_v14, %v1058_v17 }
 0x227   : > { %1127 = vrot.lane.b32.xlu1 %v1121_v18, %s7714_s0 }
 0x228   : > { %1129 = vrot.lane.b32.xlu0 %v1122_v19, %s7714_s0  ;;  %s7763_s0 = smov 109  }
 0x22b   : > { %1180 = vperm.xlu1 %6278, %v1143_v20  }
 0x22c   : > { %1156 = vperm.xlu0 %6277, %v1143_v20  }
 0x22f   : > { %6279 = vset.pattern.permute.xlu1 %v6441_v2 }
 0x230   : > { %6280 = vset.pattern.permute.xlu0 %v6446_v8  ;;  %1204 = vperm.xlu1 %6279, %v1143_v20  }
 0x231   : > { %1228 = vperm.xlu0 %6280, %v1143_v20  }
 0x234   : > { %6281 = vset.pattern.permute.xlu1 %v6447_v9 }
 0x235   : > { %6283 = vset.pattern.permute.xlu0 %v6449_v11  ;;  %1252 = vperm.xlu1 %6281, %v1143_v20  }
 0x236   : > { %1300 = vperm.xlu0 %6283, %v1143_v20  }
 0x239   : > { %6282 = vset.pattern.permute.xlu1 %v6448_v10 }
 0x23a   : > { %1276 = vperm.xlu1 %6282, %v1143_v20   ;;  %6286 = vset.pattern.permute.xlu0 %v6442_v3 }
 0x23e   : > { %6284 = vset.pattern.permute.xlu1 %v6450_v12 }
 0x23f   : > { %1324 = vperm.xlu1 %6284, %v1143_v20  }
 0x243   : > { %6285 = vset.pattern.permute.xlu1 %v6442_v3 }
 0x244   : > { %1149 = vperm.xlu1 %6285, %v1143_v20  }
 0x248   : > { %6288 = vset.pattern.permute.xlu1 %v6444_v5 }
 0x293   : > { %v1132_v21 = vpop.permute.xlu1 %1131 }
 0x299   : > { %v1128_v22 = vpop.permute.xlu1 %1127 }
 0x29a   : > { %1139 = vst.msk [vmem:[#allocation3] sm:$0xff] %vm1138_vm8, %v1128_v22  ;;  %v1130_v23 = vpop.permute.xlu0 %1129 }
 0x29b   : > { %v1134_v24 = vsel %vm678_vm1, %v1130_v23, %v1132_v21  ;;  %v6820_v44 = vsel %vm678_vm1, %v1128_v22, %v1130_v23 }
 0x29c   : > { %1142 = vst.msk [vmem:[#allocation3 + $0x10] sm:$0xff] %vm1141_vm13, %v1134_v24 }
 0x2a1   : > { %v6798_v26 = vld [vmem:[#allocation3] sm:$0xff] }
 0x2a3   : > { %v6814_v40 = vld [vmem:[#allocation3 + $0x10] sm:$0xff] }
 0x2aa   : > { %v1181_v25 = vpop.permute.xlu1 %1180 }
 0x2ab   : > { %v1157_v27 = vpop.permute.xlu0 %1156  ;;  %v1183_v29 = vmul.f32 %v1181_v25, %v6798_v26  ;;  %v1184_v45 = vmul.f32 %v1181_v25, %v6820_v44  ;;  %v1185_v48 = vmul.f32 %v1181_v25, %v6814_v40 }
 0x2ac   : > { %v1159_v30 = vmul.f32 %v1157_v27, %v6798_v26  ;;  %v1161_v41 = vmul.f32 %v1157_v27, %v6814_v40  ;;  %v1160_v46 = vmul.f32 %v1157_v27, %v6820_v44 }
 0x2ad   : > { %1189 = vrot.lane.b32.xlu1 %v1183_v29, %s7760_s28 }
 0x2ae   : > { %1165 = vrot.lane.b32.xlu0 %v1159_v30, %s7761_s4 }
 0x2af   : > { %v1205_v31 = vpop.permute.xlu1 %1204 }
 0x2b0   : > { %v1229_v32 = vpop.permute.xlu0 %1228  ;;  %v1207_v33 = vmul.f32 %v1205_v31, %v6798_v26  ;;  %v1209_v47 = vmul.f32 %v1205_v31, %v6814_v40  ;;  %v1208_v50 = vmul.f32 %v1205_v31, %v6820_v44 }
 0x2b1   : > { %v1231_v34 = vmul.f32 %v1229_v32, %v6798_v26  ;;  %v1232_v49 = vmul.f32 %v1229_v32, %v6820_v44  ;;  %v1233_v52 = vmul.f32 %v1229_v32, %v6814_v40 }
 0x2b2   : > { %1213 = vrot.lane.b32.xlu0 %v1207_v33, %s7762_s23 }
 0x2b3   : > { %1237 = vrot.lane.b32.xlu1 %v1231_v34, %s7763_s0 }
 0x2b4   : > { %v1253_v35 = vpop.permute.xlu1 %1252 }
 0x2b5   : > { %v1255_v36 = vmul.f32 %v1253_v35, %v6798_v26  ;;  %v1301_v37 = vpop.permute.xlu0 %1300  ;;  %v1257_v51 = vmul.f32 %v1253_v35, %v6814_v40  ;;  %v1256_v55 = vmul.f32 %v1253_v35, %v6820_v44 }
 0x2b6   : > { %v1303_v15 = vmul.f32 %v1301_v37, %v6798_v26  ;;  %v1305_v56 = vmul.f32 %v1301_v37, %v6814_v40  ;;  %v1304_v59 = vmul.f32 %v1301_v37, %v6820_v44 }
 0x2b7   : > { %1261 = vrot.lane.b32.xlu0 %v1255_v36, %s7764_s24 }
 0x2b9   : > { %v1277_v38 = vpop.permute.xlu1 %1276 }
 0x2ba   : > { %v1279_v39 = vmul.f32 %v1277_v38, %v6798_v26  ;;  %v1280_v53 = vmul.f32 %v1277_v38, %v6820_v44  ;;  %v1281_v57 = vmul.f32 %v1277_v38, %v6814_v40 }
 0x2bb   : > { %1309 = vrot.lane.b32.xlu0 %v1303_v15, %s7725_s1 }
 0x2bc   : > { %1285 = vrot.lane.b32.xlu1 %v1279_v39, %s7765_s30 }
 0x2be   : > { %v1325_v42 = vpop.permute.xlu1 %1324 }
 0x2bf   : > { %1169 = vrot.lane.b32.xlu0 %v1161_v41, %s7761_s4  ;;  %v1327_v43 = vmul.f32 %v1325_v42, %v6798_v26  ;;  %v1328_v58 = vmul.f32 %v1325_v42, %v6820_v44  ;;  %v1329_v61 = vmul.f32 %v1325_v42, %v6814_v40 }
 0x2c1   : > { %1333 = vrot.lane.b32.xlu1 %v1327_v43, %s7766_s26 }
 0x2c3   : > { %1191 = vrot.lane.b32.xlu0 %v1184_v45, %s7760_s28  ;;  %v1150_v6 = vpop.permute.xlu1 %1149 }
 0x2c4   : > { %v1152_v29 = vmul.f32 %v1150_v6, %v6798_v26  ;;  %v1154_v31 = vmul.f32 %v1150_v6, %v6814_v40  ;;  %v1153_v42 = vmul.f32 %v1150_v6, %v6820_v44 }
 0x2c5   : > { %1167 = vrot.lane.b32.xlu1 %v1160_v46, %s7761_s4 }
 0x2c7   : > { %1217 = vrot.lane.b32.xlu0 %v1209_v47, %s7762_s23 }
 0x2c9   : > { %1193 = vrot.lane.b32.xlu1 %v1185_v48, %s7760_s28 }
 0x2cb   : > { %1239 = vrot.lane.b32.xlu0 %v1232_v49, %s7763_s0 }
 0x2cd   : > { %1215 = vrot.lane.b32.xlu1 %v1208_v50, %s7762_s23 }
 0x2cf   : > { %1265 = vrot.lane.b32.xlu0 %v1257_v51, %s7764_s24 }
 0x2d1   : > { %1241 = vrot.lane.b32.xlu1 %v1233_v52, %s7763_s0 }
 0x2d3   : > { %1287 = vrot.lane.b32.xlu0 %v1280_v53, %s7765_s30 }
 0x2d5   : > { %1263 = vrot.lane.b32.xlu1 %v1256_v55, %s7764_s24 }
 0x2d7   : > { %1313 = vrot.lane.b32.xlu0 %v1305_v56, %s7725_s1 }
 0x2d9   : > { %1289 = vrot.lane.b32.xlu1 %v1281_v57, %s7765_s30 }
 0x2db   : > { %1335 = vrot.lane.b32.xlu0 %v1328_v58, %s7766_s26 }
 0x2dd   : > { %1311 = vrot.lane.b32.xlu1 %v1304_v59, %s7725_s1  ;;  %s6148_s1 = smul.u32 24, %s6905_s22 }
 0x2df   : > { %1354 = vperm.xlu0 %6286, %v1351_v60   ;;  %s6912_s2 = scalar_lea.vmem [#allocation8], %s6148_s1  ;;  %s7783_s1 = smov 91  }
 0x2e1   : > { %1337 = vrot.lane.b32.xlu1 %v1329_v61, %s7766_s26 }
 0x2e3   : > { %6287 = vset.pattern.permute.xlu0 %v6440_v1 }
 0x2e4   : > { %1491 = vperm.xlu0 %6287, %v6859_v62  }
 0x2e5   : > { %1515 = vperm.xlu1 %6288, %v6859_v62  }
 0x2e8   : > { %6290 = vset.pattern.permute.xlu0 %v6446_v8 }
 0x2e9   : > { %6289 = vset.pattern.permute.xlu1 %v6441_v2  ;;  %1563 = vperm.xlu0 %6290, %v6859_v62  }
 0x2ea   : > { %1539 = vperm.xlu1 %6289, %v6859_v62  }
 0x2ed   : > { %6292 = vset.pattern.permute.xlu0 %v6448_v10 }
 0x2ee   : > { %1611 = vperm.xlu0 %6292, %v6859_v62   ;;  %6291 = vset.pattern.permute.xlu1 %v6447_v9 }
 0x2f2   : > { %6295 = vset.pattern.permute.xlu0 %v6442_v3 }
 0x2f3   : > { %1484 = vperm.xlu0 %6295, %v6859_v62  }
 0x31f   : > { %v1190_v13 = vpop.permute.xlu1 %1189 }
 0x320   : > { %v1166_v63 = vpop.permute.xlu0 %1165 }
 0x324   : > { %v1214_v7 = vpop.permute.xlu0 %1213 }
 0x325   : > { %v1238_v17 = vpop.permute.xlu1 %1237 }
 0x329   : > { %v1262_v16 = vpop.permute.xlu0 %1261 }
 0x32d   : > { %v1310_v18 = vpop.permute.xlu0 %1309 }
 0x32e   : > { %v1286_v19 = vpop.permute.xlu1 %1285 }
 0x331   : > { %v1170_v20 = vpop.permute.xlu0 %1169 }
 0x332   : > { %v1178_v34 = vadd.f32 %v1170_v20, %v1154_v31 }
 0x333   : > { %v1334_v21 = vpop.permute.xlu1 %1333 }
 0x335   : > { %v1192_v22 = vpop.permute.xlu0 %1191 }
 0x336   : > { %v1195_v36 = vsel %vm775_vm10, %v1190_v13, %v1192_v22 }
 0x337   : > { %v1168_v23 = vpop.permute.xlu1 %1167 }
 0x338   : > { %v1171_v27 = vsel %vm747_vm9, %v1166_v63, %v1168_v23  ;;  %v1172_v41 = vsel %vm747_vm9, %v1168_v23, %v1170_v20 }
 0x339   : > { %v1218_v24 = vpop.permute.xlu0 %1217  ;;  %v1176_v32 = vadd.f32 %v1171_v27, %v1152_v29  ;;  %v1177_v46 = vadd.f32 %v1172_v41, %v1153_v42 }
 0x33b   : > { %v1194_v25 = vpop.permute.xlu1 %1193  ;;  %v1200_v15 = vadd.f32 %v1195_v36, %v1176_v32 }
 0x33c   : > { %v1202_v37 = vadd.f32 %v1194_v25, %v1178_v34  ;;  %v1196_v45 = vsel %vm775_vm10, %v1192_v22, %v1194_v25 }
 0x33d   : > { %v1240_v30 = vpop.permute.xlu0 %1239  ;;  %v1201_v52 = vadd.f32 %v1196_v45, %v1177_v46 }
 0x33e   : > { %v1226_v40 = vadd.f32 %v1218_v24, %v1202_v37  ;;  %v1243_v48 = vsel %vm831_vm12, %v1238_v17, %v1240_v30 }
 0x33f   : > { %v1216_v33 = vpop.permute.xlu1 %1215 }
 0x340   : > { %v1219_v38 = vsel %vm803_vm11, %v1214_v7, %v1216_v33  ;;  %v1220_v49 = vsel %vm803_vm11, %v1216_v33, %v1218_v24 }
 0x341   : > { %v1266_v35 = vpop.permute.xlu0 %1265  ;;  %v1224_v43 = vadd.f32 %v1219_v38, %v1200_v15  ;;  %v1225_v44 = vadd.f32 %v1220_v49, %v1201_v52 }
 0x343   : > { %v1242_v39 = vpop.permute.xlu1 %1241  ;;  %v1248_v53 = vadd.f32 %v1243_v48, %v1224_v43 }
 0x344   : > { %v1250_v50 = vadd.f32 %v1242_v39, %v1226_v40  ;;  %v1244_v56 = vsel %vm831_vm12, %v1240_v30, %v1242_v39 }
 0x345   : > { %v1288_v26 = vpop.permute.xlu0 %1287  ;;  %v1249_v61 = vadd.f32 %v1244_v56, %v1225_v44 }
 0x346   : > { %v1274_v60 = vadd.f32 %v1266_v35, %v1250_v50  ;;  %v1291_v63 = vsel %vm7771_vm0, %v1286_v19, %v1288_v26  ;;  %vm1357_vm0 = vcmask 64512  }
 0x347   : > { %v1264_v47 = vpop.permute.xlu1 %1263 }
 0x348   : > { %v1267_v51 = vsel %vm7769_vm14, %v1262_v16, %v1264_v47  ;;  %v1268_v59 = vsel %vm7770_vm15, %v1264_v47, %v1266_v35  ;;  %vm7778_vm14 = vmmov %vm7777_vm7 }
 0x349   : > { %v1314_v55 = vpop.permute.xlu0 %1313  ;;  %v1272_v57 = vadd.f32 %v1267_v51, %v1248_v53  ;;  %v1273_v13 = vadd.f32 %v1268_v59, %v1249_v61  ;;  %vm7779_vm15 = vmmov %vm7777_vm7 }
 0x34b   : > { %v1290_v58 = vpop.permute.xlu1 %1289  ;;  %v1296_v16 = vadd.f32 %v1291_v63, %v1272_v57 }
 0x34c   : > { %v1292_v6 = vsel %vm7772_vm3, %v1288_v26, %v1290_v58  ;;  %v1298_v7 = vadd.f32 %v1290_v58, %v1274_v60  ;;  %vm7781_vm3 = vmmov 0  }
 0x34d   : > { %v1336_v17 = vpop.permute.xlu0 %1335  ;;  %v1297_v24 = vadd.f32 %v1292_v6, %v1273_v13 }
 0x34e   : > { %v1339_v27 = vsel %vm7775_vm6, %v1334_v21, %v1336_v17  ;;  %v1322_v29 = vadd.f32 %v1314_v55, %v1298_v7  ;;  %v1347_v21 = vld [vmem:[%s7780_s29] sm:$0xf]  ;;  %vm7788_vm6 = vcmask 744448   ;;  %s6466_s29 = smov 4  }
 0x34f   : > { %v1312_v20 = vpop.permute.xlu1 %1311 }
 0x350   : > { %v1315_v22 = vsel %vm7773_vm4, %v1310_v18, %v1312_v20  ;;  %v1316_v23 = vsel %vm7774_vm5, %v1312_v20, %v1314_v55  ;;  %vm1459_vm4 = vcmask 261120   ;;  %vm7787_vm5 = vcmask 752640  }
 0x351   : > { %v1320_v25 = vadd.f32 %v1315_v22, %v1296_v16  ;;  %v1321_v30 = vadd.f32 %v1316_v23, %v1297_v24 }
 0x353   : > { %v1338_v31 = vpop.permute.xlu1 %1337  ;;  %v1344_v32 = vadd.f32 %v1339_v27, %v1320_v25 }
 0x354   : > { %v1340_v19 = vsel %vm7776_vm2, %v1336_v17, %v1338_v31  ;;  %v1346_v33 = vadd.f32 %v1338_v31, %v1322_v29 }
 0x355   : > { %v1345_v34 = vadd.f32 %v1340_v19, %v1321_v30  ;;  %v1348_v35 = vpack.c.bf16 %v1344_v32, %v1344_v32 }
 0x356   : > { %v1350_v36 = vpack.c.bf16 %v1346_v33, %v1346_v33 }
 0x357   : > { %v1349_v37 = vpack.c.bf16 %v1345_v34, %v1345_v34  ;;  %v1362_v38 = vsel %vm7779_vm15, %v1348_v35, 0 }
 0x358   : > { %v1368_v18 = vsel %vm7777_vm7, %v1350_v36, 0  ;;  %v1682_v36 = vld [vmem:[%s7680_s10] sm:$0xff]  ;;  %vm7792_vm7 = vmmov %vm7788_vm6 }
 0x359   : > { %5626 = vmatprep.subr.msk.bf16.mxu0 %vm7778_vm14, %v1349_v37  ;;  %5832 = vmatpush3.bf16.msra.mxu1 %v1368_v18  ;;  %v1683_v37 = vld [vmem:[%s7680_s10 + $0x8] sm:$0xff]  ;;  %v6461_v18 = vmov 0.0|0.0   ;;  %vm7793_vm14 = vmmov %vm7776_vm2 }
 0x35a   : > { %1371 = vmatpush1.bf16.msra.mxu0 %v1362_v38  ;;  %v6984_v38 = vpack.c.bf16 %v1683_v37, %v1682_v36  ;;  %6096 = vmatprep.subr.bf16.mxu1 %v6461_v18 }
 0x35b   : > { %6093 = vmatprep.subr.bf16.mxu0 %v6461_v18 }
 0x35c   : > { %5834 = vmatmul.mubr.msk.bf16.vlgmr.msra.gmra.mrb[4].mxu1 %vm1357_vm0, %v1347_v21 }
 0x35d   : > { %5627 = vmatmul.mubr.msk.bf16.vlgmr.msra.gmra.mrb[4].mxu0 %vm1357_vm0, %v1347_v21  ;;  %5852 = vmatprep.mubr.msk.f32.mxu1 %vm7781_vm3, %v6443_v4 }
 0x35e   : > { %5843 = vmatprep.mubr.msk.f32.mxu0 %vm7781_vm3, %v6443_v4  ;;  %v1355_v15 = vpop.permute.xlu0 %1354  ;;  %6095 = vmatpush3.bf16.msra.mxu0 %v6984_v38 }
 0x35f   : > { %6098 = vmatpush3.bf16.msra.mxu1 %v6984_v38  ;;  %5841 = vmatprep.subr.mxu0 %v6443_v4 }
 0x360   : > { %5850 = vmatprep.subr.mxu1 %v6443_v4 }
 0x363   : > { %v1492_v58 = vpop.permute.xlu0 %1491 }
 0x368   : > { %v1564_v63 = vpop.permute.xlu0 %1563 }
 0x36d   : > { %v1612_v17 = vpop.permute.xlu0 %1611 }
 0x42f   : > { %v1445_v39 = vpop.f32.mrb[4].mxu1 }
 0x430   : > { %v1404_v41 = vpop.f32.mrb[4].mxu0  ;;  %v1446_v42 = vadd.f32 %v1445_v39, %v1355_v15  ;;  %v5835_v43 = vpop.f32.mrb[5].mxu1  ;;  %v6996_v39 = vld [vmem:[%s7680_s10 + $0x10] sm:$0x3] }
 0x431   : > { %v1405_v26 = vadd.f32 %v1404_v41, %v1355_v15  ;;  %v1406_v45 = vpop.f32.mrb[5].mxu0  ;;  %v1448_v40 = vpop.f32.mrb[6].mxu1 }
 0x432   : > { %v1453_v46 = vmax.f32 %v1446_v42, 0.0  ;;  %v1407_v47 = vadd.f32 %v1406_v45, %v1355_v15  ;;  %v1408_v48 = vpop.f32.mrb[6].mxu0  ;;  %v5836_v49 = vpop.f32.mrb[7].mxu1 }
 0x433   : > { %v1451_v50 = vmax.f32 %v1405_v26, 0.0  ;;  %v1409_v51 = vpop.f32.mrb[7].mxu0 }
 0x434   : > { %v1456_v52 = vmul.f32 %v6767_v54, %v1453_v46  ;;  %v1452_v53 = vmax.f32 %v1407_v47, 0.0  ;;  %v6933_v54 = vpop.permute.xlu1 %1515  ;;  %v1485_v47 = vpop.permute.xlu0 %1484 }
 0x435   : > { %v6910_v55 = vmul.f32 %v6774_v0, %v1451_v50 }
 0x436   : > { %1460 = vst.msk [vmem:[%s6912_s2 + $0x10] sm:$0xff] %vm1459_vm4, %v1456_v52  ;;  %v6916_v56 = vmul.f32 %v6777_v14, %v1452_v53 }
 0x437   : > { %1457 = vst [vmem:[%s6912_s2] sm:$0xff] %v6910_v55  ;;  %1464 = vrot.lane.b32.xlu1 %v6910_v55, %s7782_s27 }
 0x438   : > { %1458 = vst [vmem:[%s6912_s2 + $0x8] sm:$0xff] %v6916_v56  ;;  %v1540_v0 = vpop.permute.xlu1 %1539 }
 0x43b   : > { %1466 = vrot.lane.b32.xlu1 %v6916_v56, %s7782_s27 }
 0x43f   : > { %1587 = vperm.xlu1 %6291, %v6859_v62  }
 0x443   : > { %1468 = vrot.lane.b32.xlu1 %v1456_v52, %s7782_s27  ;;  %s6467_s27 = smov 40  }
 0x444   : > { %6293 = vset.pattern.permute.xlu1 %v6449_v11 }
 0x447   : > { %1635 = vperm.xlu1 %6293, %v6859_v62  }
 0x44b   : > { %6294 = vset.pattern.permute.xlu1 %v6450_v12 }
 0x44c   : > { %1659 = vperm.xlu1 %6294, %v6859_v62  }
 0x450   : > { %6296 = vset.pattern.permute.xlu1 %v6442_v3 }
 0x4a9   : > { %v1465_v14 = vpop.permute.xlu1 %1464 }
 0x4aa   : > { %1475 = vst.msk [vmem:[#allocation3] sm:$0xff] %vm1138_vm8, %v1465_v14 }
 0x4ad   : > { %v1467_v44 = vpop.permute.xlu1 %1466 }
 0x4ae   : > { %v6937_v57 = vsel %vm678_vm1, %v1465_v14, %v1467_v44 }
 0x4af   : > { %v1495_v27 = vmul.f32 %v1492_v58, %v6937_v57  ;;  %v1519_v31 = vmul.f32 %v6933_v54, %v6937_v57  ;;  %v1543_v19 = vmul.f32 %v1540_v0, %v6937_v57  ;;  %v1567_v34 = vmul.f32 %v1564_v63, %v6937_v57 }
 0x4b0   : > { %v1615_v41 = vmul.f32 %v1612_v17, %v6937_v57 }
 0x4b1   : > { %v6939_v59 = vld [vmem:[#allocation3] sm:$0xff] }
 0x4b2   : > { %v1518_v60 = vmul.f32 %v6933_v54, %v6939_v59  ;;  %v1494_v62 = vmul.f32 %v1492_v58, %v6939_v59  ;;  %v1542_v61 = vmul.f32 %v1540_v0, %v6939_v59  ;;  %v1566_v6 = vmul.f32 %v1564_v63, %v6939_v59 }
 0x4b3   : > { %v1614_v22 = vmul.f32 %v1612_v17, %v6939_v59 }
 0x4b4   : > { %1524 = vrot.lane.b32.xlu0 %v1518_v60, %s7760_s28  ;;  %1500 = vrot.lane.b32.xlu1 %v1494_v62, %s7761_s4  ;;  %v1487_v62 = vmul.f32 %v1485_v47, %v6939_v59 }
 0x4b8   : > { %1548 = vrot.lane.b32.xlu0 %v1542_v61, %s7762_s23 }
 0x4bc   : > { %1572 = vrot.lane.b32.xlu0 %v1566_v6, %s7763_s0 }
 0x4be   : > { %v1588_v7 = vpop.permute.xlu1 %1587 }
 0x4bf   : > { %v1590_v13 = vmul.f32 %v1588_v7, %v6939_v59  ;;  %v1591_v21 = vmul.f32 %v1588_v7, %v6937_v57 }
 0x4c1   : > { %1596 = vrot.lane.b32.xlu0 %v1590_v13, %s7764_s24 }
 0x4c2   : > { %v1469_v16 = vpop.permute.xlu1 %1468 }
 0x4c3   : > { %v1471_v20 = vsel %vm678_vm1, %v1467_v44, %v1469_v16  ;;  %vm7784_vm1 = vcmask 1041408  }
 0x4c4   : > { %1477 = vst.msk [vmem:[#allocation3 + $0x10] sm:$0xff] %vm1141_vm13, %v1471_v20  ;;  %5842 = vmatpush3.msk.msra.mxu0 %vm7784_vm1, %v6996_v39  ;;  %vm7785_vm8 = vmmov %vm7784_vm1  ;;  %vm7786_vm13 = vcmask 883712  }
 0x4c5   : > { %1620 = vrot.lane.b32.xlu0 %v1614_v22, %s7765_s30  ;;  %5851 = vmatpush3.msk.msra.mxu1 %vm7785_vm8, %v6996_v39  ;;  %vm7794_vm15 = vmmov %vm7784_vm1 }
 0x4c6   : > { %v1636_v23 = vpop.permute.xlu1 %1635  ;;  %6099 = vmatprep.subr.bf16.mxu0 %v6461_v18  ;;  %6102 = vmatprep.subr.bf16.mxu1 %v6461_v18  ;;  %vm7795_vm4 = vmmov %vm7784_vm1 }
 0x4c7   : > { %v1638_v24 = vmul.f32 %v1636_v23, %v6939_v59  ;;  %v1639_v33 = vmul.f32 %v1636_v23, %v6937_v57  ;;  %vm7796_vm8 = vmmov %vm7784_vm1 }
 0x4c9   : > { %1644 = vrot.lane.b32.xlu1 %v1638_v24, %s7783_s1 }
 0x4cb   : > { %v1660_v25 = vpop.permute.xlu1 %1659  ;;  %v6960_v30 = vld [vmem:[#allocation3 + $0x10] sm:$0xff] }
 0x4cc   : > { %v1662_v29 = vmul.f32 %v1660_v25, %v6939_v59  ;;  %v1496_v32 = vmul.f32 %v1492_v58, %v6960_v30  ;;  %v1544_v35 = vmul.f32 %v1540_v0, %v6960_v30  ;;  %v1592_v15 = vmul.f32 %v1588_v7, %v6960_v30 }
 0x4cd   : > { %1502 = vrot.lane.b32.xlu1 %v1495_v27, %s7761_s4  ;;  %v1640_v42 = vmul.f32 %v1636_v23, %v6960_v30  ;;  %v1520_v43 = vmul.f32 %v6933_v54, %v6960_v30  ;;  %v1663_v26 = vmul.f32 %v1660_v25, %v6937_v57  ;;  %v1568_v45 = vmul.f32 %v1564_v63, %v6960_v30 }
 0x4ce   : > { %1668 = vrot.lane.b32.xlu0 %v1662_v29, %s7766_s26  ;;  %v1616_v40 = vmul.f32 %v1612_v17, %v6960_v30  ;;  %v1664_v46 = vmul.f32 %v1660_v25, %v6960_v30 }
 0x4d1   : > { %1526 = vrot.lane.b32.xlu1 %v1519_v31, %s7760_s28 }
 0x4d2   : > { %1504 = vrot.lane.b32.xlu0 %v1496_v32, %s7761_s4  ;;  %v1488_v32 = vmul.f32 %v1485_v47, %v6937_v57 }
 0x4d5   : > { %1550 = vrot.lane.b32.xlu1 %v1543_v19, %s7762_s23  ;;  %v1489_v19 = vmul.f32 %v1485_v47, %v6960_v30 }
 0x4d6   : > { %1646 = vrot.lane.b32.xlu0 %v1639_v33, %s7783_s1 }
 0x4d9   : > { %1574 = vrot.lane.b32.xlu1 %v1567_v34, %s7763_s0 }
 0x4da   : > { %1552 = vrot.lane.b32.xlu0 %v1544_v35, %s7762_s23 }
 0x4dd   : > { %1598 = vrot.lane.b32.xlu1 %v1591_v21, %s7764_s24 }
 0x4de   : > { %1600 = vrot.lane.b32.xlu0 %v1592_v15, %s7764_s24 }
 0x4e1   : > { %1622 = vrot.lane.b32.xlu1 %v1615_v41, %s7765_s30 }
 0x4e2   : > { %1648 = vrot.lane.b32.xlu0 %v1640_v42, %s7783_s1  ;;  %s7727_s1 = smov 112  }
 0x4e5   : > { %1528 = vrot.lane.b32.xlu1 %v1520_v43, %s7760_s28 }
 0x4e9   : > { %1670 = vrot.lane.b32.xlu1 %v1663_v26, %s7766_s26 }
 0x4ed   : > { %1576 = vrot.lane.b32.xlu1 %v1568_v45, %s7763_s0  ;;  %s6464_s0 = smov 76  }
 0x4f1   : > { %1624 = vrot.lane.b32.xlu1 %v1616_v40, %s7765_s30 }
 0x4f5   : > { %1672 = vrot.lane.b32.xlu1 %v1664_v46, %s7766_s26  ;;  %s6462_s26 = smov 56  }
 0x526   : > { %v1525_v48 = vpop.permute.xlu0 %1524  ;;  %v1501_v51 = vpop.permute.xlu1 %1500 }
 0x52a   : > { %v1549_v49 = vpop.permute.xlu0 %1548 }
 0x52e   : > { %v1573_v50 = vpop.permute.xlu0 %1572 }
 0x533   : > { %v1597_v52 = vpop.permute.xlu0 %1596 }
 0x537   : > { %v1621_v0 = vpop.permute.xlu0 %1620 }
 0x53b   : > { %v1645_v53 = vpop.permute.xlu1 %1644 }
 0x53f   : > { %v1503_v54 = vpop.permute.xlu1 %1502 }
 0x540   : > { %v1669_v44 = vpop.permute.xlu0 %1668  ;;  %v1506_v60 = vsel %vm747_vm9, %v1501_v51, %v1503_v54 }
 0x541   : > { %v1511_v7 = vadd.f32 %v1506_v60, %v1487_v62 }
 0x543   : > { %v1527_v14 = vpop.permute.xlu1 %1526 }
 0x544   : > { %v1505_v61 = vpop.permute.xlu0 %1504  ;;  %v1530_v6 = vsel %vm775_vm10, %v1525_v48, %v1527_v14 }
 0x545   : > { %v1535_v17 = vadd.f32 %v1530_v6, %v1511_v7  ;;  %v1507_v31 = vsel %vm747_vm9, %v1503_v54, %v1505_v61  ;;  %v1513_v21 = vadd.f32 %v1505_v61, %v1489_v19  ;;  %vm1685_vm9 = vcmask 146432  }
 0x546   : > { %v1512_v37 = vadd.f32 %v1507_v31, %v1488_v32 }
 0x547   : > { %v1551_v58 = vpop.permute.xlu1 %1550 }
 0x548   : > { %v1554_v13 = vsel %vm803_vm11, %v1549_v49, %v1551_v58  ;;  %v1647_v23 = vpop.permute.xlu0 %1646 }
 0x549   : > { %v1559_v22 = vadd.f32 %v1554_v13, %v1535_v17  ;;  %v1650_v15 = vsel %vm7788_vm6, %v1645_v53, %v1647_v23  ;;  %vm1762_vm6 = vcmask 80896  }
 0x54b   : > { %v1575_v63 = vpop.permute.xlu1 %1574 }
 0x54c   : > { %v1578_v20 = vsel %vm831_vm12, %v1573_v50, %v1575_v63  ;;  %v1553_v33 = vpop.permute.xlu0 %1552 }
 0x54d   : > { %v1583_v25 = vadd.f32 %v1578_v20, %v1559_v22  ;;  %v1555_v57 = vsel %vm803_vm11, %v1551_v58, %v1553_v33  ;;  %vm7790_vm11 = vmmov %vm7787_vm5 }
 0x54f   : > { %v1599_v16 = vpop.permute.xlu1 %1598 }
 0x550   : > { %v1602_v24 = vsel %vm7786_vm13, %v1597_v52, %v1599_v16  ;;  %v1601_v40 = vpop.permute.xlu0 %1600 }
 0x551   : > { %v1607_v59 = vadd.f32 %v1602_v24, %v1583_v25 }
 0x553   : > { %v1623_v27 = vpop.permute.xlu1 %1622 }
 0x554   : > { %v1626_v29 = vsel %vm7787_vm5, %v1621_v0, %v1623_v27  ;;  %v1649_v53 = vpop.permute.xlu0 %1648  ;;  %vm7798_vm5 = vcmask 31744  }
 0x555   : > { %v1631_v34 = vadd.f32 %v1626_v29, %v1607_v59  ;;  %v1651_v60 = vsel %vm7792_vm7, %v1647_v23, %v1649_v53  ;;  %vm2243_vm7 = vcmask 572896  }
 0x557   : > { %v1529_v35 = vpop.permute.xlu1 %1528  ;;  %v1655_v43 = vadd.f32 %v1650_v15, %v1631_v34 }
 0x558   : > { %v1531_v36 = vsel %vm775_vm10, %v1527_v14, %v1529_v35  ;;  %v1537_v42 = vadd.f32 %v1529_v35, %v1513_v21  ;;  %vm7789_vm10 = vmmov %vm7786_vm13 }
 0x559   : > { %v1536_v41 = vadd.f32 %v1531_v36, %v1512_v37  ;;  %v1603_v52 = vsel %vm7789_vm10, %v1599_v16, %v1601_v40  ;;  %vm7797_vm13 = vmmov %vm7784_vm1  ;;  %vm2002_vm10 = vcmask 326896  }
 0x55a   : > { %v1561_v47 = vadd.f32 %v1553_v33, %v1537_v42 }
 0x55b   : > { %v1671_v26 = vpop.permute.xlu1 %1670  ;;  %v1560_v30 = vadd.f32 %v1555_v57, %v1536_v41 }
 0x55c   : > { %v1674_v45 = vsel %vm7776_vm2, %v1669_v44, %v1671_v26  ;;  %vm1842_vm2 = vcmask 162896  }
 0x55d   : > { %v1679_v46 = vadd.f32 %v1674_v45, %v1655_v43  ;;  %v2333_v45 = vld [vmem:[%s7799_s9] sm:$0xff] }
 0x55f   : > { %1844 = vrot.lane.b32.xlu1 %v1679_v46, %s6462_s26  ;;  %1764 = vrot.lane.b32.xlu0 %v1679_v46, %s7765_s30  ;;  %v1577_v48 = vpop.permute.xlu1 %1576  ;;  %s6463_s30 = smov 20   ;;  %s6470_s26 = smov 50  }
 0x560   : > { %5844 = vmatmul.mubr.msk.f32.vlgmr.msra.gmra.mrb[8].mxu0 %vm1685_vm9, %v1679_v46  ;;  %v1579_v49 = vsel %vm831_vm12, %v1575_v63, %v1577_v48  ;;  %v1585_v51 = vadd.f32 %v1577_v48, %v1561_v47  ;;  %vm7791_vm12 = vmmov %vm7784_vm1 }
 0x561   : > { %v1584_v50 = vadd.f32 %v1579_v49, %v1560_v30  ;;  %6101 = vmatpush3.bf16.msra.mxu0 %v6984_v38  ;;  %5861 = vmatprep.mubr.msk.f32.mxu0 %vm7781_vm3, %v6443_v4 }
 0x562   : > { %5859 = vmatprep.subr.mxu0 %v6443_v4  ;;  %v1609_v44 = vadd.f32 %v1601_v40, %v1585_v51  ;;  %v7110_v40 = vld [vmem:[%s7681_s11] sm:$0xff] }
 0x563   : > { %1924 = vrot.lane.b32.xlu0 %v1679_v46, %s6463_s30  ;;  %v1608_v54 = vadd.f32 %v1603_v52, %v1584_v50  ;;  %v1625_v0 = vpop.permute.xlu1 %1624  ;;  %v7116_v46 = vld [vmem:[%s7681_s11 + $0x8] sm:$0xff]  ;;  %v2684_v50 = vpack.c.bf16 %v6916_v56, %v6916_v56  ;;  %v6312_v51 = vld [vmem:[%s7801_s8] sm:$0xff]   ;;  %v2683_v52 = vpack.c.bf16 %v6910_v55, %v6910_v55  ;;  %s6483_s8 = smov 68  }
 0x564   : > { %v1627_v14 = vsel %vm7790_vm11, %v1623_v27, %v1625_v0  ;;  %v1633_v6 = vadd.f32 %v1625_v0, %v1609_v44  ;;  %vm2083_vm11 = vcmask 408896  }
 0x565   : > { %v1632_v58 = vadd.f32 %v1627_v14, %v1608_v54  ;;  %5860 = vmatpush3.msk.msra.mxu0 %vm7791_vm12, %v6996_v39  ;;  %vm2163_vm12 = vcmask 490896   ;;  %v7149_v55 = vmul.u32.u64.low 3435973837, %v6743_v28  ;;  %v7150_v56 = vmul.u32.u64.high 3435973837, %v6743_v28, %v7149_v55 }
 0x566   : > { %6105 = vmatprep.subr.bf16.mxu0 %v6461_v18  ;;  %v1657_v13 = vadd.f32 %v1649_v53, %v1633_v6 }
 0x567   : > { %v1656_v62 = vadd.f32 %v1651_v60, %v1632_v58  ;;  %v1673_v61 = vpop.permute.xlu1 %1672  ;;  %v2405_v54 = vshrl.u32 %v7150_v56, 3 }
 0x568   : > { %v1675_v63 = vsel %vm7793_vm14, %v1671_v26, %v1673_v61  ;;  %v1681_v17 = vadd.f32 %v1673_v61, %v1657_v13  ;;  %v2334_v26 = vld [vmem:[%s7799_s9 + $0x8] sm:$0xff]  ;;  %vm2327_vm14 = vcmask 654896  }
 0x569   : > { %v1680_v7 = vadd.f32 %v1675_v63, %v1656_v62  ;;  %v2406_v0 = vmul.u32 10, %v2405_v54 }
 0x56b   : > { %2085 = vrot.lane.b32.xlu0 %v1680_v7, %s6464_s0  ;;  %2005 = vrot.lane.b32.xlu1 %v1680_v7, %s7727_s1  ;;  %s6471_s0 = smov 60   ;;  %v2407_v14 = vsub.s32 %v6743_v28, %v2406_v0  ;;  %s6482_s1 = smov 58  }
 0x56d   : > { %v2413_v44 = vadd.s32 10, %v2407_v14 }
 0x56f   : > { %2246 = vrot.lane.b32.xlu0 %v1680_v7, %s6466_s29  ;;  %2165 = vrot.lane.b32.xlu1 %v1680_v7, %s6467_s27 }
 0x573   : > { %2248 = vrot.lane.b32.xlu1 %v1681_v17, %s6466_s29  ;;  %s6472_s29 = smov 70  }
 0x5d1   : > { %v1765_v16 = vpop.permute.xlu0 %1764  ;;  %v1845_v20 = vpop.permute.xlu1 %1844 }
 0x5d2   : > { %5853 = vmatmul.mubr.msk.f32.vlgmr.msra.gmra.mrb[8].mxu1 %vm1685_vm9, %v1765_v16  ;;  %5862 = vmatmul.mubr.msk.f32.vlgmr.msra.gmra.mrb[10].mxu0 %vm1685_vm9, %v1845_v20 }
 0x5d3   : > { %6104 = vmatpush3.bf16.msra.mxu1 %v6984_v38  ;;  %5870 = vmatprep.mubr.msk.f32.mxu1 %vm7781_vm3, %v6443_v4 }
 0x5d4   : > { %5868 = vmatprep.subr.mxu1 %v6443_v4  ;;  %6107 = vmatpush3.bf16.msra.mxu0 %v6984_v38 }
 0x5d5   : > { %v1925_v22 = vpop.permute.xlu0 %1924  ;;  %5877 = vmatprep.subr.mxu0 %v6443_v4  ;;  %5879 = vmatprep.mubr.msk.f32.mxu0 %vm7781_vm3, %v6443_v4 }
 0x5d7   : > { %5869 = vmatpush3.msk.msra.mxu1 %vm7794_vm15, %v6996_v39  ;;  %vm7800_vm15 = vcmask 1043456  }
 0x5d8   : > { %5871 = vmatmul.mubr.msk.f32.vlgmr.msra.gmra.mrb[10].mxu1 %vm1685_vm9, %v1925_v22  ;;  %6108 = vmatprep.subr.bf16.mxu1 %v6461_v18 }
 0x5d9   : > { %6110 = vmatpush3.bf16.msra.mxu1 %v6984_v38  ;;  %5878 = vmatpush3.msk.msra.mxu0 %vm7795_vm4, %v6996_v39  ;;  %vm7802_vm4 = vmmov %vm7800_vm15 }
 0x5da   : > { %5886 = vmatprep.subr.mxu1 %v6443_v4  ;;  %5888 = vmatprep.mubr.msk.f32.mxu1 %vm7781_vm3, %v6443_v4 }
 0x5db   : > { %6111 = vmatprep.subr.bf16.mxu0 %v6461_v18 }
 0x5dd   : > { %5887 = vmatpush3.msk.msra.mxu1 %vm7784_vm1, %v6996_v39  ;;  %v2086_v23 = vpop.permute.xlu0 %2085  ;;  %v2006_v24 = vpop.permute.xlu1 %2005  ;;  %vm7803_vm1 = vmmov %vm7802_vm4 }
 0x5de   : > { %5880 = vmatmul.mubr.msk.f32.vlgmr.msra.gmra.mrb[12].mxu0 %vm1685_vm9, %v2006_v24  ;;  %5889 = vmatmul.mubr.msk.f32.vlgmr.msra.gmra.mrb[12].mxu1 %vm1685_vm9, %v2086_v23  ;;  %v2696_v53 = vsel %vm7803_vm1, %v2683_v52, 0  ;;  %v2876_v52 = vld [vmem:[%s7687_s17 + $0x10] sm:$0xff] }
 0x5df   : > { %6113 = vmatpush3.bf16.msra.mxu0 %v6984_v38  ;;  %6114 = vmatprep.subr.bf16.mxu1 %v6461_v18 }
 0x5e0   : > { %5895 = vmatprep.subr.mxu0 %v6443_v4  ;;  %5897 = vmatprep.mubr.msk.f32.mxu0 %vm7781_vm3, %v6443_v4 }
 0x5e1   : > { %v2166_v25 = vpop.permute.xlu1 %2165  ;;  %6116 = vmatpush3.bf16.msra.mxu1 %v6984_v38  ;;  %5906 = vmatprep.mubr.msk.f32.mxu1 %vm7781_vm3, %v6443_v4  ;;  %v2247_v18 = vpop.permute.xlu0 %2246 }
 0x5e2   : > { %5904 = vmatprep.subr.mxu1 %v6443_v4 }
 0x5e3   : > { %5896 = vmatpush3.msk.msra.mxu0 %vm7796_vm8, %v6996_v39  ;;  %vm682_vm8 = vcmask 89088  }
 0x5e4   : > { %5898 = vmatmul.mubr.msk.f32.vlgmr.msra.gmra.mrb[14].mxu0 %vm1685_vm9, %v2166_v25  ;;  %5909 = vmatprep.subr.bf16.mxu0 %v6443_v4  ;;  %683 = vst.msk [vmem:[#allocation4] sm:$0xff] %vm682_vm8, %v6443_v4  ;;  %684 = vst.msk [vmem:[#allocation4 + $0x8] sm:$0xff] %vm682_vm8, %v6443_v4  ;;  %vm2859_vm8 = vcmask 818176  }
 0x5e5   : > { %v2249_v27 = vpop.permute.xlu1 %2248  ;;  %5905 = vmatpush3.msk.msra.mxu1 %vm7797_vm13, %v6996_v39  ;;  %5911 = vmatprep.mubr.msk.bf16.mxu0 %vm7781_vm3, %v6443_v4  ;;  %vm685_vm13 = vcmask 900824  }
 0x5e6   : > { %v2250_v38 = vsel %vm7798_vm5, %v2247_v18, %v2249_v27  ;;  %5915 = vmatprep.subr.bf16.mxu1 %v6443_v4  ;;  %686 = vst.msk [vmem:[#allocation4] sm:$0xff] %vm685_vm13, %v6443_v4  ;;  %687 = vst.msk [vmem:[#allocation4 + $0x8] sm:$0xff] %vm685_vm13, %v6443_v4  ;;  %vm2410_vm5 = vcmp.ne.s32.totalorder %v2407_v14, 0  ;;  %vm2825_vm13 = vcmask 932864  }
 0x5e7   : > { %5907 = vmatmul.mubr.msk.f32.vlgmr.msra.gmra.mrb[14].mxu1 %vm1685_vm9, %v2250_v38  ;;  %vm1922_vm9 = vcmask 244896  }
 0x5e8   : > { %5917 = vmatprep.mubr.msk.bf16.mxu1 %vm7781_vm3, %v6443_v4 }
 0x633   : > { %v1758_v29 = vpop.f32.mrb[8].mxu0 }
 0x634   : > { %1763 = vst.msk [vmem:[#allocation5] sm:$0xff] %vm1762_vm6, %v1758_v29  ;;  %v5845_v59 = vpop.f32.mrb[9].mxu0  ;;  %vm2411_vm6 = vcmp.lt.s32.totalorder %v2407_v14, 0 }
 0x6a5   : > { %v1834_v31 = vpop.f32.mrb[8].mxu1  ;;  %v1914_v32 = vpop.f32.mrb[10].mxu0 }
 0x6a6   : > { %v5854_v19 = vpop.f32.mrb[9].mxu1  ;;  %1839 = vrot.lane.b32.xlu0 %v1834_v31, %s6468_s6  ;;  %1919 = vrot.lane.b32.xlu1 %v1914_v32, %s6463_s30  ;;  %v5863_v39 = vpop.f32.mrb[11].mxu0  ;;  %s6473_s6 = smov 11   ;;  %s7805_s30 = smov 118  }
 0x6ab   : > { %v1994_v33 = vpop.f32.mrb[10].mxu1 }
 0x6ac   : > { %v5872_v34 = vpop.f32.mrb[11].mxu1  ;;  %1999 = vrot.lane.b32.xlu0 %v1994_v33, %s6469_s7  ;;  %s7730_s7 = smov 118  }
 0x6b1   : > { %v2075_v35 = vpop.f32.mrb[12].mxu0  ;;  %v2155_v36 = vpop.f32.mrb[12].mxu1 }
 0x6b2   : > { %2160 = vrot.lane.b32.xlu0 %v2155_v36, %s6470_s26  ;;  %v5890_v37 = vpop.f32.mrb[13].mxu1  ;;  %2080 = vrot.lane.b32.xlu1 %v2075_v35, %s6467_s27  ;;  %v5881_v21 = vpop.f32.mrb[13].mxu0  ;;  %s7729_s27 = smov 116   ;;  %s6477_s26 = smov 107  }
 0x6b7   : > { %v2235_v15 = vpop.f32.mrb[14].mxu0 }
 0x6b8   : > { %2240 = vrot.lane.b32.xlu1 %v2235_v15, %s6471_s0  ;;  %v5899_v41 = vpop.f32.mrb[15].mxu0  ;;  %s7732_s0 = smov 106  }
 0x6ba   : > { %v2319_v42 = vpop.f32.mrb[14].mxu1 }
 0x6bb   : > { %2324 = vrot.lane.b32.xlu0 %v2319_v42, %s6472_s29  ;;  %v5908_v43 = vpop.f32.mrb[15].mxu1  ;;  %s6481_s29 = smov 88  }
 0x6bc   : > { %2337 = vperm.xlu1 %6296, %v2333_v45  }
 0x6bf   : > { %2342 = vperm.xlu0 %6295, %v2334_v26  }
 0x6c0   : > { %6297 = vset.pattern.permute.xlu1 %v6440_v1 }
 0x6c1   : > { %2448 = vperm.xlu1 %6297, %v7110_v40  }
 0x6c3   : > { %6298 = vset.pattern.permute.xlu0 %v6440_v1 }
 0x6c4   : > { %2452 = vperm.xlu0 %6298, %v7116_v46  }
 0x6c5   : > { %6299 = vset.pattern.permute.xlu1 %v6444_v5 }
 0x6c6   : > { %2468 = vperm.xlu1 %6299, %v7110_v40  }
 0x6c8   : > { %6300 = vset.pattern.permute.xlu0 %v6441_v2 }
 0x6c9   : > { %2488 = vperm.xlu0 %6300, %v7110_v40  }
 0x6ca   : > { %2472 = vperm.xlu1 %6299, %v7116_v46  }
 0x6cd   : > { %6303 = vset.pattern.permute.xlu0 %v6446_v8 }
 0x6ce   : > { %6301 = vset.pattern.permute.xlu1 %v6441_v2 }
 0x6cf   : > { %2492 = vperm.xlu1 %6301, %v7116_v46  }
 0x6d3   : > { %6302 = vset.pattern.permute.xlu1 %v6446_v8 }
 0x6d4   : > { %2508 = vperm.xlu1 %6302, %v7110_v40  }
 0x6d8   : > { %6304 = vset.pattern.permute.xlu1 %v6447_v9 }
 0x718   : > { %v1840_v1 = vpop.permute.xlu0 %1839  ;;  %v1920_v5 = vpop.permute.xlu1 %1919 }
 0x719   : > { %1843 = vst.msk [vmem:[#allocation5] sm:$0xff] %vm1842_vm2, %v1840_v1  ;;  %vm2412_vm2 = vmand %vm2411_vm6, %vm2410_vm5  ;;  %vm2828_vm5 = vcmask 1048448  }
 0x71a   : > { %1923 = vst.msk [vmem:[#allocation5] sm:$0xff] %vm1922_vm9, %v1920_v5  ;;  %v2414_v58 = vsel %vm2412_vm2, %v2413_v44, %v2407_v14 }
 0x71b   : > { %vm2415_vm9 = vcmp.lt.s32.totalorder %v2414_v58, 8 }
 0x71c   : > { %v7155_v7 = vsel %vm2415_vm9, 1.0, %v6443_v4 }
 0x71e   : > { %v2000_v57 = vpop.permute.xlu0 %1999 }
 0x71f   : > { %2003 = vst.msk [vmem:[#allocation5] sm:$0xff] %vm2002_vm10, %v2000_v57  ;;  %vm2428_vm10 = vcmask 744536  }
 0x724   : > { %v2161_v2 = vpop.permute.xlu0 %2160  ;;  %v2081_v30 = vpop.permute.xlu1 %2080 }
 0x725   : > { %2084 = vst.msk [vmem:[#allocation5] sm:$0xff] %vm2083_vm11, %v2081_v30  ;;  %vm2627_vm11 = vcmask 130048  }
 0x726   : > { %2164 = vst.msk [vmem:[#allocation5] sm:$0xff] %vm2163_vm12, %v2161_v2  ;;  %vm7804_vm12 = vmmov %vm7803_vm1  ;;  %vm2818_vm1 = vcmask 917248  }
 0x72a   : > { %v2241_v8 = vpop.permute.xlu1 %2240 }
 0x72b   : > { %2244 = vst.msk [vmem:[#allocation5] sm:$0xff] %vm2243_vm7, %v2241_v8  ;;  %vm2676_vm7 = vcmask 654336  }
 0x72d   : > { %v2325_v9 = vpop.permute.xlu0 %2324 }
 0x72e   : > { %2328 = vst.msk [vmem:[#allocation5] sm:$0xff] %vm2327_vm14, %v2325_v9  ;;  %v2610_v9 = vld [vmem:[%s7683_s13] sm:$0xff]  ;;  %vm2803_vm14 = vcmask 523648  }
 0x735   : > { %v2329_v47 = vld [vmem:[#allocation5] sm:$0xff] }
 0x736   : > { %v2332_v48 = vpack.c.bf16 %v2329_v47, %v2329_v47 }
 0x738   : > { %v2354_v49 = vsel %vm7800_vm15, %v2332_v48, 0  ;;  %v2875_v48 = vld [vmem:[%s7687_s17 + $0x8] sm:$0xff]  ;;  %vm2808_vm15 = vcmask 654848  }
 0x739   : > { %5910 = vmatpush3.bf16.msra.mxu0 %v2354_v49  ;;  %v2611_v49 = vld [vmem:[%s7683_s13 + $0x8] sm:$0xff] }
 0x73a   : > { %5650 = vmatprep.subr.msk.bf16.mxu0 %vm7802_vm4, %v2684_v50  ;;  %v2877_v50 = vld [vmem:[%s7687_s17 + $0x18] sm:$0xff]  ;;  %vm2813_vm4 = vcmask 786048  }
 0x73b   : > { %v2338_v60 = vpop.permute.xlu1 %2337 }
 0x73c   : > { %5912 = vmatmul.mubr.msk.bf16.vlgmr.msra.gmra.mrb[16].mxu0 %vm1357_vm0, %v6312_v51  ;;  %v2874_v51 = vld [vmem:[%s7687_s17] sm:$0xff] }
 0x73d   : > { %2705 = vmatpush1.bf16.msra.mxu0 %v2696_v53  ;;  %2736 = vmatprep.mubr.bf16.mxu0 %v6442_v3 }
 0x73e   : > { %v2343_v6 = vpop.permute.xlu0 %2342 }
 0x743   : > { %v2453_v18 = vpop.permute.xlu0 %2452 }
 0x748   : > { %v2489_v38 = vpop.permute.xlu0 %2488 }
 0x80f   : > { %v2390_v62 = vpop.f32.mrb[16].mxu0 }
 0x810   : > { %v2391_v61 = vadd.f32 %v2390_v62, %v2338_v60  ;;  %v5913_v63 = vpop.f32.mrb[17].mxu0 }
 0x811   : > { %v2393_v13 = vpop.f32.mrb[18].mxu0 }
 0x812   : > { %v2397_v17 = vmax.f32 %v2391_v61, 0.0  ;;  %v2394_v16 = vadd.f32 %v2393_v13, %v2343_v6  ;;  %v5914_v20 = vpop.f32.mrb[19].mxu0 }
 0x814   : > { %v2418_v28 = vmul.f32 %v7155_v7, %v2397_v17  ;;  %v2398_v22 = vmax.f32 %v2394_v16, 0.0 }
 0x816   : > { %v2419_v23 = vmul.f32 %v7155_v7, %v2398_v22  ;;  %2422 = vrot.lane.b32.xlu1 %v2418_v28, %s6473_s6 }
 0x818   : > { %2424 = vrot.lane.b32.xlu0 %v2419_v23, %s6473_s6  ;;  %s6479_s6 = smov 98  }
 0x81a   : > { %2528 = vperm.xlu1 %6304, %v7110_v40  }
 0x81c   : > { %2512 = vperm.xlu0 %6303, %v7116_v46  }
 0x81e   : > { %2532 = vperm.xlu1 %6304, %v7116_v46  }
 0x820   : > { %6305 = vset.pattern.permute.xlu0 %v6448_v10 }
 0x821   : > { %2548 = vperm.xlu0 %6305, %v7110_v40  }
 0x822   : > { %6306 = vset.pattern.permute.xlu1 %v6448_v10  ;;  %v2449_v10 = vpop.permute.xlu1 %2448 }
 0x823   : > { %2552 = vperm.xlu1 %6306, %v7116_v46  }
 0x825   : > { %6308 = vset.pattern.permute.xlu0 %v6449_v11 }
 0x826   : > { %2572 = vperm.xlu0 %6308, %v7116_v46   ;;  %v2469_v24 = vpop.permute.xlu1 %2468 }
 0x827   : > { %6307 = vset.pattern.permute.xlu1 %v6449_v11 }
 0x828   : > { %2568 = vperm.xlu1 %6307, %v7110_v40  }
 0x82a   : > { %6310 = vset.pattern.permute.xlu0 %v6442_v3  ;;  %v2473_v25 = vpop.permute.xlu1 %2472 }
 0x82b   : > { %2437 = vperm.xlu0 %6310, %v7110_v40  }
 0x82c   : > { %6309 = vset.pattern.permute.xlu1 %v6450_v12 }
 0x82d   : > { %2588 = vperm.xlu1 %6309, %v7110_v40  }
 0x82e   : > { %v2493_v11 = vpop.permute.xlu1 %2492 }
 0x831   : > { %2592 = vperm.xlu1 %6309, %v7116_v46  }
 0x832   : > { %v2509_v27 = vpop.permute.xlu1 %2508 }
 0x835   : > { %6311 = vset.pattern.permute.xlu1 %v6442_v3 }
 0x836   : > { %2442 = vperm.xlu1 %6311, %v7116_v46  }
 0x888   : > { %v2423_v29 = vpop.permute.xlu1 %2422 }
 0x889   : > { %2429 = vst.msk [vmem:[#allocation4] sm:$0xff] %vm2428_vm10, %v2423_v29 }
 0x88a   : > { %v2425_v59 = vpop.permute.xlu0 %2424 }
 0x88b   : > { %2430 = vst.msk [vmem:[#allocation4 + $0x8] sm:$0xff] %vm2428_vm10, %v2425_v59 }
 0x890   : > { %v7177_v12 = vld [vmem:[#allocation4] sm:$0xff] }
 0x891   : > { %v2455_v31 = vmul.f32 %v2449_v10, %v7177_v12  ;;  %v2475_v19 = vmul.f32 %v2469_v24, %v7177_v12  ;;  %v2495_v34 = vmul.f32 %v2489_v38, %v7177_v12  ;;  %v2515_v21 = vmul.f32 %v2509_v27, %v7177_v12 }
 0x892   : > { %v7180_v32 = vld [vmem:[#allocation4 + $0x8] sm:$0xff] }
 0x893   : > { %2459 = vrot.lane.b32.xlu1 %v2455_v31, %s7761_s4  ;;  %v2456_v3 = vmul.f32 %v2453_v18, %v7180_v32  ;;  %v2476_v39 = vmul.f32 %v2473_v25, %v7180_v32  ;;  %v2496_v35 = vmul.f32 %v2493_v11, %v7180_v32 }
 0x895   : > { %2461 = vrot.lane.b32.xlu0 %v2456_v3, %s7761_s4  ;;  %s6475_s4 = smov 117  }
 0x897   : > { %2479 = vrot.lane.b32.xlu1 %v2475_v19, %s7760_s28 }
 0x899   : > { %2481 = vrot.lane.b32.xlu0 %v2476_v39, %s7760_s28  ;;  %v2529_v33 = vpop.permute.xlu1 %2528 }
 0x89a   : > { %v2535_v41 = vmul.f32 %v2529_v33, %v7177_v12 }
 0x89b   : > { %2499 = vrot.lane.b32.xlu1 %v2495_v34, %s7730_s7  ;;  %v2513_v36 = vpop.permute.xlu0 %2512  ;;  %v2681_v34 = vld [vmem:[%s6912_s2 + $0x10] sm:$0xff] }
 0x89c   : > { %v2516_v15 = vmul.f32 %v2513_v36, %v7180_v32  ;;  %v6313_v36 = vld [vmem:[%s7682_s12] sm:$0xff]  }
 0x89d   : > { %2501 = vrot.lane.b32.xlu0 %v2496_v35, %s7730_s7  ;;  %v2533_v37 = vpop.permute.xlu1 %2532  ;;  %s6487_s7 = smov 104  }
 0x89e   : > { %v2536_v26 = vmul.f32 %v2533_v37, %v7180_v32  ;;  %v2685_v37 = vpack.c.bf16 %v2681_v34, %v2681_v34 }
 0x89f   : > { %2519 = vrot.lane.b32.xlu1 %v2515_v21, %s6475_s4 }
 0x8a0   : > { %v2549_v42 = vpop.permute.xlu0 %2548  ;;  %v2702_v21 = vsel %vm7804_vm12, %v2685_v37, 0 }
 0x8a1   : > { %2521 = vrot.lane.b32.xlu0 %v2516_v15, %s6475_s4  ;;  %v2555_v45 = vmul.f32 %v2549_v42, %v7177_v12  ;;  %v2682_v15 = vld [vmem:[%s7684_s14] sm:$0xf]  ;;  %s5618_s4 = sshll.u32 %s6905_s22, 4 }
 0x8a2   : > { %v2553_v43 = vpop.permute.xlu1 %2552  ;;  %5651 = vmatmul.mubr.msk.bf16.vlgmr.msra.gmra.mrb[20].mxu0 %vm1357_vm0, %v2682_v15 }
 0x8a3   : > { %2539 = vrot.lane.b32.xlu1 %v2535_v41, %s7729_s27  ;;  %v2556_v40 = vmul.f32 %v2553_v43, %v7180_v32  ;;  %v6314_v41 = vld [vmem:[%s7686_s16] sm:$0xff]  }
 0x8a4   : > { %5929 = vmatprep.mubr.msk.bf16.mxu0 %vm2627_vm11, %v6314_v41 }
 0x8a5   : > { %2541 = vrot.lane.b32.xlu0 %v2536_v26, %s7729_s27  ;;  %v2573_v1 = vpop.permute.xlu0 %2572  ;;  %s6488_s27 = smov 100  }
 0x8a6   : > { %v2576_v57 = vmul.f32 %v2573_v1, %v7180_v32 }
 0x8a7   : > { %2559 = vrot.lane.b32.xlu1 %v2555_v45, %s7764_s24  ;;  %v2569_v46 = vpop.permute.xlu1 %2568 }
 0x8a8   : > { %v2575_v5 = vmul.f32 %v2569_v46, %v7177_v12 }
 0x8a9   : > { %2561 = vrot.lane.b32.xlu0 %v2556_v40, %s7764_s24 }
 0x8aa   : > { %v2438_v55 = vpop.permute.xlu0 %2437 }
 0x8ab   : > { %2579 = vrot.lane.b32.xlu1 %v2575_v5, %s6477_s26  ;;  %v2445_v63 = vmul.f32 %v2438_v55, %v7177_v12  ;;  %v7280_v55 = vld [vmem:[%s7688_s18] sm:$0xff] }
 0x8ac   : > { %v2589_v2 = vpop.permute.xlu1 %2588 }
 0x8ad   : > { %v2595_v30 = vmul.f32 %v2589_v2, %v7177_v12  ;;  %2581 = vrot.lane.b32.xlu0 %v2576_v57, %s6477_s26  ;;  %s7252_s26 = scalar_lea.vmem [#allocation10], %s5618_s4  ;;  %s6480_s4 = smov 78  }
 0x8af   : > { %2599 = vrot.lane.b32.xlu1 %v2595_v30, %s7732_s0 }
 0x8b0   : > { %v2593_v8 = vpop.permute.xlu1 %2592 }
 0x8b1   : > { %v2596_v47 = vmul.f32 %v2593_v8, %v7180_v32 }
 0x8b3   : > { %2614 = vperm.xlu1 %6311, %v2610_v9   ;;  %2601 = vrot.lane.b32.xlu0 %v2596_v47, %s7732_s0  ;;  %s5617_s0 = sshll.u32 %s6905_s22, 5 }
 0x8b5   : > { %v2443_v53 = vpop.permute.xlu1 %2442 }
 0x8b6   : > { %v2446_v6 = vmul.f32 %v2443_v53, %v7180_v32  ;;  %v7273_v53 = vld [vmem:[%s7688_s18 + $0x8] sm:$0xff] }
 0x8b7   : > { %2885 = vperm.xlu1 %6311, %v2875_v48   ;;  %2619 = vperm.xlu0 %6310, %v2611_v49   ;;  %v6315_v49 = vld [vmem:[%s7686_s16 + $0x8] sm:$0xff]  }
 0x8bb   : > { %2895 = vperm.xlu1 %6311, %v2877_v50   ;;  %2880 = vperm.xlu0 %6310, %v2874_v51  }
 0x8bf   : > { %2890 = vperm.xlu0 %6310, %v2876_v52  }
 0x905   : > { %v2460_v56 = vpop.permute.xlu1 %2459 }
 0x906   : > { %v2465_v17 = vadd.f32 %v2460_v56, %v2445_v63 }
 0x907   : > { %v2462_v54 = vpop.permute.xlu0 %2461 }
 0x908   : > { %v2466_v16 = vadd.f32 %v2462_v54, %v2446_v6 }
 0x909   : > { %v2480_v0 = vpop.permute.xlu1 %2479 }
 0x90a   : > { %v2485_v28 = vadd.f32 %v2480_v0, %v2465_v17 }
 0x90b   : > { %v2482_v14 = vpop.permute.xlu0 %2481 }
 0x90c   : > { %v2486_v22 = vadd.f32 %v2482_v14, %v2466_v16 }
 0x90d   : > { %v2500_v44 = vpop.permute.xlu1 %2499 }
 0x90e   : > { %v2505_v10 = vadd.f32 %v2500_v44, %v2485_v28 }
 0x90f   : > { %v2502_v58 = vpop.permute.xlu0 %2501 }
 0x910   : > { %v2506_v24 = vadd.f32 %v2502_v58, %v2486_v22 }
 0x911   : > { %v2520_v60 = vpop.permute.xlu1 %2519 }
 0x912   : > { %v2525_v11 = vadd.f32 %v2520_v60, %v2505_v10  ;;  %v2686_v10 = vld [vmem:[%s7685_s15] sm:$0xff] }
 0x913   : > { %v2522_v62 = vpop.permute.xlu0 %2521 }
 0x914   : > { %v2526_v18 = vadd.f32 %v2522_v62, %v2506_v24 }
 0x915   : > { %v2540_v61 = vpop.permute.xlu1 %2539 }
 0x916   : > { %v2545_v27 = vadd.f32 %v2540_v61, %v2525_v11 }
 0x917   : > { %v2542_v13 = vpop.permute.xlu0 %2541 }
 0x918   : > { %v2546_v38 = vadd.f32 %v2542_v13, %v2526_v18 }
 0x919   : > { %v2560_v20 = vpop.permute.xlu1 %2559 }
 0x91a   : > { %v2565_v59 = vadd.f32 %v2560_v20, %v2545_v27 }
 0x91b   : > { %v2562_v23 = vpop.permute.xlu0 %2561 }
 0x91c   : > { %v2566_v12 = vadd.f32 %v2562_v23, %v2546_v38 }
 0x91d   : > { %v2580_v25 = vpop.permute.xlu1 %2579 }
 0x91e   : > { %v2585_v32 = vadd.f32 %v2580_v25, %v2565_v59 }
 0x91f   : > { %v2582_v29 = vpop.permute.xlu0 %2581 }
 0x920   : > { %v2586_v3 = vadd.f32 %v2582_v29, %v2566_v12 }
 0x921   : > { %v2600_v31 = vpop.permute.xlu1 %2599 }
 0x922   : > { %v2605_v39 = vadd.f32 %v2600_v31, %v2585_v32 }
 0x925   : > { %v2602_v19 = vpop.permute.xlu0 %2601 }
 0x926   : > { %v2606_v33 = vadd.f32 %v2602_v19, %v2586_v3 }
 0x928   : > { %v2609_v35 = vpack.c.bf16 %v2606_v33, %v2605_v39 }
 0x92a   : > { %5916 = vmatpush3.bf16.msra.mxu1 %v2609_v35 }
 0x92b   : > { %5921 = vmatprep.subr.bf16.mxu1 %v6443_v4 }
 0x92d   : > { %5918 = vmatmul.mubr.msk.bf16.vlgmr.msra.gmra.mrb[16].mxu1 %vm2627_vm11, %v6313_v36 }
 0x92e   : > { %5922 = vmatpush3.bf16.msra.mxu1 %v2702_v21  ;;  %5923 = vmatprep.mubr.msk.bf16.mxu1 %vm7781_vm3, %v6443_v4 }
 0x92f   : > { %5933 = vmatprep.subr.mxu1 %v6443_v4 }
 0x932   : > { %v2615_v42 = vpop.permute.xlu1 %2614 }
 0x935   : > { %5924 = vmatmul.mubr.msk.bf16.vlgmr.msra.gmra.mrb[20].mxu1 %vm1357_vm0, %v2682_v15 }
 0x936   : > { %5935 = vmatprep.mubr.msk.f32.mxu1 %vm7781_vm3, %v6443_v4  ;;  %v2620_v40 = vpop.permute.xlu0 %2619  ;;  %5934 = vmatpush3.msra.mxu1 %v7273_v53  ;;  %v2886_v58 = vpop.permute.xlu1 %2885 }
 0x937   : > { %5938 = vmatprep.subr.mxu1 %v6443_v4 }
 0x93a   : > { %v2881_v54 = vpop.permute.xlu0 %2880  ;;  %v2896_v17 = vpop.permute.xlu1 %2895 }
 0x93e   : > { %v2891_v6 = vpop.permute.xlu0 %2890 }
 0x975   : > { %v7266_v50 = vpop.f32.mrb[20].mxu0 }
 0xa00   : > { %v2665_v43 = vpop.f32.mrb[16].mxu1 }
 0xa01   : > { %v2666_v26 = vadd.f32 %v2665_v43, %v2615_v42  ;;  %v5919_v45 = vpop.f32.mrb[17].mxu1 }
 0xa02   : > { %v2668_v46 = vpop.f32.mrb[18].mxu1 }
 0xa03   : > { %v2672_v1 = vmax.f32 %v2666_v26, 0.0  ;;  %v2669_v5 = vadd.f32 %v2668_v46, %v2620_v40  ;;  %v5920_v57 = vpop.f32.mrb[19].mxu1 }
 0xa05   : > { %v2674_v2 = vmul.f32 %v7155_v7, %v2672_v1  ;;  %v2673_v30 = vmax.f32 %v2669_v5, 0.0 }
 0xa07   : > { %2677 = vst.msk [vmem:[%s7252_s26] sm:$0xff] %vm2676_vm7, %v2674_v2  ;;  %v2675_v8 = vmul.f32 %v7155_v7, %v2673_v30  ;;  %v7268_v7 = vpop.f32.mrb[21].mxu0 }
 0xa08   : > { %v2742_v51 = vpop.f32.mrb[22].mxu0  ;;  %v7323_v22 = vpop.f32.mrb[20].mxu1 }
 0xa09   : > { %2678 = vst.msk [vmem:[%s7252_s26 + $0x8] sm:$0xff] %vm2676_vm7, %v2675_v8  ;;  %v2743_v52 = vpop.f32.mrb[23].mxu0  ;;  %v5925_v23 = vpop.f32.mrb[21].mxu1 }
 0xa0a   : > { %v2782_v24 = vpop.f32.mrb[22].mxu1 }
 0xa0b   : > { %v5926_v25 = vpop.f32.mrb[23].mxu1 }
 0xa0e   : > { %v2867_v9 = vld [vmem:[%s7252_s26] sm:$0xff] }
 0xa10   : > { %v2868_v47 = vld [vmem:[%s7252_s26 + $0x8] sm:$0xff] }
 0xa11   : > { %v2873_v48 = vpack.c.bf16 %v2868_v47, %v2867_v9 }
 0xa13   : > { %5927 = vmatprep.subr.bf16.mxu0 %v2873_v48 }
 0xa14   : > { %5928 = vmatpush3.bf16.msra.mxu0 %v2873_v48 }
 0xa15   : > { %5948 = vmatprep.subr.mxu0 %v6443_v4 }
 0xa17   : > { %5930 = vmatmul.mubr.msk.bf16.vlgmr.msra.gmra.mrb[24].mxu0 %vm2627_vm11, %v6315_v49 }
 0xa18   : > { %5950 = vmatprep.mubr.msk.f32.mxu0 %vm7781_vm3, %v6443_v4  ;;  %5949 = vmatpush3.msra.mxu0 %v7280_v55 }
 0xa19   : > { %5963 = vmatprep.subr.mxu0 %v6443_v4 }
 0xaea   : > { %v5931_v56 = vpop.f32.mrb[24].mxu0 }
 0xaeb   : > { %v2948_v0 = vpop.f32.mrb[25].mxu0  ;;  %v2957_v13 = vadd.f32 %v5931_v56, %v2891_v6 }
 0xaec   : > { %v2949_v14 = vadd.f32 %v2948_v0, %v2881_v54  ;;  %v5932_v44 = vpop.f32.mrb[26].mxu0 }
 0xaed   : > { %v2951_v60 = vpop.f32.mrb[27].mxu0  ;;  %v2960_v16 = vadd.f32 %v5932_v44, %v2896_v17  ;;  %v7300_v20 = vmax.f32 %v2957_v13, 0.0 }
 0xaee   : > { %v2963_v62 = vmax.f32 %v2949_v14, 0.0  ;;  %v2952_v61 = vadd.f32 %v2951_v60, %v2886_v58 }
 0xaef   : > { %v7302_v28 = vmax.f32 %v2960_v16, 0.0 }
 0xaf0   : > { %v2964_v63 = vmax.f32 %v2952_v61, 0.0  ;;  %3193 = vrot.lane.b32.xlu0 %v2963_v62, %s7805_s30 }
 0xaf2   : > { %3119 = vrot.lane.b32.xlu1 %v2964_v63, %s7805_s30  ;;  %5936 = vmatmul.mubr.msk.f32.vlgmr.msra.gmra.mrb[24].mxu1 %vm1357_vm0, %v2964_v63 }
 0xaf3   : > { %5939 = vmatpush3.msra.mxu1 %v7280_v55  ;;  %5940 = vmatprep.mubr.msk.f32.mxu1 %vm7781_vm3, %v6443_v4 }
 0xaf4   : > { %3429 = vrot.lane.b32.xlu0 %v2964_v63, %s6479_s6  ;;  %5943 = vmatprep.subr.mxu1 %v6443_v4 }
 0xaf6   : > { %3274 = vrot.lane.b32.xlu1 %v2964_v63, %s7764_s24 }
 0xaf8   : > { %3503 = vrot.lane.b32.xlu0 %v2963_v62, %s6479_s6 }
 0xafa   : > { %3348 = vrot.lane.b32.xlu1 %v2963_v62, %s7764_s24  ;;  %5941 = vmatmul.mubr.msk.f32.vlgmr.msra.gmra.mrb[24].mxu1 %vm1357_vm0, %v2963_v62 }
 0xafb   : > { %5944 = vmatpush3.msra.mxu1 %v7273_v53  ;;  %5945 = vmatprep.mubr.msk.f32.mxu1 %vm7781_vm3, %v6443_v4 }
 0xafc   : > { %3735 = vrot.lane.b32.xlu0 %v2964_v63, %s6480_s4  ;;  %5953 = vmatprep.subr.mxu1 %v6443_v4 }
 0xafe   : > { %3584 = vrot.lane.b32.xlu1 %v2964_v63, %s6481_s29 }
 0xb00   : > { %3809 = vrot.lane.b32.xlu0 %v2963_v62, %s6480_s4 }
 0xb02   : > { %3658 = vrot.lane.b32.xlu1 %v2963_v62, %s6481_s29 }
 0xb04   : > { %4045 = vrot.lane.b32.xlu0 %v2964_v63, %s6482_s1 }
 0xb06   : > { %3890 = vrot.lane.b32.xlu1 %v2964_v63, %s6483_s8 }
 0xb08   : > { %4119 = vrot.lane.b32.xlu0 %v2963_v62, %s6482_s1 }
 0xb0a   : > { %3964 = vrot.lane.b32.xlu1 %v2963_v62, %s6483_s8 }
 0xb0c   : > { %4427 = vrot.lane.b32.xlu0 %v7300_v20, %s7805_s30 }
 0xb0e   : > { %4353 = vrot.lane.b32.xlu1 %v7302_v28, %s7805_s30 }
 0xb10   : > { %4663 = vrot.lane.b32.xlu0 %v7302_v28, %s6479_s6 }
 0xb12   : > { %4508 = vrot.lane.b32.xlu1 %v7302_v28, %s7764_s24 }
 0xb14   : > { %4737 = vrot.lane.b32.xlu0 %v7300_v20, %s6479_s6 }
 0xb16   : > { %4582 = vrot.lane.b32.xlu1 %v7300_v20, %s7764_s24 }
 0xb18   : > { %4973 = vrot.lane.b32.xlu0 %v7302_v28, %s6480_s4 }
 0xb1a   : > { %4818 = vrot.lane.b32.xlu1 %v7302_v28, %s6481_s29 }
 0xb1c   : > { %5047 = vrot.lane.b32.xlu0 %v7300_v20, %s6480_s4  ;;  %s7460_s4 = scalar_lea.vmem [#allocation6], %s5617_s0  ;;  %s6489_s0 = smov 102  }
 0xb1e   : > { %4892 = vrot.lane.b32.xlu1 %v7300_v20, %s6481_s29  ;;  %s7806_s29 = smov 112  }
 0xb20   : > { %5283 = vrot.lane.b32.xlu0 %v7302_v28, %s6482_s1 }
 0xb22   : > { %5128 = vrot.lane.b32.xlu1 %v7302_v28, %s6483_s8 }
 0xb24   : > { %5357 = vrot.lane.b32.xlu0 %v7300_v20, %s6482_s1  ;;  %s6484_s1 = smov 124  }
 0xb26   : > { %5202 = vrot.lane.b32.xlu1 %v7300_v20, %s6483_s8  ;;  %s6486_s8 = smov 120  }
 0xb2a   : > { %2689 = vperm.xlu1 %6311, %v2686_v10  }
 0xb62   : > { %v3194_v11 = vpop.permute.xlu0 %3193 }
 0xb63   : > { %5951 = vmatmul.mubr.msk.f32.vlgmr.msra.gmra.mrb[28].mxu0 %vm1357_vm0, %v3194_v11 }
 0xb64   : > { %v3120_v18 = vpop.permute.xlu1 %3119  ;;  %5964 = vmatpush3.msra.mxu0 %v7273_v53  ;;  %5965 = vmatprep.mubr.msk.f32.mxu0 %vm7781_vm3, %v6443_v4 }
 0xb65   : > { %5946 = vmatmul.mubr.msk.f32.vlgmr.msra.gmra.mrb[26].mxu1 %vm1357_vm0, %v3120_v18  ;;  %5968 = vmatprep.subr.mxu0 %v6443_v4 }
 0xb66   : > { %v3430_v27 = vpop.permute.xlu0 %3429  ;;  %5954 = vmatpush3.msra.mxu1 %v7273_v53  ;;  %5955 = vmatprep.mubr.msk.f32.mxu1 %vm7781_vm3, %v6443_v4 }
 0xb67   : > { %5966 = vmatmul.mubr.msk.f32.vlgmr.msra.gmra.mrb[30].mxu0 %vm1357_vm0, %v3430_v27  ;;  %5958 = vmatprep.subr.mxu1 %v6443_v4 }
 0xb68   : > { %v3275_v38 = vpop.permute.xlu1 %3274  ;;  %5969 = vmatpush3.msra.mxu0 %v7280_v55  ;;  %5970 = vmatprep.mubr.msk.f32.mxu0 %vm7781_vm3, %v6443_v4 }
 0xb69   : > { %5956 = vmatmul.mubr.msk.f32.vlgmr.msra.gmra.mrb[28].mxu1 %vm1357_vm0, %v3275_v38  ;;  %5983 = vmatprep.subr.mxu0 %v6443_v4 }
 0xb6a   : > { %5959 = vmatpush3.msra.mxu1 %v7280_v55  ;;  %5960 = vmatprep.mubr.msk.f32.mxu1 %vm7781_vm3, %v6443_v4  ;;  %v3504_v29 = vpop.permute.xlu0 %3503 }
 0xb6b   : > { %5973 = vmatprep.subr.mxu1 %v6443_v4 }
 0xb6c   : > { %v3349_v59 = vpop.permute.xlu1 %3348 }
 0xb6e   : > { %v3736_v31 = vpop.permute.xlu0 %3735 }
 0xb6f   : > { %5971 = vmatmul.mubr.msk.f32.vlgmr.msra.gmra.mrb[30].mxu0 %vm1357_vm0, %v3504_v29 }
 0xb70   : > { %v3585_v12 = vpop.permute.xlu1 %3584  ;;  %5984 = vmatpush3.msra.mxu0 %v7273_v53  ;;  %5985 = vmatprep.mubr.msk.f32.mxu0 %vm7781_vm3, %v6443_v4 }
 0xb71   : > { %5961 = vmatmul.mubr.msk.f32.vlgmr.msra.gmra.mrb[28].mxu1 %vm1357_vm0, %v3349_v59  ;;  %5988 = vmatprep.subr.mxu0 %v6443_v4 }
 0xb72   : > { %5974 = vmatpush3.msra.mxu1 %v7273_v53  ;;  %5975 = vmatprep.mubr.msk.f32.mxu1 %vm7781_vm3, %v6443_v4  ;;  %v3810_v3 = vpop.permute.xlu0 %3809 }
 0xb73   : > { %5986 = vmatmul.mubr.msk.f32.vlgmr.msra.gmra.mrb[32].mxu0 %vm1357_vm0, %v3736_v31  ;;  %5978 = vmatprep.subr.mxu1 %v6443_v4 }
 0xb74   : > { %v3659_v32 = vpop.permute.xlu1 %3658  ;;  %5989 = vmatpush3.msra.mxu0 %v7280_v55  ;;  %5990 = vmatprep.mubr.msk.f32.mxu0 %vm7781_vm3, %v6443_v4 }
 0xb75   : > { %5976 = vmatmul.mubr.msk.f32.vlgmr.msra.gmra.mrb[30].mxu1 %vm1357_vm0, %v3585_v12  ;;  %6003 = vmatprep.subr.mxu0 %v6443_v4 }
 0xb76   : > { %5979 = vmatpush3.msra.mxu1 %v7280_v55  ;;  %5980 = vmatprep.mubr.msk.f32.mxu1 %vm7781_vm3, %v6443_v4  ;;  %v4046_v33 = vpop.permute.xlu0 %4045 }
 0xb77   : > { %5993 = vmatprep.subr.mxu1 %v6443_v4 }
 0xb78   : > { %v3891_v19 = vpop.permute.xlu1 %3890 }
 0xb7a   : > { %v4120_v35 = vpop.permute.xlu0 %4119 }
 0xb7b   : > { %5991 = vmatmul.mubr.msk.f32.vlgmr.msra.gmra.mrb[32].mxu0 %vm1357_vm0, %v3810_v3 }
 0xb7c   : > { %v3965_v39 = vpop.permute.xlu1 %3964  ;;  %6004 = vmatpush3.msra.mxu0 %v7273_v53  ;;  %6005 = vmatprep.mubr.msk.f32.mxu0 %vm7781_vm3, %v6443_v4 }
 0xb7d   : > { %5981 = vmatmul.mubr.msk.f32.vlgmr.msra.gmra.mrb[30].mxu1 %vm1357_vm0, %v3659_v32  ;;  %6008 = vmatprep.subr.mxu0 %v6443_v4 }
 0xb7e   : > { %5994 = vmatpush3.msra.mxu1 %v7273_v53  ;;  %5995 = vmatprep.mubr.msk.f32.mxu1 %vm7781_vm3, %v6443_v4  ;;  %v4428_v21 = vpop.permute.xlu0 %4427 }
 0xb7f   : > { %6006 = vmatmul.mubr.msk.f32.vlgmr.msra.gmra.mrb[34].mxu0 %vm1357_vm0, %v4046_v33  ;;  %5998 = vmatprep.subr.mxu1 %v6443_v4 }
 0xb80   : > { %6009 = vmatpush3.msra.mxu0 %v7280_v55  ;;  %6010 = vmatprep.mubr.msk.f32.mxu0 %vm7781_vm3, %v6443_v4  ;;  %v4354_v34 = vpop.permute.xlu1 %4353 }
 0xb81   : > { %5996 = vmatmul.mubr.msk.f32.vlgmr.msra.gmra.mrb[32].mxu1 %vm1357_vm0, %v3891_v19  ;;  %6023 = vmatprep.subr.mxu0 %v6443_v4 }
 0xb82   : > { %5999 = vmatpush3.msra.mxu1 %v7280_v55  ;;  %6000 = vmatprep.mubr.msk.f32.mxu1 %vm7781_vm3, %v6443_v4  ;;  %v4664_v41 = vpop.permute.xlu0 %4663 }
 0xb83   : > { %6013 = vmatprep.subr.mxu1 %v6443_v4 }
 0xb84   : > { %v4509_v36 = vpop.permute.xlu1 %4508 }
 0xb86   : > { %v4738_v43 = vpop.permute.xlu0 %4737 }
 0xb87   : > { %6011 = vmatmul.mubr.msk.f32.vlgmr.msra.gmra.mrb[34].mxu0 %vm1357_vm0, %v4120_v35 }
 0xb88   : > { %6024 = vmatpush3.msra.mxu0 %v7273_v53  ;;  %6025 = vmatprep.mubr.msk.f32.mxu0 %vm7781_vm3, %v6443_v4  ;;  %v4583_v37 = vpop.permute.xlu1 %4582 }
 0xb89   : > { %6001 = vmatmul.mubr.msk.f32.vlgmr.msra.gmra.mrb[32].mxu1 %vm1357_vm0, %v3965_v39  ;;  %6028 = vmatprep.subr.mxu0 %v6443_v4 }
 0xb8a   : > { %6014 = vmatpush3.msra.mxu1 %v7273_v53  ;;  %6015 = vmatprep.mubr.msk.f32.mxu1 %vm7781_vm3, %v6443_v4  ;;  %v4974_v45 = vpop.permute.xlu0 %4973 }
 0xb8b   : > { %6026 = vmatmul.mubr.msk.f32.vlgmr.msra.gmra.mrb[36].mxu0 %vm1357_vm0, %v4354_v34  ;;  %6018 = vmatprep.subr.mxu1 %v6443_v4 }
 0xb8c   : > { %6029 = vmatpush3.msra.mxu0 %v7280_v55  ;;  %6030 = vmatprep.mubr.msk.f32.mxu0 %vm7781_vm3, %v6443_v4  ;;  %v4819_v15 = vpop.permute.xlu1 %4818 }
 0xb8d   : > { %6016 = vmatmul.mubr.msk.f32.vlgmr.msra.gmra.mrb[34].mxu1 %vm1357_vm0, %v7302_v28  ;;  %6043 = vmatprep.subr.mxu0 %v6443_v4 }
 0xb8e   : > { %6019 = vmatpush3.msra.mxu1 %v7280_v55  ;;  %6020 = vmatprep.mubr.msk.f32.mxu1 %vm7781_vm3, %v6443_v4  ;;  %v5048_v46 = vpop.permute.xlu0 %5047 }
 0xb8f   : > { %6033 = vmatprep.subr.mxu1 %v6443_v4 }
 0xb90   : > { %v4893_v42 = vpop.permute.xlu1 %4892 }
 0xb92   : > { %v5284_v8 = vpop.permute.xlu0 %5283 }
 0xb93   : > { %6031 = vmatmul.mubr.msk.f32.vlgmr.msra.gmra.mrb[36].mxu0 %vm1357_vm0, %v4428_v21 }
 0xb94   : > { %6044 = vmatpush3.msra.mxu0 %v7273_v53  ;;  %6045 = vmatprep.mubr.msk.f32.mxu0 %vm7781_vm3, %v6443_v4  ;;  %v5129_v26 = vpop.permute.xlu1 %5128 }
 0xb95   : > { %6021 = vmatmul.mubr.msk.f32.vlgmr.msra.gmra.mrb[34].mxu1 %vm1357_vm0, %v7300_v20  ;;  %6048 = vmatprep.subr.mxu0 %v6443_v4 }
 0xb96   : > { %6034 = vmatpush3.msra.mxu1 %v7273_v53  ;;  %6035 = vmatprep.mubr.msk.f32.mxu1 %vm7781_vm3, %v6443_v4  ;;  %v5358_v9 = vpop.permute.xlu0 %5357 }
 0xb97   : > { %6046 = vmatmul.mubr.msk.f32.vlgmr.msra.gmra.mrb[38].mxu0 %vm1357_vm0, %v4664_v41  ;;  %6038 = vmatprep.subr.mxu1 %v6443_v4 }
 0xb98   : > { %6049 = vmatpush3.msra.mxu0 %v7280_v55  ;;  %6050 = vmatprep.mubr.msk.f32.mxu0 %vm7781_vm3, %v6443_v4  ;;  %v5203_v40 = vpop.permute.xlu1 %5202 }
 0xb99   : > { %6036 = vmatmul.mubr.msk.f32.vlgmr.msra.gmra.mrb[36].mxu1 %vm1357_vm0, %v4509_v36  ;;  %6063 = vmatprep.subr.mxu0 %v6443_v4 }
 0xb9a   : > { %6039 = vmatpush3.msra.mxu1 %v7280_v55  ;;  %6040 = vmatprep.mubr.msk.f32.mxu1 %vm7781_vm3, %v6443_v4 }
 0xb9b   : > { %6053 = vmatprep.subr.mxu1 %v6443_v4 }
 0xb9f   : > { %6051 = vmatmul.mubr.msk.f32.vlgmr.msra.gmra.mrb[38].mxu0 %vm1357_vm0, %v4738_v43 }
 0xba0   : > { %6064 = vmatpush3.msra.mxu0 %v7273_v53  ;;  %6065 = vmatprep.mubr.msk.f32.mxu0 %vm7781_vm3, %v6443_v4 }
 0xba1   : > { %6041 = vmatmul.mubr.msk.f32.vlgmr.msra.gmra.mrb[36].mxu1 %vm1357_vm0, %v4583_v37  ;;  %6068 = vmatprep.subr.mxu0 %v6443_v4 }
 0xba2   : > { %6054 = vmatpush3.msra.mxu1 %v7273_v53  ;;  %6055 = vmatprep.mubr.msk.f32.mxu1 %vm7781_vm3, %v6443_v4 }
 0xba3   : > { %6066 = vmatmul.mubr.msk.f32.vlgmr.msra.gmra.mrb[40].mxu0 %vm1357_vm0, %v4974_v45  ;;  %6058 = vmatprep.subr.mxu1 %v6443_v4 }
 0xba4   : > { %6069 = vmatpush3.msra.mxu0 %v7280_v55  ;;  %6070 = vmatprep.mubr.msk.f32.mxu0 %vm7781_vm3, %v6443_v4 }
 0xba5   : > { %6056 = vmatmul.mubr.msk.f32.vlgmr.msra.gmra.mrb[38].mxu1 %vm1357_vm0, %v4819_v15  ;;  %6083 = vmatprep.subr.mxu0 %v6443_v4 }
 0xba6   : > { %6059 = vmatpush3.msra.mxu1 %v7280_v55  ;;  %6060 = vmatprep.mubr.msk.f32.mxu1 %vm7781_vm3, %v6443_v4 }
 0xba7   : > { %6073 = vmatprep.subr.mxu1 %v6443_v4 }
 0xba9   : > { %v2690_v1 = vpop.permute.xlu1 %2689 }
 0xbaa   : > { %v2739_v5 = vadd.f32 %v7266_v50, %v2690_v1  ;;  %v2741_v57 = vadd.f32 %v7268_v7, %v2690_v1 }
 0xbab   : > { %6071 = vmatmul.mubr.msk.f32.vlgmr.msra.gmra.mrb[40].mxu0 %vm1357_vm0, %v5048_v46 }
 0xbac   : > { %v2785_v2 = vmax.f32 %v2739_v5, 0.0  ;;  %v2786_v30 = vmax.f32 %v2741_v57, 0.0  ;;  %6084 = vmatpush3.msra.mxu0 %v7273_v53  ;;  %6085 = vmatprep.mubr.msk.f32.mxu0 %vm7781_vm3, %v6443_v4 }
 0xbad   : > { %6061 = vmatmul.mubr.msk.f32.vlgmr.msra.gmra.mrb[38].mxu1 %vm1357_vm0, %v4893_v42  ;;  %6088 = vmatprep.subr.mxu0 %v6443_v4 }
 0xbae   : > { %2788 = vst.msk [vmem:[%s7460_s4] sm:$0xff] %vm2627_vm11, %v2785_v2  ;;  %2790 = vrot.lane.b32.xlu1 %v2785_v2, %s7760_s28  ;;  %2830 = vrot.lane.b32.xlu0 %v2786_v30, %s7806_s29  ;;  %s6485_s28 = smov 122  }
 0xbaf   : > { %6086 = vmatmul.mubr.msk.f32.vlgmr.msra.gmra.mrb[42].mxu0 %vm1357_vm0, %v5284_v8  ;;  %6074 = vmatpush3.msra.mxu1 %v7273_v53 }
 0xbb0   : > { %6075 = vmatprep.mubr.msk.f32.mxu1 %vm7781_vm3, %v6443_v4  ;;  %6078 = vmatprep.subr.mxu1 %v6443_v4 }
 0xbb1   : > { %6076 = vmatmul.mubr.msk.f32.vlgmr.msra.gmra.mrb[40].mxu1 %vm1357_vm0, %v5129_v26  ;;  %6089 = vmatpush3.msra.mxu0 %v7280_v55 }
 0xbb2   : > { %2795 = vrot.lane.b32.xlu1 %v2785_v2, %s6484_s1  ;;  %2834 = vrot.lane.b32.xlu0 %v2786_v30, %s7762_s23  ;;  %s7807_s23 = smov 106   ;;  %s6490_s1 = smov 114  }
 0xbb3   : > { %6079 = vmatpush3.msra.mxu1 %v7280_v55  ;;  %6090 = vmatprep.mubr.msk.f32.mxu0 %vm7781_vm3, %v6443_v4 }
 0xbb4   : > { %6080 = vmatprep.mubr.msk.f32.mxu1 %vm7781_vm3, %v6443_v4  ;;  %v2780_v4 = vadd.f32 %v7323_v22, %v2690_v1  ;;  %vm2798_vm3 = vcmask 392448  }
 0xbb6   : > { %2800 = vrot.lane.b32.xlu1 %v2785_v2, %s6485_s28  ;;  %2838 = vrot.lane.b32.xlu0 %v2786_v30, %s7764_s24  ;;  %v2787_v47 = vmax.f32 %v2780_v4, 0.0  ;;  %s7808_s24 = smov 116   ;;  %s6493_s28 = smov 64  }
 0xbb7   : > { %6091 = vmatmul.mubr.msk.f32.vlgmr.msra.gmra.mrb[42].mxu0 %vm1357_vm0, %v5358_v9 }
 0xbb9   : > { %6081 = vmatmul.mubr.msk.f32.vlgmr.msra.gmra.mrb[40].mxu1 %vm1357_vm0, %v5203_v40  ;;  %vm2793_vm0 = vcmask 261248  }
 0xbba   : > { %2805 = vrot.lane.b32.xlu1 %v2785_v2, %s6486_s8  ;;  %2842 = vrot.lane.b32.xlu0 %v2786_v30, %s7807_s23  ;;  %s6494_s8 = smov 48   ;;  %s7734_s23 = smov 16  }
 0xbbe   : > { %2810 = vrot.lane.b32.xlu1 %v2785_v2, %s7805_s30  ;;  %2846 = vrot.lane.b32.xlu0 %v2786_v30, %s6487_s7  ;;  %s6491_s30 = smov 32   ;;  %s7733_s7 = smov 80  }
 0xbc2   : > { %2855 = vrot.lane.b32.xlu1 %v2786_v30, %s6488_s27  ;;  %2850 = vrot.lane.b32.xlu0 %v2786_v30, %s6489_s0  ;;  %s5441_s0 = sand.u32 1, %s6634_s3  }
 0xbc6   : > { %2815 = vrot.lane.b32.xlu1 %v2785_v2, %s7808_s24  ;;  %2857 = vrot.lane.b32.xlu0 %v2787_v47, %s6488_s27  ;;  %s6158_s27 = smul.u32 384, %s6634_s3  ;;  %s5477_s24 = sshll.u32 %s6912_s2, 4  ;;  %s5478_s24 = int_to_ptr.vmem [resolvable:$true] %s5477_s24 }
 0xbca   : > { %2823 = vrot.lane.b32.xlu1 %v2786_v30, %s6490_s1  ;;  %2821 = vrot.lane.b32.xlu0 %v2785_v2, %s6490_s1 }
 0xbcd   : > { %v3112_v48 = vpop.f32.mrb[24].mxu1 }
 0xbce   : > { %3116 = vst.msk [vmem:[%s7460_s4 + $0x10] sm:$0xff] %vm2627_vm11, %v3112_v48  ;;  %2863 = vrot.lane.b32.xlu0 %v2787_v47, %s6479_s6  ;;  %v5942_v49 = vpop.f32.mrb[25].mxu1  ;;  %s6492_s6 = smov 96  }
 0xc20   : > { %v2791_v50 = vpop.permute.xlu1 %2790  ;;  %v2831_v7 = vpop.permute.xlu0 %2830 }
 0xc21   : > { %2794 = vst.msk [vmem:[%s7460_s4] sm:$0xff] %vm2793_vm0, %v2791_v50 }
 0xc22   : > { %2833 = vst.msk [vmem:[%s7460_s4 + $0x8] sm:$0xff] %vm2627_vm11, %v2831_v7 }
 0xc24   : > { %v2796_v51 = vpop.permute.xlu1 %2795  ;;  %v2835_v52 = vpop.permute.xlu0 %2834 }
 0xc25   : > { %2799 = vst.msk [vmem:[%s7460_s4] sm:$0xff] %vm2798_vm3, %v2796_v51 }
 0xc26   : > { %2837 = vst.msk [vmem:[%s7460_s4 + $0x8] sm:$0xff] %vm2793_vm0, %v2835_v52 }
 0xc28   : > { %v2801_v53 = vpop.permute.xlu1 %2800  ;;  %v2839_v55 = vpop.permute.xlu0 %2838 }
 0xc29   : > { %2804 = vst.msk [vmem:[%s7460_s4] sm:$0xff] %vm2803_vm14, %v2801_v53 }
 0xc2a   : > { %2841 = vst.msk [vmem:[%s7460_s4 + $0x8] sm:$0xff] %vm2798_vm3, %v2839_v55 }
 0xc2c   : > { %v2806_v56 = vpop.permute.xlu1 %2805  ;;  %v2843_v54 = vpop.permute.xlu0 %2842 }
 0xc2d   : > { %2809 = vst.msk [vmem:[%s7460_s4] sm:$0xff] %vm2808_vm15, %v2806_v56 }
 0xc2e   : > { %2845 = vst.msk [vmem:[%s7460_s4 + $0x8] sm:$0xff] %vm2803_vm14, %v2843_v54 }
 0xc30   : > { %v2811_v0 = vpop.permute.xlu1 %2810  ;;  %v2847_v14 = vpop.permute.xlu0 %2846 }
 0xc31   : > { %2814 = vst.msk [vmem:[%s7460_s4] sm:$0xff] %vm2813_vm4, %v2811_v0 }
 0xc32   : > { %2849 = vst.msk [vmem:[%s7460_s4 + $0x8] sm:$0xff] %vm2808_vm15, %v2847_v14 }
 0xc34   : > { %v2856_v44 = vpop.permute.xlu1 %2855  ;;  %v2851_v58 = vpop.permute.xlu0 %2850 }
 0xc35   : > { %2853 = vst.msk [vmem:[%s7460_s4 + $0x8] sm:$0xff] %vm2813_vm4, %v2851_v58 }
 0xc36   : > { %v3263_v60 = vpop.f32.mrb[28].mxu0 }
 0xc37   : > { %v5952_v62 = vpop.f32.mrb[29].mxu0 }
 0xc38   : > { %v2816_v61 = vpop.permute.xlu1 %2815  ;;  %v2858_v63 = vpop.permute.xlu0 %2857 }
 0xc39   : > { %2819 = vst.msk [vmem:[%s7460_s4] sm:$0xff] %vm2818_vm1, %v2816_v61  ;;  %v2860_v6 = vsel %vm2859_vm8, %v2856_v44, %v2858_v63  ;;  %v3189_v13 = vpop.f32.mrb[26].mxu1 }
 0xc3a   : > { %2862 = vst.msk [vmem:[%s7460_s4 + $0x8] sm:$0xff] %vm2818_vm1, %v2860_v6  ;;  %v3264_v17 = vadd.f32 %v3263_v60, %v3189_v13  ;;  %v5947_v16 = vpop.f32.mrb[27].mxu1 }
 0xc3c   : > { %3268 = vrot.lane.b32.xlu1 %v3264_v17, %s6491_s30  ;;  %v2824_v20 = vpop.permute.xlu1 %2823  ;;  %v2822_v28 = vpop.permute.xlu0 %2821 }
 0xc3d   : > { %v2826_v22 = vsel %vm2825_vm13, %v2822_v28, %v2824_v20 }
 0xc3e   : > { %2829 = vst.msk [vmem:[%s7460_s4] sm:$0xff] %vm2828_vm5, %v2826_v22 }
 0xc40   : > { %v2864_v23 = vpop.permute.xlu0 %2863 }
 0xc41   : > { %2866 = vst.msk [vmem:[%s7460_s4 + $0x8] sm:$0xff] %vm2828_vm5, %v2864_v23 }
 0xc42   : > { %v3573_v10 = vpop.f32.mrb[30].mxu0 }
 0xc43   : > { %v5972_v24 = vpop.f32.mrb[31].mxu0  ;;  %3578 = vrot.lane.b32.xlu1 %v3573_v10, %s6492_s6 }
 0xc44   : > { %v3418_v25 = vpop.f32.mrb[28].mxu1 }
 0xc45   : > { %v5962_v11 = vpop.f32.mrb[29].mxu1 }
 0xc47   : > { %3423 = vrot.lane.b32.xlu1 %v3418_v25, %s6493_s28 }
 0xc4e   : > { %v3879_v18 = vpop.f32.mrb[32].mxu0 }
 0xc4f   : > { %3884 = vrot.lane.b32.xlu0 %v3879_v18, %s6491_s30  ;;  %v5992_v27 = vpop.f32.mrb[33].mxu0 }
 0xc50   : > { %v3728_v38 = vpop.f32.mrb[30].mxu1 }
 0xc51   : > { %3732 = vst.msk [vmem:[%s7460_s4 + $0x18] sm:$0xff] %vm2627_vm11, %v3728_v38  ;;  %v5982_v29 = vpop.f32.mrb[31].mxu1 }
 0xc5a   : > { %v4189_v59 = vpop.f32.mrb[34].mxu0 }
 0xc5b   : > { %4194 = vrot.lane.b32.xlu0 %v4189_v59, %s6492_s6  ;;  %v6012_v12 = vpop.f32.mrb[35].mxu0  ;;  %s7532_s6 = scalar_lea.hbm %s7690_s20, %s6158_s27 }
 0xc5c   : > { %v4034_v31 = vpop.f32.mrb[32].mxu1 }
 0xc5d   : > { %v6002_v32 = vpop.f32.mrb[33].mxu1 }
 0xc5f   : > { %4039 = vrot.lane.b32.xlu0 %v4034_v31, %s6493_s28  ;;  %s7534_s28 = scalar_lea.sflag [#allocation9], %s5441_s0 }
 0xc66   : > { %v4497_v3 = vpop.f32.mrb[36].mxu0 }
 0xc67   : > { %v6032_v19 = vpop.f32.mrb[37].mxu0  ;;  %4502 = vrot.lane.b32.xlu1 %v4497_v3, %s6494_s8 }
 0xc68   : > { %v4342_v39 = vpop.f32.mrb[34].mxu1 }
 0xc69   : > { %v6022_v33 = vpop.f32.mrb[35].mxu1 }
 0xc6b   : > { %4347 = vrot.lane.b32.xlu1 %v4342_v39, %s7734_s23 }
 0xc72   : > { %v7522_v34 = vpop.f32.mrb[38].mxu0 }
 0xc73   : > { %v6052_v35 = vpop.f32.mrb[39].mxu0 }
 0xc74   : > { %v4652_v36 = vpop.f32.mrb[36].mxu1 }
 0xc75   : > { %4657 = vrot.lane.b32.xlu0 %v4652_v36, %s7733_s7  ;;  %v6042_v37 = vpop.f32.mrb[37].mxu1  ;;  %s6316_s7 = scalar_lea.vmem %s5478_s24, 384 }
 0xc76   : > { %p6317_p11 = scmp.ne.s32.totalorder %s5478_s24, %s6316_s7 }
 0xc78   : > { %p6318_p12 = pnand %p6317_p11, %p6653_p5 }
 0xc7a   : > { %p6319_p13 = pneg %p6318_p12 }
 0xc7e   : > { %v5117_v21 = vpop.f32.mrb[40].mxu0 }
 0xc7f   : > { %v6072_v15 = vpop.f32.mrb[41].mxu0  ;;  %5122 = vrot.lane.b32.xlu0 %v5117_v21, %s6494_s8  ;;  %s6497_s8 = smov [#allocation8]  }
 0xc80   : > { %v4962_v41 = vpop.f32.mrb[38].mxu1  ;;  %s6320_s9 = sshll.u32 %s6497_s8, 4  ;;  %s6321_s9 = int_to_ptr.vmem [resolvable:$false] %s6320_s9 }
 0xc81   : > { %v6062_v42 = vpop.f32.mrb[39].mxu1  ;;  %p6323_p0 = scmp.lt.s32.totalorder %s5478_s24, %s6321_s9 }
 0xc83   : > { %4967 = vrot.lane.b32.xlu0 %v4962_v41, %s7734_s23  ;;  %s6322_s23 = scalar_lea.vmem %s6321_s9, 768 }
 0xc84   : > { %p6324_p1 = scmp.lt.s32.totalorder %s6322_s23, %s6316_s7 }
 0xc86   : > { %p6325_p2 = por %p6324_p1, %p6323_p0 }
 0xc88   : > { %p6326_p3 = pnand %p6325_p2, %p6319_p13 }
 0xc8a   : > { %6329 = shalt.err (!%p6326_p3)
}
 0xc8b   : > { %s6330_s2 = scalar_lea.hbm %s7532_s6, 384  ;;  %s6334_s1 = scalar_lea.hbm %s7690_s20, 768 }
 0xc8c   : > { %p6331_p4 = scmp.ne.s32.totalorder %s7532_s6, %s6330_s2  ;;  %p6335_p9 = scmp.lt.u32.totalorder %s7532_s6, %s7690_s20 }
 0xc8d   : > { %p6336_p10 = scmp.lt.u32.totalorder %s6334_s1, %s6330_s2  ;;  %p6338_p12 = scmp.lt.u32.totalorder %s6330_s2, %s7532_s6 }
 0xc8e   : > { %p6332_p7 = pnand %p6331_p4, %p6653_p5 }
 0xc8f   : > { %p6337_p11 = por %p6336_p10, %p6335_p9 }
 0xc90   : > { %p6333_p8 = pneg %p6332_p7 }
 0xc91   : > { %p6339_p13 = por %p6338_p12, %p6337_p11 }
 0xc93   : > { %p6340_p0 = pnand %p6339_p13, %p6333_p8 }
 0xc95   : > { %6343 = shalt.err (!%p6340_p0)
}
 0xc96   : > { %6160 = dma.vmem_to_hbm [thread:$0]  (%p6653_p5), %s5478_s24, 384, %s7532_s6, %s7534_s28   ;;  %v5427_v43 = vpop.f32.mrb[42].mxu0  ;;  %v5272_v45 = vpop.f32.mrb[40].mxu1 }
 0xc97   : > { %s5715_s23 = sshll.u32 %s6634_s3, 8  ;;  %v6092_v26 = vpop.f32.mrb[43].mxu0  ;;  %5432 = vrot.lane.b32.xlu0 %v5427_v43, %s7806_s29  ;;  %s5490_s27 = sshll.u32 %s7252_s26, 4  ;;  %v6082_v40 = vpop.f32.mrb[41].mxu1  ;;  %s7562_s27 = int_to_ptr.vmem [resolvable:$true] %s5490_s27 }
 0xc98   : > { %s7559_s2 = scalar_lea.hbm %s7691_s21, %s5715_s23  ;;  %s7809_s0 = smov 80  }
 0xc99   : > { %5277 = vrot.lane.b32.xlu1 %v5272_v45, %s7809_s0  ;;  %s6344_s24 = scalar_lea.vmem %s7562_s27, 256  ;;  %s6498_s6 = smov [#allocation10]  }
 0xc9a   : > { %p6345_p1 = scmp.ne.s32.totalorder %s7562_s27, %s6344_s24  ;;  %s6348_s1 = sshll.u32 %s6498_s6, 4  ;;  %s6349_s1 = int_to_ptr.vmem [resolvable:$false] %s6348_s1 }
 0xc9b   : > { %s6350_s30 = scalar_lea.vmem %s6349_s1, 512  ;;  %p6351_p4 = scmp.lt.s32.totalorder %s7562_s27, %s6349_s1 }
 0xc9c   : > { %p6346_p2 = pnand %p6345_p1, %p6653_p5  ;;  %p6352_p7 = scmp.lt.s32.totalorder %s6350_s30, %s6344_s24 }
 0xc9e   : > { %p6347_p3 = pneg %p6346_p2  ;;  %p6353_p8 = por %p6352_p7, %p6351_p4 }
 0xca0   : > { %p6354_p9 = pnand %p6353_p8, %p6347_p3 }
 0xca2   : > { %6357 = shalt.err (!%p6354_p9)
}
 0xca3   : > { %s6358_s26 = scalar_lea.hbm %s7559_s2, 256  ;;  %s6362_s7 = scalar_lea.hbm %s7691_s21, 512 }
 0xca4   : > { %p6359_p10 = scmp.ne.s32.totalorder %s7559_s2, %s6358_s26  ;;  %p6363_p13 = scmp.lt.u32.totalorder %s7559_s2, %s7691_s21 }
 0xca5   : > { %p6364_p0 = scmp.lt.u32.totalorder %s6362_s7, %s6358_s26  ;;  %p6366_p2 = scmp.lt.u32.totalorder %s6358_s26, %s7559_s2 }
 0xca6   : > { %p6360_p11 = pnand %p6359_p10, %p6653_p5 }
 0xca7   : > { %p6365_p1 = por %p6364_p0, %p6363_p13 }
 0xca8   : > { %p6361_p12 = pneg %p6360_p11 }
 0xca9   : > { %p6367_p3 = por %p6366_p2, %p6365_p1 }
 0xcab   : > { %p6368_p4 = pnand %p6367_p3, %p6361_p12 }
 0xcad   : > { %6371 = shalt.err (!%p6368_p4)
}
 0xcae   : > { %s6499_s24 = smov 128   ;;  %s6500_s6 = smov 8   ;;  %4812 = vrot.lane.b32.xlu1 %v7522_v34, %s7806_s29  ;;  %v3269_v46 = vpop.permute.xlu1 %3268 }
 0xcaf   : > { %6161 = dma.vmem_to_hbm [thread:$0]  (%p6653_p5), %s7562_s27, 256, %s7559_s2, %s7534_s28, %s6499_s24, %s6499_s24, %s6500_s6  }
 0xcb0   : > { %3271 = vst.msk [vmem:[%s7460_s4 + $0x10] sm:$0xff] %vm2798_vm3, %v3269_v46  ;;  %s5714_s29 = sshll.u32 %s6634_s3, 9  ;;  %s5460_s28 = sshll.u32 %s7460_s4, 4  ;;  %s7622_s28 = int_to_ptr.vmem [resolvable:$true] %s5460_s28 }
 0xcb1   : > { %s7620_s1 = scalar_lea.hbm %s7689_s19, %s5714_s29  ;;  %s5437_s3 = scalar_lea.sflag [#allocation7], %s6905_s22 }
 0xcb2   : > { %s6372_s30 = scalar_lea.vmem %s7622_s28, 512  ;;  %s6501_s26 = smov [#allocation6]  }
 0xcb3   : > { %p6373_p7 = scmp.ne.s32.totalorder %s7622_s28, %s6372_s30  ;;  %s6376_s9 = sshll.u32 %s6501_s26, 4  ;;  %s6377_s9 = int_to_ptr.vmem [resolvable:$false] %s6376_s9 }
 0xcb4   : > { %s6378_s23 = scalar_lea.vmem %s6377_s9, 1024  ;;  %p6379_p10 = scmp.lt.s32.totalorder %s7622_s28, %s6377_s9 }
 0xcb5   : > { %v3579_v1 = vpop.permute.xlu1 %3578  ;;  %p6374_p8 = pnand %p6373_p7, %p6653_p5  ;;  %p6380_p11 = scmp.lt.s32.totalorder %s6378_s23, %s6372_s30 }
 0xcb7   : > { %p6375_p9 = pneg %p6374_p8  ;;  %p6381_p12 = por %p6380_p11, %p6379_p10 }
 0xcb9   : > { %v3424_v5 = vpop.permute.xlu1 %3423  ;;  %p6382_p13 = pnand %p6381_p12, %p6375_p9 }
 0xcba   : > { %3426 = vst.msk [vmem:[%s7460_s4 + $0x10] sm:$0xff] %vm2808_vm15, %v3424_v5 }
 0xcbb   : > { %3581 = vst.msk [vmem:[%s7460_s4 + $0x10] sm:$0xff] %vm2818_vm1, %v3579_v1 }
 0xcc1   : > { %v3885_v57 = vpop.permute.xlu0 %3884 }
 0xcc2   : > { %3887 = vst.msk [vmem:[%s7460_s4 + $0x18] sm:$0xff] %vm2798_vm3, %v3885_v57 }
 0xccd   : > { %v4195_v2 = vpop.permute.xlu0 %4194 }
 0xcd1   : > { %v4040_v30 = vpop.permute.xlu0 %4039 }
 0xcd2   : > { %4042 = vst.msk [vmem:[%s7460_s4 + $0x18] sm:$0xff] %vm2808_vm15, %v4040_v30 }
 0xcd3   : > { %4197 = vst.msk [vmem:[%s7460_s4 + $0x18] sm:$0xff] %vm2818_vm1, %v4195_v2 }
 0xcd9   : > { %v4503_v8 = vpop.permute.xlu1 %4502 }
 0xcdd   : > { %v4348_v9 = vpop.permute.xlu1 %4347 }
 0xcde   : > { %4350 = vst.msk [vmem:[%s7460_s4 + $0x10] sm:$0xff] %vm2793_vm0, %v4348_v9 }
 0xcdf   : > { %4505 = vst.msk [vmem:[%s7460_s4 + $0x10] sm:$0xff] %vm2803_vm14, %v4503_v8 }
 0xce7   : > { %v4658_v4 = vpop.permute.xlu0 %4657 }
 0xce8   : > { %4660 = vst.msk [vmem:[%s7460_s4 + $0x10] sm:$0xff] %vm2813_vm4, %v4658_v4 }
 0xcf1   : > { %v5123_v47 = vpop.permute.xlu0 %5122 }
 0xcf5   : > { %v4968_v48 = vpop.permute.xlu0 %4967 }
 0xcf6   : > { %4970 = vst.msk [vmem:[%s7460_s4 + $0x18] sm:$0xff] %vm2793_vm0, %v4968_v48 }
 0xcf7   : > { %5125 = vst.msk [vmem:[%s7460_s4 + $0x18] sm:$0xff] %vm2803_vm14, %v5123_v47 }
 0xd09   : > { %v5433_v50 = vpop.permute.xlu0 %5432 }
 0xd0b   : > { %v5278_v49 = vpop.permute.xlu1 %5277 }
 0xd0c   : > { %5280 = vst.msk [vmem:[%s7460_s4 + $0x18] sm:$0xff] %vm2813_vm4, %v5278_v49 }
 0xd0d   : > { %5435 = vst.msk [vmem:[%s7460_s4 + $0x18] sm:$0xff] %vm2828_vm5, %v5433_v50 }
 0xd20   : > { %v4813_v7 = vpop.permute.xlu1 %4812 }
 0xd21   : > { %4815 = vst.msk [vmem:[%s7460_s4 + $0x10] sm:$0xff] %vm2828_vm5, %v4813_v7 }
 0xd22   : > { %6385 = shalt.err (!%p6382_p13)
}
 0xd23   : > { %s6386_s4 = scalar_lea.hbm %s7620_s1, 512  ;;  %s6390_s0 = scalar_lea.hbm %s7689_s19, 1024 }
 0xd24   : > { %p6387_p0 = scmp.ne.s32.totalorder %s7620_s1, %s6386_s4  ;;  %p6391_p3 = scmp.lt.u32.totalorder %s7620_s1, %s7689_s19 }
 0xd25   : > { %p6392_p4 = scmp.lt.u32.totalorder %s6390_s0, %s6386_s4  ;;  %p6394_p8 = scmp.lt.u32.totalorder %s6386_s4, %s7620_s1 }
 0xd26   : > { %p6388_p1 = pnand %p6387_p0, %p6653_p5 }
 0xd27   : > { %p6393_p7 = por %p6392_p4, %p6391_p3 }
 0xd28   : > { %p6389_p2 = pneg %p6388_p1 }
 0xd29   : > { %p6395_p9 = por %p6394_p8, %p6393_p7 }
 0xd2b   : > { %p6396_p10 = pnand %p6395_p9, %p6389_p2 }
 0xd2d   : > { %6399 = shalt.err (!%p6396_p10)
}
 0xd2e   : > { %s6502_s29 = smov 256   ;;  %s7810_s2 = smov 16  }
 0xd2f   : > { %6159 = dma.vmem_to_hbm [thread:$0]  (%p6653_p5), %s7622_s28, 512, %s7620_s1, %s5437_s3, %s6502_s29, %s6502_s29, %s7810_s2  }
 0xd30 PF: > { %s7811_s27 = sld [smem:[#allocation15_spill]]  ;;  %s7812_s30 = sld [smem:[#allocation13_spill]] }
 0xd36   : > { %p6175_p11 = scmp.ge.s32.totalorder %s7811_s27, 2  ;;  %s5505_s9 = sand.u32 1, %s7812_s30  }
 0xd37   : > { %s5506_s23 = scalar_lea.sflag [#allocation7], %s5505_s9 }
 0xd38   : > { %p6166_p12 = pnand %p6175_p11, %p6657_p6 }
 0xd3a   : > { %6417 = dma.done.wait (!%p6166_p12), %s5506_s23, 512  }
 0xd3b   : > { %6419 = vsyncadd (!%p6166_p12), %s5506_s23, 4294966784  ;;  %s7814_s4 = sadd.s32 4294967294, %s7811_s27  }
 0xd3c   : > { %s5514_s5 = sand.u32 1, %s7814_s4  }
 0xd3d   : > { %s5515_s7 = scalar_lea.sflag [#allocation9], %s5514_s5 }
 0xd3e   : > { %6421 = dma.done.wait (!%p6166_p12), %s5515_s7, 640  }
 0xd3f   : > { %6423 = vsyncadd (!%p6166_p12), %s5515_s7, 4294966656  ;;  %s7815_s27 = sld [smem:[#allocation16_spill]]  ;;  %s7816_s22 = sld [smem:[#allocation14_spill]] }
 0xd40   : > { %s7817_s26 = sld [smem:[#allocation17_spill]]  ;;  %s7818_s2 = smov %s6430_s25 }
 0xd45   : > { %p35_p5 = scmp.ge.s32.totalorder %s7815_s27, 4   ;;  %s7819_s25 = smov %s7816_s22 }
 0xd47   :  { %37 = sbr.rel (!%p35_p5) target bundleno = 16 (0x10), region = 164 }
 0xd4e   :  { %5529 = vsyncpa [#allocation7], 1 }
 0xd4f   :  { %5531 = vsyncpa [#allocation7 + $0x1], 1 }
 0xd50   :  { %5532 = vsyncpa [#allocation9], 1 }
 0xd51   :  { %5534 = vsyncpa [#allocation9 + $0x1], 1 }

</bundles_post_ra>
